<compile_context>
chip_gen: v6e
topology: v6e:2x2x1
jax: 0.10.0
libtpu: 0.0.40
codegen_flags: <defaults>
</compile_context>

<pallas_src>
import itertools

import numpy as np
import jax
import jax.numpy as jnp
from jax import lax
from jax.experimental import pallas as pl
from jax.experimental.pallas import tpu as pltpu

# ---- SetCriterion.__init__ equivalents (deterministic, in-script) ----
NUM_CLASSES = 5                       # num object classes (no-object class is index NUM_CLASSES)
EOS_COEF = 0.1                        # eos_coef
COST_CLASS, COST_BBOX, COST_GIOU = 1.0, 5.0, 2.0   # HungarianMatcher weights (DETR defaults)
WEIGHT_DICT = {'loss_ce': 1.0, 'loss_bbox': 5.0, 'loss_giou': 2.0}
LOSSES = ['labels', 'cardinality', 'boxes']
EPS = 1e-7
_OUT_LANES = 128                      # lane-dense per-image output row
# TODO(synk): 'masks' loss (pred_masks + bilinear interpolate + focal/dice) not implemented.


def _cxcywh_to_xyxy(cx, cy, w, h):
    return cx - 0.5 * w, cy - 0.5 * h, cx + 0.5 * w, cy + 0.5 * h


def _pairwise_giou(scx, scy, sw, sh, tcx, tcy, tw, th):
    """Generalized IoU; broadcasts (Q,1) vs (1,T) for the matcher and (1,1) vs (1,1) for the loss."""
    sx0, sy0, sx1, sy1 = _cxcywh_to_xyxy(scx, scy, sw, sh)
    tx0, ty0, tx1, ty1 = _cxcywh_to_xyxy(tcx, tcy, tw, th)
    area_s = (sx1 - sx0) * (sy1 - sy0)
    area_t = (tx1 - tx0) * (ty1 - ty0)
    iw = jnp.maximum(jnp.minimum(sx1, tx1) - jnp.maximum(sx0, tx0), 0.0)
    ih = jnp.maximum(jnp.minimum(sy1, ty1) - jnp.maximum(sy0, ty0), 0.0)
    inter = iw * ih
    union = area_s + area_t - inter
    iou = inter / (union + EPS)
    ew = jnp.maximum(jnp.maximum(sx1, tx1) - jnp.minimum(sx0, tx0), 0.0)
    eh = jnp.maximum(jnp.maximum(sy1, ty1) - jnp.minimum(sy0, ty0), 0.0)
    enclose = ew * eh
    return iou - (enclose - union) / (enclose + EPS)


def _assignment_table(Q, T):
    """f32 table A[t, q, p] = 1 iff injective assignment p maps target t -> query q (host-precomputed)."""
    assert T <= Q
    perms = np.asarray(list(itertools.permutations(range(Q), T)), dtype=np.int32)   # (P, T)
    P = perms.shape[0]
    tbl = np.zeros((T, Q, P), np.float32)
    p_idx = np.repeat(np.arange(P, dtype=np.int64), T)
    t_idx = np.tile(np.arange(T, dtype=np.int64), P)
    q_idx = perms.reshape(-1).astype(np.int64)
    tbl[t_idx, q_idx, p_idx] = 1.0
    return tbl


# -------------------------------------------------------------------------
# Fused kernel: matcher cost + exact optimal assignment + all losses, one grid step per image.
# -------------------------------------------------------------------------
def _criterion_kernel(labels_ref, logits_ref, pbox_ref, tboxT_ref, laboh_ref,
                      assign_ref, out_ref):
    Q, C1 = logits_ref.shape
    T = tboxT_ref.shape[1]
    P = assign_ref.shape[2]
    NC = C1 - 1
    b = pl.program_id(0)

    c_iota = lax.broadcasted_iota(jnp.int32, (1, C1), 1)
    p_iota = lax.broadcasted_iota(jnp.int32, (1, P), 1)
    lane = lax.broadcasted_iota(jnp.int32, (1, _OUT_LANES), 1)

    logits = logits_ref[...]                       # (Q, C1)
    pbox = pbox_ref[...]                           # (Q, 4)
    tbT = tboxT_ref[...]                           # (4, T)

    # ---- shared softmax statistics: used by matcher prob AND the CE -log_softmax ----
    m = jnp.max(logits, axis=-1, keepdims=True)
    e = jnp.exp(logits - m)
    se = jnp.sum(e, axis=-1, keepdims=True)
    prob = e / se                                  # softmax (exact -> deterministic ranking)
    nlogp = (jnp.log(se) + m) - logits             # -log_softmax

    # ---- matcher cost matrix (Q, T) ----
    # cost_class[q, t] = -prob[q, labels[t]]  as a single MXU contraction with the host one-hot.
    cost_class = -jnp.dot(prob, laboh_ref[...], preferred_element_type=jnp.float32)   # (Q, T)

    scx, scy, sw, sh = pbox[:, 0:1], pbox[:, 1:2], pbox[:, 2:3], pbox[:, 3:4]
    tcx, tcy, tw, th = tbT[0:1, :], tbT[1:2, :], tbT[2:3, :], tbT[3:4, :]
    cost_bbox = (jnp.abs(scx - tcx) + jnp.abs(scy - tcy)
                 + jnp.abs(sw - tw) + jnp.abs(sh - th))                                # (Q, T)
    giou_qt = _pairwise_giou(scx, scy, sw, sh, tcx, tcy, tw, th)                       # (Q, T)
    cost = COST_BBOX * cost_bbox + COST_CLASS * cost_class + COST_GIOU * (-giou_qt)

    # ---- exact optimal assignment: score every injective map via the precomputed table ----
    totals = jnp.zeros((1, P), jnp.float32)
    for t in range(T):
        totals = totals + jnp.sum(cost[:, t:t + 1] * assign_ref[t], axis=0, keepdims=True)
    minval = jnp.min(totals)
    best_p = jnp.min(jnp.where(totals == minval, p_iota, P))      # first-index argmin
    onehot_best = (p_iota == best_p).astype(jnp.float32)          # (1, P)

    # ---- supervision losses on the matched pairs (everything stays in vector registers) ----
    w_row = jnp.where(c_iota == NC, EOS_COEF, 1.0).astype(jnp.float32)   # empty_weight (1, C1)
    noobj_row = (c_iota == NC).astype(jnp.float32)

    tc_onehot = jnp.zeros((Q, C1), jnp.float32)
    matched = jnp.zeros((Q, 1), jnp.float32)
    correct = jnp.zeros((1, 1), jnp.float32)
    l1_sum = jnp.zeros((1, 1), jnp.float32)
    giou_sum = jnp.zeros((1, 1), jnp.float32)

    for t in range(T):
        # one-hot over queries of the query matched to target t under the winning assignment
        qoh = jnp.sum(assign_ref[t] * onehot_best, axis=1, keepdims=True)   # (Q, 1)
        lab = labels_ref[b * T + t]                                         # SMEM scalar
        cls_oh = (c_iota == lab).astype(jnp.float32)                        # (1, C1)
        tc_onehot = tc_onehot + qoh * cls_oh
        matched = matched + qoh

        # class_error (logging): top-1 of the matched prediction vs. the target label
        mlog = jnp.sum(qoh * logits, axis=0, keepdims=True)                 # (1, C1)
        mx = jnp.max(mlog)
        pred_c = jnp.min(jnp.where(mlog == mx, c_iota, C1))                 # first argmax
        correct = correct + jnp.where(pred_c == lab, 1.0, 0.0)

        # matched-box L1 + GIoU
        sbox = jnp.sum(qoh * pbox, axis=0, keepdims=True)                   # (1, 4)
        bcx, bcy, bw, bh = sbox[:, 0:1], sbox[:, 1:2], sbox[:, 2:3], sbox[:, 3:4]
        gcx, gcy, gw, gh = (tbT[0:1, t:t + 1], tbT[1:2, t:t + 1],
                            tbT[2:3, t:t + 1], tbT[3:4, t:t + 1])
        l1_sum = l1_sum + (jnp.abs(bcx - gcx) + jnp.abs(bcy - gcy)
                           + jnp.abs(bw - gw) + jnp.abs(bh - gh))
        g = _pairwise_giou(bcx, bcy, bw, bh, gcx, gcy, gw, gh)              # (1, 1)
        giou_sum = giou_sum + (1.0 - g)

    # weighted cross-entropy: unmatched queries get the no-object class
    tc_onehot = tc_onehot + (1.0 - matched) * noobj_row
    ce_num = jnp.sum(tc_onehot * w_row * nlogp)
    ce_den = jnp.sum(tc_onehot * w_row)

    # cardinality error: argmax picks the first max, so "non-empty" iff best_other >= no_obj
    last = logits[:, NC:NC + 1]
    best_other = jnp.max(logits[:, :NC], axis=-1, keepdims=True)
    card = jnp.sum((best_other >= last).astype(jnp.float32))
    card_err = jnp.abs(card - float(T))

    # per-image partial sums packed into one lane-dense output row
    vals = (ce_num, ce_den, correct, card_err, l1_sum, giou_sum)
    row = jnp.zeros((1, _OUT_LANES), jnp.float32)
    for k, v in enumerate(vals):
        row = row + (lane == k).astype(jnp.float32) * v
    out_ref[...] = row


# -------------------------------------------------------------------------
# SetCriterion.forward
# -------------------------------------------------------------------------
def set_criterion_forward(outputs, targets):
    pred_logits = outputs['pred_logits'].astype(jnp.float32)    # (B, Q, C1)
    pred_boxes = outputs['pred_boxes'].astype(jnp.float32)      # (B, Q, 4)
    labels = targets['labels'].astype(jnp.int32)                # (B, T)
    boxes = targets['boxes'].astype(jnp.float32)                # (B, T, 4)
    B, Q, C1 = pred_logits.shape
    T = labels.shape[1]

    assign_tbl = jnp.asarray(_assignment_table(Q, T))           # (T, Q, P) f32, batch-invariant
    P = assign_tbl.shape[2]
    # TODO(synk): for large Q/T, tile the factorial P axis (grid over P chunks + running min/argmin).
    assert assign_tbl.size * 4 < 32 * 1024 * 1024, "permutation table too big; tile the P axis"

    labels_flat = labels.reshape(-1)                                             # (B*T,) -> SMEM
    tboxT = jnp.transpose(boxes, (0, 2, 1))                                      # (B, 4, T)
    lab_oh_ct = jnp.transpose(jax.nn.one_hot(labels, C1, dtype=jnp.float32),
                              (0, 2, 1))                                         # (B, C1, T)

    grid_spec = pltpu.PrefetchScalarGridSpec(
        num_scalar_prefetch=1,                      # labels_flat -> SMEM, scalar reads in-kernel
        grid=(B,),
        in_specs=[
            pl.BlockSpec((None, Q, C1), lambda b, lab: (b, 0, 0)),   # pred_logits (per-image)
            pl.BlockSpec((None, Q, 4), lambda b, lab: (b, 0, 0)),    # pred_boxes  (per-image)
            pl.BlockSpec((None, 4, T), lambda b, lab: (b, 0, 0)),    # tgt boxes, transposed
            pl.BlockSpec((None, C1, T), lambda b, lab: (b, 0, 0)),   # one-hot labels (for MXU dot)
            pl.BlockSpec((T, Q, P), lambda b, lab: (0, 0, 0)),       # assignment table (shared)
        ],
        out_specs=pl.BlockSpec((None, 1, _OUT_LANES), lambda b, lab: (b, 0, 0)),
    )
    raw = pl.pallas_call(
        _criterion_kernel,
        out_shape=jax.ShapeDtypeStruct((B, 1, _OUT_LANES), jnp.float32),
        grid_spec=grid_spec,
        compiler_params=pltpu.CompilerParams(dimension_semantics=("parallel",)),
    )(labels_flat, pred_logits, pred_boxes, tboxT, lab_oh_ct, assign_tbl)

    # trivial final reductions in the wrapper (per perf review)
    sums = jnp.sum(raw[:, 0, :], axis=0)                         # (128,)
    num_boxes = float(max(B * T, 1))                             # single host; all padded slots valid
    # TODO(synk): distributed all_reduce of num_boxes not applicable in this synthetic setting.
    # TODO(synk): aux_outputs loop omitted (no aux decoder outputs in synthetic inputs).
    return {
        'loss_ce': sums[0] / sums[1],
        'class_error': 100.0 - 100.0 * sums[2] / float(B * T),
        'cardinality_error': sums[3] / float(B),
        'loss_bbox': sums[4] / num_boxes,
        'loss_giou': sums[5] / num_boxes,
    }


if __name__ == "__main__":
    key = jax.random.PRNGKey(0)
    B, Q, T = 2, 8, 4
    C1 = NUM_CLASSES + 1

    k1, k2, k3, k4, k5 = jax.random.split(key, 5)
    pred_logits = jax.random.normal(k1, (B, Q, C1), jnp.float32)
    pred_boxes = jax.nn.sigmoid(jax.random.normal(k2, (B, Q, 4), jnp.float32))
    labels = jax.random.randint(k3, (B, T), 0, NUM_CLASSES, dtype=jnp.int32)
    cxcy = jax.random.uniform(k4, (B, T, 2), jnp.float32, 0.2, 0.8)
    wh = jax.random.uniform(k5, (B, T, 2), jnp.float32, 0.05, 0.3)
    boxes = jnp.concatenate([cxcy, wh], axis=-1)

    outputs = {'pred_logits': pred_logits, 'pred_boxes': pred_boxes}
    targets = {'labels': labels, 'boxes': boxes}

    losses = set_criterion_forward(outputs, targets)
    losses = jax.tree_util.tree_map(jax.block_until_ready, losses)
    print("KERNEL_OK")
</pallas_src>

<mosaic_0001>
module attributes {stable_mosaic.version = 11 : i64} {
  func.func @_criterion_kernel(%arg0: i32, %arg1: memref<8xi32, #tpu.memory_space<smem>>, %arg2: memref<1x8x6xf32, #tpu.memory_space<vmem>>, %arg3: memref<1x8x4xf32, #tpu.memory_space<vmem>>, %arg4: memref<1x4x4xf32, #tpu.memory_space<vmem>>, %arg5: memref<1x6x4xf32, #tpu.memory_space<vmem>>, %arg6: memref<4x8x1680xf32, #tpu.memory_space<vmem>>, %arg7: memref<1x1x128xf32, #tpu.memory_space<vmem>>) attributes {dimension_semantics = [#tpu.dimension_semantics<parallel>], iteration_bounds = array<i64: 2>, scalar_prefetch = 1 : i64, scratch_operands = 0 : i64, tpu.core_type = #tpu.core_type<tc>, window_params = [{transform_indices = @transform_0, window_bounds = array<i64: 1, 8, 6>}, {transform_indices = @transform_1, window_bounds = array<i64: 1, 8, 4>}, {transform_indices = @transform_2, window_bounds = array<i64: 1, 4, 4>}, {transform_indices = @transform_3, window_bounds = array<i64: 1, 6, 4>}, {pipeline_mode = #tpu.pipeline_mode<synchronous>, transform_indices = @transform_4, window_bounds = array<i64: 4, 8, 1680>}, {transform_indices = @transform_5, window_bounds = array<i64: 1, 1, 128>}]} {
    %0 = tpu.iota {dimensions = array<i32: 1>} : vector<1x6xi32>
    %1 = tpu.iota {dimensions = array<i32: 1>} : vector<1x1680xi32>
    %2 = tpu.iota {dimensions = array<i32: 1>} : vector<1x128xi32>
    %c0 = arith.constant 0 : index
    %c0_0 = arith.constant 0 : index
    %c0_1 = arith.constant 0 : index
    %3 = vector.load %arg2[%c0, %c0_0, %c0_1] : memref<1x8x6xf32, #tpu.memory_space<vmem>>, vector<1x8x6xf32>
    %4 = vector.shape_cast %3 : vector<1x8x6xf32> to vector<8x6xf32>
    %c0_2 = arith.constant 0 : index
    %c0_3 = arith.constant 0 : index
    %c0_4 = arith.constant 0 : index
    %5 = vector.load %arg3[%c0_2, %c0_3, %c0_4] : memref<1x8x4xf32, #tpu.memory_space<vmem>>, vector<1x8x4xf32>
    %6 = vector.shape_cast %5 : vector<1x8x4xf32> to vector<8x4xf32>
    %c0_5 = arith.constant 0 : index
    %c0_6 = arith.constant 0 : index
    %c0_7 = arith.constant 0 : index
    %7 = vector.load %arg4[%c0_5, %c0_6, %c0_7] : memref<1x4x4xf32, #tpu.memory_space<vmem>>, vector<1x4x4xf32>
    %8 = vector.shape_cast %7 : vector<1x4x4xf32> to vector<4x4xf32>
    %cst = arith.constant dense<0xFF800000> : vector<8xf32>
    %9 = vector.multi_reduction <maximumf>, %4, %cst [1] : vector<8x6xf32> to vector<8xf32>
    %10 = vector.shape_cast %9 : vector<8xf32> to vector<8x1xf32>
    %11 = vector.broadcast %10 : vector<8x1xf32> to vector<8x6xf32>
    %12 = arith.subf %4, %11 : vector<8x6xf32>
    %13 = math.exp %12 : vector<8x6xf32>
    %cst_8 = arith.constant dense<0.000000e+00> : vector<8xf32>
    %14 = vector.multi_reduction <add>, %13, %cst_8 [1] : vector<8x6xf32> to vector<8xf32>
    %15 = vector.shape_cast %14 : vector<8xf32> to vector<8x1xf32>
    %16 = vector.broadcast %15 : vector<8x1xf32> to vector<8x6xf32>
    %17 = arith.divf %13, %16 : vector<8x6xf32>
    %18 = math.log %15 : vector<8x1xf32>
    %19 = arith.addf %18, %10 : vector<8x1xf32>
    %20 = vector.broadcast %19 : vector<8x1xf32> to vector<8x6xf32>
    %21 = arith.subf %20, %4 : vector<8x6xf32>
    %c0_9 = arith.constant 0 : index
    %c0_10 = arith.constant 0 : index
    %c0_11 = arith.constant 0 : index
    %22 = vector.load %arg5[%c0_9, %c0_10, %c0_11] : memref<1x6x4xf32, #tpu.memory_space<vmem>>, vector<1x6x4xf32>
    %23 = vector.shape_cast %22 : vector<1x6x4xf32> to vector<6x4xf32>
    %cst_12 = arith.constant dense<0.000000e+00> : vector<8x4xf32>
    %24 = tpu.matmul %17, %23, %cst_12 {dimension_numbers = #tpu.dot_dimension_numbers<[1], [0], [0], [1], [0, 0, 1, 1], [], []>} : vector<8x6xf32>, vector<6x4xf32>, vector<8x4xf32> -> vector<8x4xf32>
    %cst_13 = arith.constant 0.000000e+00 : f32
    %25 = vector.broadcast %cst_13 : f32 to vector<8x4xf32>
    %26 = arith.subf %25, %24 : vector<8x4xf32>
    %27 = vector.extract_strided_slice %6 {offsets = [0, 0], sizes = [8, 1], strides = [1, 1]} : vector<8x4xf32> to vector<8x1xf32>
    %28 = vector.extract_strided_slice %6 {offsets = [0, 1], sizes = [8, 1], strides = [1, 1]} : vector<8x4xf32> to vector<8x1xf32>
    %29 = vector.extract_strided_slice %6 {offsets = [0, 2], sizes = [8, 1], strides = [1, 1]} : vector<8x4xf32> to vector<8x1xf32>
    %30 = vector.extract_strided_slice %6 {offsets = [0, 3], sizes = [8, 1], strides = [1, 1]} : vector<8x4xf32> to vector<8x1xf32>
    %31 = vector.extract_strided_slice %8 {offsets = [0, 0], sizes = [1, 4], strides = [1, 1]} : vector<4x4xf32> to vector<1x4xf32>
    %32 = vector.extract_strided_slice %8 {offsets = [1, 0], sizes = [1, 4], strides = [1, 1]} : vector<4x4xf32> to vector<1x4xf32>
    %33 = vector.extract_strided_slice %8 {offsets = [2, 0], sizes = [1, 4], strides = [1, 1]} : vector<4x4xf32> to vector<1x4xf32>
    %34 = vector.extract_strided_slice %8 {offsets = [3, 0], sizes = [1, 4], strides = [1, 1]} : vector<4x4xf32> to vector<1x4xf32>
    %35 = vector.broadcast %27 : vector<8x1xf32> to vector<8x4xf32>
    %36 = vector.broadcast %31 : vector<1x4xf32> to vector<8x4xf32>
    %37 = arith.subf %35, %36 : vector<8x4xf32>
    %38 = math.absf %37 : vector<8x4xf32>
    %39 = vector.broadcast %28 : vector<8x1xf32> to vector<8x4xf32>
    %40 = vector.broadcast %32 : vector<1x4xf32> to vector<8x4xf32>
    %41 = arith.subf %39, %40 : vector<8x4xf32>
    %42 = math.absf %41 : vector<8x4xf32>
    %43 = arith.addf %38, %42 : vector<8x4xf32>
    %44 = vector.broadcast %29 : vector<8x1xf32> to vector<8x4xf32>
    %45 = vector.broadcast %33 : vector<1x4xf32> to vector<8x4xf32>
    %46 = arith.subf %44, %45 : vector<8x4xf32>
    %47 = math.absf %46 : vector<8x4xf32>
    %48 = arith.addf %43, %47 : vector<8x4xf32>
    %49 = vector.broadcast %30 : vector<8x1xf32> to vector<8x4xf32>
    %50 = vector.broadcast %34 : vector<1x4xf32> to vector<8x4xf32>
    %51 = arith.subf %49, %50 : vector<8x4xf32>
    %52 = math.absf %51 : vector<8x4xf32>
    %53 = arith.addf %48, %52 : vector<8x4xf32>
    %cst_14 = arith.constant 5.000000e-01 : f32
    %54 = vector.broadcast %cst_14 : f32 to vector<8x1xf32>
    %55 = arith.mulf %54, %29 : vector<8x1xf32>
    %56 = arith.subf %27, %55 : vector<8x1xf32>
    %cst_15 = arith.constant 5.000000e-01 : f32
    %57 = vector.broadcast %cst_15 : f32 to vector<8x1xf32>
    %58 = arith.mulf %57, %30 : vector<8x1xf32>
    %59 = arith.subf %28, %58 : vector<8x1xf32>
    %cst_16 = arith.constant 5.000000e-01 : f32
    %60 = vector.broadcast %cst_16 : f32 to vector<8x1xf32>
    %61 = arith.mulf %60, %29 : vector<8x1xf32>
    %62 = arith.addf %27, %61 : vector<8x1xf32>
    %cst_17 = arith.constant 5.000000e-01 : f32
    %63 = vector.broadcast %cst_17 : f32 to vector<8x1xf32>
    %64 = arith.mulf %63, %30 : vector<8x1xf32>
    %65 = arith.addf %28, %64 : vector<8x1xf32>
    %cst_18 = arith.constant 5.000000e-01 : f32
    %66 = vector.broadcast %cst_18 : f32 to vector<1x4xf32>
    %67 = arith.mulf %66, %33 : vector<1x4xf32>
    %68 = arith.subf %31, %67 : vector<1x4xf32>
    %cst_19 = arith.constant 5.000000e-01 : f32
    %69 = vector.broadcast %cst_19 : f32 to vector<1x4xf32>
    %70 = arith.mulf %69, %34 : vector<1x4xf32>
    %71 = arith.subf %32, %70 : vector<1x4xf32>
    %cst_20 = arith.constant 5.000000e-01 : f32
    %72 = vector.broadcast %cst_20 : f32 to vector<1x4xf32>
    %73 = arith.mulf %72, %33 : vector<1x4xf32>
    %74 = arith.addf %31, %73 : vector<1x4xf32>
    %cst_21 = arith.constant 5.000000e-01 : f32
    %75 = vector.broadcast %cst_21 : f32 to vector<1x4xf32>
    %76 = arith.mulf %75, %34 : vector<1x4xf32>
    %77 = arith.addf %32, %76 : vector<1x4xf32>
    %78 = arith.subf %62, %56 : vector<8x1xf32>
    %79 = arith.subf %65, %59 : vector<8x1xf32>
    %80 = arith.mulf %78, %79 : vector<8x1xf32>
    %81 = arith.subf %74, %68 : vector<1x4xf32>
    %82 = arith.subf %77, %71 : vector<1x4xf32>
    %83 = arith.mulf %81, %82 : vector<1x4xf32>
    %84 = vector.broadcast %62 : vector<8x1xf32> to vector<8x4xf32>
    %85 = vector.broadcast %74 : vector<1x4xf32> to vector<8x4xf32>
    %86 = arith.minimumf %84, %85 : vector<8x4xf32>
    %87 = vector.broadcast %56 : vector<8x1xf32> to vector<8x4xf32>
    %88 = vector.broadcast %68 : vector<1x4xf32> to vector<8x4xf32>
    %89 = arith.maximumf %87, %88 : vector<8x4xf32>
    %90 = arith.subf %86, %89 : vector<8x4xf32>
    %cst_22 = arith.constant 0.000000e+00 : f32
    %91 = vector.broadcast %cst_22 : f32 to vector<8x4xf32>
    %92 = arith.maximumf %90, %91 : vector<8x4xf32>
    %93 = vector.broadcast %65 : vector<8x1xf32> to vector<8x4xf32>
    %94 = vector.broadcast %77 : vector<1x4xf32> to vector<8x4xf32>
    %95 = arith.minimumf %93, %94 : vector<8x4xf32>
    %96 = vector.broadcast %59 : vector<8x1xf32> to vector<8x4xf32>
    %97 = vector.broadcast %71 : vector<1x4xf32> to vector<8x4xf32>
    %98 = arith.maximumf %96, %97 : vector<8x4xf32>
    %99 = arith.subf %95, %98 : vector<8x4xf32>
    %cst_23 = arith.constant 0.000000e+00 : f32
    %100 = vector.broadcast %cst_23 : f32 to vector<8x4xf32>
    %101 = arith.maximumf %99, %100 : vector<8x4xf32>
    %102 = arith.mulf %92, %101 : vector<8x4xf32>
    %103 = vector.broadcast %80 : vector<8x1xf32> to vector<8x4xf32>
    %104 = vector.broadcast %83 : vector<1x4xf32> to vector<8x4xf32>
    %105 = arith.addf %103, %104 : vector<8x4xf32>
    %106 = arith.subf %105, %102 : vector<8x4xf32>
    %cst_24 = arith.constant 1.000000e-07 : f32
    %107 = vector.broadcast %cst_24 : f32 to vector<8x4xf32>
    %108 = arith.addf %106, %107 : vector<8x4xf32>
    %109 = arith.divf %102, %108 : vector<8x4xf32>
    %110 = vector.broadcast %62 : vector<8x1xf32> to vector<8x4xf32>
    %111 = vector.broadcast %74 : vector<1x4xf32> to vector<8x4xf32>
    %112 = arith.maximumf %110, %111 : vector<8x4xf32>
    %113 = vector.broadcast %56 : vector<8x1xf32> to vector<8x4xf32>
    %114 = vector.broadcast %68 : vector<1x4xf32> to vector<8x4xf32>
    %115 = arith.minimumf %113, %114 : vector<8x4xf32>
    %116 = arith.subf %112, %115 : vector<8x4xf32>
    %cst_25 = arith.constant 0.000000e+00 : f32
    %117 = vector.broadcast %cst_25 : f32 to vector<8x4xf32>
    %118 = arith.maximumf %116, %117 : vector<8x4xf32>
    %119 = vector.broadcast %65 : vector<8x1xf32> to vector<8x4xf32>
    %120 = vector.broadcast %77 : vector<1x4xf32> to vector<8x4xf32>
    %121 = arith.maximumf %119, %120 : vector<8x4xf32>
    %122 = vector.broadcast %59 : vector<8x1xf32> to vector<8x4xf32>
    %123 = vector.broadcast %71 : vector<1x4xf32> to vector<8x4xf32>
    %124 = arith.minimumf %122, %123 : vector<8x4xf32>
    %125 = arith.subf %121, %124 : vector<8x4xf32>
    %cst_26 = arith.constant 0.000000e+00 : f32
    %126 = vector.broadcast %cst_26 : f32 to vector<8x4xf32>
    %127 = arith.maximumf %125, %126 : vector<8x4xf32>
    %128 = arith.mulf %118, %127 : vector<8x4xf32>
    %129 = arith.subf %128, %106 : vector<8x4xf32>
    %cst_27 = arith.constant 1.000000e-07 : f32
    %130 = vector.broadcast %cst_27 : f32 to vector<8x4xf32>
    %131 = arith.addf %128, %130 : vector<8x4xf32>
    %132 = arith.divf %129, %131 : vector<8x4xf32>
    %133 = arith.subf %109, %132 : vector<8x4xf32>
    %cst_28 = arith.constant 5.000000e+00 : f32
    %134 = vector.broadcast %cst_28 : f32 to vector<8x4xf32>
    %135 = arith.mulf %134, %53 : vector<8x4xf32>
    %cst_29 = arith.constant 1.000000e+00 : f32
    %136 = vector.broadcast %cst_29 : f32 to vector<8x4xf32>
    %137 = arith.mulf %136, %26 : vector<8x4xf32>
    %138 = arith.addf %135, %137 : vector<8x4xf32>
    %cst_30 = arith.constant 0.000000e+00 : f32
    %139 = vector.broadcast %cst_30 : f32 to vector<8x4xf32>
    %140 = arith.subf %139, %133 : vector<8x4xf32>
    %cst_31 = arith.constant 2.000000e+00 : f32
    %141 = vector.broadcast %cst_31 : f32 to vector<8x4xf32>
    %142 = arith.mulf %141, %140 : vector<8x4xf32>
    %143 = arith.addf %138, %142 : vector<8x4xf32>
    %cst_32 = arith.constant 0.000000e+00 : f32
    %144 = vector.broadcast %cst_32 : f32 to vector<1x1680xf32>
    %145 = vector.extract_strided_slice %143 {offsets = [0, 0], sizes = [8, 1], strides = [1, 1]} : vector<8x4xf32> to vector<8x1xf32>
    %c0_33 = arith.constant 0 : index
    %c0_34 = arith.constant 0 : index
    %c0_35 = arith.constant 0 : index
    %146 = vector.load %arg6[%c0_33, %c0_34, %c0_35] : memref<4x8x1680xf32, #tpu.memory_space<vmem>>, vector<1x8x1680xf32>
    %147 = vector.shape_cast %146 : vector<1x8x1680xf32> to vector<8x1680xf32>
    %148 = vector.broadcast %145 : vector<8x1xf32> to vector<8x1680xf32>
    %149 = arith.mulf %148, %147 : vector<8x1680xf32>
    %cst_36 = arith.constant dense<0.000000e+00> : vector<1680xf32>
    %150 = vector.multi_reduction <add>, %149, %cst_36 [0] : vector<8x1680xf32> to vector<1680xf32>
    %151 = vector.shape_cast %150 : vector<1680xf32> to vector<1x1680xf32>
    %152 = arith.addf %144, %151 : vector<1x1680xf32>
    %153 = vector.extract_strided_slice %143 {offsets = [0, 1], sizes = [8, 1], strides = [1, 1]} : vector<8x4xf32> to vector<8x1xf32>
    %c1 = arith.constant 1 : index
    %c0_37 = arith.constant 0 : index
    %c0_38 = arith.constant 0 : index
    %154 = vector.load %arg6[%c1, %c0_37, %c0_38] : memref<4x8x1680xf32, #tpu.memory_space<vmem>>, vector<1x8x1680xf32>
    %155 = vector.shape_cast %154 : vector<1x8x1680xf32> to vector<8x1680xf32>
    %156 = vector.broadcast %153 : vector<8x1xf32> to vector<8x1680xf32>
    %157 = arith.mulf %156, %155 : vector<8x1680xf32>
    %cst_39 = arith.constant dense<0.000000e+00> : vector<1680xf32>
    %158 = vector.multi_reduction <add>, %157, %cst_39 [0] : vector<8x1680xf32> to vector<1680xf32>
    %159 = vector.shape_cast %158 : vector<1680xf32> to vector<1x1680xf32>
    %160 = arith.addf %152, %159 : vector<1x1680xf32>
    %161 = vector.extract_strided_slice %143 {offsets = [0, 2], sizes = [8, 1], strides = [1, 1]} : vector<8x4xf32> to vector<8x1xf32>
    %c2 = arith.constant 2 : index
    %c0_40 = arith.constant 0 : index
    %c0_41 = arith.constant 0 : index
    %162 = vector.load %arg6[%c2, %c0_40, %c0_41] : memref<4x8x1680xf32, #tpu.memory_space<vmem>>, vector<1x8x1680xf32>
    %163 = vector.shape_cast %162 : vector<1x8x1680xf32> to vector<8x1680xf32>
    %164 = vector.broadcast %161 : vector<8x1xf32> to vector<8x1680xf32>
    %165 = arith.mulf %164, %163 : vector<8x1680xf32>
    %cst_42 = arith.constant dense<0.000000e+00> : vector<1680xf32>
    %166 = vector.multi_reduction <add>, %165, %cst_42 [0] : vector<8x1680xf32> to vector<1680xf32>
    %167 = vector.shape_cast %166 : vector<1680xf32> to vector<1x1680xf32>
    %168 = arith.addf %160, %167 : vector<1x1680xf32>
    %169 = vector.extract_strided_slice %143 {offsets = [0, 3], sizes = [8, 1], strides = [1, 1]} : vector<8x4xf32> to vector<8x1xf32>
    %c3 = arith.constant 3 : index
    %c0_43 = arith.constant 0 : index
    %c0_44 = arith.constant 0 : index
    %170 = vector.load %arg6[%c3, %c0_43, %c0_44] : memref<4x8x1680xf32, #tpu.memory_space<vmem>>, vector<1x8x1680xf32>
    %171 = vector.shape_cast %170 : vector<1x8x1680xf32> to vector<8x1680xf32>
    %172 = vector.broadcast %169 : vector<8x1xf32> to vector<8x1680xf32>
    %173 = arith.mulf %172, %171 : vector<8x1680xf32>
    %cst_45 = arith.constant dense<0.000000e+00> : vector<1680xf32>
    %174 = vector.multi_reduction <add>, %173, %cst_45 [0] : vector<8x1680xf32> to vector<1680xf32>
    %175 = vector.shape_cast %174 : vector<1680xf32> to vector<1x1680xf32>
    %176 = arith.addf %168, %175 : vector<1x1680xf32>
    %177 = vector.shape_cast %176 : vector<1x1680xf32> to vector<1x1x1680xf32>
    %cst_46 = arith.constant dense<0x7F800000> : vector<1xf32>
    %178 = vector.multi_reduction <minimumf>, %177, %cst_46 [1, 2] : vector<1x1x1680xf32> to vector<1xf32>
    %179 = vector.shape_cast %178 : vector<1xf32> to vector<1x1x1xf32>
    %180 = vector.extract %179[0, 0, 0] : f32 from vector<1x1x1xf32>
    %181 = vector.broadcast %180 : f32 to vector<1x1680xf32>
    %182 = arith.cmpf oeq, %176, %181 : vector<1x1680xf32>
    %c1680_i32 = arith.constant 1680 : i32
    %183 = vector.broadcast %c1680_i32 : i32 to vector<1x1680xi32>
    %184 = arith.select %182, %1, %183 : vector<1x1680xi1>, vector<1x1680xi32>
    %185 = vector.shape_cast %184 : vector<1x1680xi32> to vector<1x1x1680xi32>
    %cst_47 = arith.constant dense<2147483647> : vector<1xi32>
    %186 = vector.multi_reduction <minsi>, %185, %cst_47 [1, 2] : vector<1x1x1680xi32> to vector<1xi32>
    %187 = vector.shape_cast %186 : vector<1xi32> to vector<1x1x1xi32>
    %188 = vector.extract %187[0, 0, 0] : i32 from vector<1x1x1xi32>
    %189 = vector.broadcast %188 : i32 to vector<1x1680xi32>
    %190 = arith.cmpi eq, %1, %189 : vector<1x1680xi32>
    %191 = arith.extui %190 : vector<1x1680xi1> to vector<1x1680xi32>
    %192 = arith.sitofp %191 : vector<1x1680xi32> to vector<1x1680xf32>
    %c5_i32 = arith.constant 5 : i32
    %193 = vector.broadcast %c5_i32 : i32 to vector<1x6xi32>
    %194 = arith.cmpi eq, %0, %193 : vector<1x6xi32>
    %cst_48 = arith.constant 1.000000e-01 : f32
    %cst_49 = arith.constant 1.000000e+00 : f32
    %195 = vector.broadcast %cst_48 : f32 to vector<1x6xf32>
    %196 = vector.broadcast %cst_49 : f32 to vector<1x6xf32>
    %197 = arith.select %194, %195, %196 : vector<1x6xi1>, vector<1x6xf32>
    %c5_i32_50 = arith.constant 5 : i32
    %198 = vector.broadcast %c5_i32_50 : i32 to vector<1x6xi32>
    %199 = arith.cmpi eq, %0, %198 : vector<1x6xi32>
    %200 = arith.extui %199 : vector<1x6xi1> to vector<1x6xi32>
    %201 = arith.sitofp %200 : vector<1x6xi32> to vector<1x6xf32>
    %cst_51 = arith.constant 0.000000e+00 : f32
    %202 = vector.broadcast %cst_51 : f32 to vector<8x6xf32>
    %cst_52 = arith.constant 0.000000e+00 : f32
    %203 = vector.broadcast %cst_52 : f32 to vector<8x1xf32>
    %cst_53 = arith.constant 0.000000e+00 : f32
    %204 = vector.broadcast %cst_53 : f32 to vector<1x1xf32>
    %cst_54 = arith.constant 0.000000e+00 : f32
    %205 = vector.broadcast %cst_54 : f32 to vector<1x1xf32>
    %cst_55 = arith.constant 0.000000e+00 : f32
    %206 = vector.broadcast %cst_55 : f32 to vector<1x1xf32>
    %c0_56 = arith.constant 0 : index
    %c0_57 = arith.constant 0 : index
    %c0_58 = arith.constant 0 : index
    %207 = vector.load %arg6[%c0_56, %c0_57, %c0_58] : memref<4x8x1680xf32, #tpu.memory_space<vmem>>, vector<1x8x1680xf32>
    %208 = vector.shape_cast %207 : vector<1x8x1680xf32> to vector<8x1680xf32>
    %209 = vector.broadcast %192 : vector<1x1680xf32> to vector<8x1680xf32>
    %210 = arith.mulf %208, %209 : vector<8x1680xf32>
    %cst_59 = arith.constant dense<0.000000e+00> : vector<8xf32>
    %211 = vector.multi_reduction <add>, %210, %cst_59 [1] : vector<8x1680xf32> to vector<8xf32>
    %212 = vector.shape_cast %211 : vector<8xf32> to vector<8x1xf32>
    %c4_i32 = arith.constant 4 : i32
    %213 = arith.muli %arg0, %c4_i32 : i32
    %c0_i32 = arith.constant 0 : i32
    %214 = arith.addi %213, %c0_i32 : i32
    %215 = arith.index_cast %214 : i32 to index
    %216 = memref.load %arg1[%215] : memref<8xi32, #tpu.memory_space<smem>>
    %217 = vector.broadcast %216 : i32 to vector<1x6xi32>
    %218 = arith.cmpi eq, %0, %217 : vector<1x6xi32>
    %219 = arith.extui %218 : vector<1x6xi1> to vector<1x6xi32>
    %220 = arith.sitofp %219 : vector<1x6xi32> to vector<1x6xf32>
    %221 = vector.broadcast %212 : vector<8x1xf32> to vector<8x6xf32>
    %222 = vector.broadcast %220 : vector<1x6xf32> to vector<8x6xf32>
    %223 = arith.mulf %221, %222 : vector<8x6xf32>
    %224 = arith.addf %202, %223 : vector<8x6xf32>
    %225 = arith.addf %203, %212 : vector<8x1xf32>
    %226 = vector.broadcast %212 : vector<8x1xf32> to vector<8x6xf32>
    %227 = arith.mulf %226, %4 : vector<8x6xf32>
    %cst_60 = arith.constant dense<0.000000e+00> : vector<6xf32>
    %228 = vector.multi_reduction <add>, %227, %cst_60 [0] : vector<8x6xf32> to vector<6xf32>
    %229 = vector.shape_cast %228 : vector<6xf32> to vector<1x6xf32>
    %230 = vector.shape_cast %229 : vector<1x6xf32> to vector<1x1x6xf32>
    %cst_61 = arith.constant dense<0xFF800000> : vector<1xf32>
    %231 = vector.multi_reduction <maximumf>, %230, %cst_61 [1, 2] : vector<1x1x6xf32> to vector<1xf32>
    %232 = vector.shape_cast %231 : vector<1xf32> to vector<1x1x1xf32>
    %233 = vector.extract %232[0, 0, 0] : f32 from vector<1x1x1xf32>
    %234 = vector.broadcast %233 : f32 to vector<1x6xf32>
    %235 = arith.cmpf oeq, %229, %234 : vector<1x6xf32>
    %c6_i32 = arith.constant 6 : i32
    %236 = vector.broadcast %c6_i32 : i32 to vector<1x6xi32>
    %237 = arith.select %235, %0, %236 : vector<1x6xi1>, vector<1x6xi32>
    %238 = vector.shape_cast %237 : vector<1x6xi32> to vector<1x1x6xi32>
    %cst_62 = arith.constant dense<2147483647> : vector<1xi32>
    %239 = vector.multi_reduction <minsi>, %238, %cst_62 [1, 2] : vector<1x1x6xi32> to vector<1xi32>
    %240 = vector.shape_cast %239 : vector<1xi32> to vector<1x1x1xi32>
    %241 = vector.extract %240[0, 0, 0] : i32 from vector<1x1x1xi32>
    %242 = arith.cmpi eq, %241, %216 : i32
    %cst_63 = arith.constant 1.000000e+00 : f32
    %cst_64 = arith.constant 0.000000e+00 : f32
    %243 = arith.select %242, %cst_63, %cst_64 : f32
    %244 = vector.broadcast %243 : f32 to vector<1x1xf32>
    %245 = arith.addf %204, %244 : vector<1x1xf32>
    %246 = vector.broadcast %212 : vector<8x1xf32> to vector<8x4xf32>
    %247 = arith.mulf %246, %6 : vector<8x4xf32>
    %cst_65 = arith.constant dense<0.000000e+00> : vector<4xf32>
    %248 = vector.multi_reduction <add>, %247, %cst_65 [0] : vector<8x4xf32> to vector<4xf32>
    %249 = vector.shape_cast %248 : vector<4xf32> to vector<1x4xf32>
    %250 = vector.extract_strided_slice %249 {offsets = [0, 0], sizes = [1, 1], strides = [1, 1]} : vector<1x4xf32> to vector<1x1xf32>
    %251 = vector.extract_strided_slice %249 {offsets = [0, 1], sizes = [1, 1], strides = [1, 1]} : vector<1x4xf32> to vector<1x1xf32>
    %252 = vector.extract_strided_slice %249 {offsets = [0, 2], sizes = [1, 1], strides = [1, 1]} : vector<1x4xf32> to vector<1x1xf32>
    %253 = vector.extract_strided_slice %249 {offsets = [0, 3], sizes = [1, 1], strides = [1, 1]} : vector<1x4xf32> to vector<1x1xf32>
    %254 = vector.extract_strided_slice %8 {offsets = [0, 0], sizes = [1, 1], strides = [1, 1]} : vector<4x4xf32> to vector<1x1xf32>
    %255 = vector.extract_strided_slice %8 {offsets = [1, 0], sizes = [1, 1], strides = [1, 1]} : vector<4x4xf32> to vector<1x1xf32>
    %256 = vector.extract_strided_slice %8 {offsets = [2, 0], sizes = [1, 1], strides = [1, 1]} : vector<4x4xf32> to vector<1x1xf32>
    %257 = vector.extract_strided_slice %8 {offsets = [3, 0], sizes = [1, 1], strides = [1, 1]} : vector<4x4xf32> to vector<1x1xf32>
    %258 = arith.subf %250, %254 : vector<1x1xf32>
    %259 = math.absf %258 : vector<1x1xf32>
    %260 = arith.subf %251, %255 : vector<1x1xf32>
    %261 = math.absf %260 : vector<1x1xf32>
    %262 = arith.addf %259, %261 : vector<1x1xf32>
    %263 = arith.subf %252, %256 : vector<1x1xf32>
    %264 = math.absf %263 : vector<1x1xf32>
    %265 = arith.addf %262, %264 : vector<1x1xf32>
    %266 = arith.subf %253, %257 : vector<1x1xf32>
    %267 = math.absf %266 : vector<1x1xf32>
    %268 = arith.addf %265, %267 : vector<1x1xf32>
    %269 = arith.addf %205, %268 : vector<1x1xf32>
    %cst_66 = arith.constant 5.000000e-01 : f32
    %270 = vector.broadcast %cst_66 : f32 to vector<1x1xf32>
    %271 = arith.mulf %270, %252 : vector<1x1xf32>
    %272 = arith.subf %250, %271 : vector<1x1xf32>
    %cst_67 = arith.constant 5.000000e-01 : f32
    %273 = vector.broadcast %cst_67 : f32 to vector<1x1xf32>
    %274 = arith.mulf %273, %253 : vector<1x1xf32>
    %275 = arith.subf %251, %274 : vector<1x1xf32>
    %cst_68 = arith.constant 5.000000e-01 : f32
    %276 = vector.broadcast %cst_68 : f32 to vector<1x1xf32>
    %277 = arith.mulf %276, %252 : vector<1x1xf32>
    %278 = arith.addf %250, %277 : vector<1x1xf32>
    %cst_69 = arith.constant 5.000000e-01 : f32
    %279 = vector.broadcast %cst_69 : f32 to vector<1x1xf32>
    %280 = arith.mulf %279, %253 : vector<1x1xf32>
    %281 = arith.addf %251, %280 : vector<1x1xf32>
    %cst_70 = arith.constant 5.000000e-01 : f32
    %282 = vector.broadcast %cst_70 : f32 to vector<1x1xf32>
    %283 = arith.mulf %282, %256 : vector<1x1xf32>
    %284 = arith.subf %254, %283 : vector<1x1xf32>
    %cst_71 = arith.constant 5.000000e-01 : f32
    %285 = vector.broadcast %cst_71 : f32 to vector<1x1xf32>
    %286 = arith.mulf %285, %257 : vector<1x1xf32>
    %287 = arith.subf %255, %286 : vector<1x1xf32>
    %cst_72 = arith.constant 5.000000e-01 : f32
    %288 = vector.broadcast %cst_72 : f32 to vector<1x1xf32>
    %289 = arith.mulf %288, %256 : vector<1x1xf32>
    %290 = arith.addf %254, %289 : vector<1x1xf32>
    %cst_73 = arith.constant 5.000000e-01 : f32
    %291 = vector.broadcast %cst_73 : f32 to vector<1x1xf32>
    %292 = arith.mulf %291, %257 : vector<1x1xf32>
    %293 = arith.addf %255, %292 : vector<1x1xf32>
    %294 = arith.subf %278, %272 : vector<1x1xf32>
    %295 = arith.subf %281, %275 : vector<1x1xf32>
    %296 = arith.mulf %294, %295 : vector<1x1xf32>
    %297 = arith.subf %290, %284 : vector<1x1xf32>
    %298 = arith.subf %293, %287 : vector<1x1xf32>
    %299 = arith.mulf %297, %298 : vector<1x1xf32>
    %300 = arith.minimumf %278, %290 : vector<1x1xf32>
    %301 = arith.maximumf %272, %284 : vector<1x1xf32>
    %302 = arith.subf %300, %301 : vector<1x1xf32>
    %cst_74 = arith.constant 0.000000e+00 : f32
    %303 = vector.broadcast %cst_74 : f32 to vector<1x1xf32>
    %304 = arith.maximumf %302, %303 : vector<1x1xf32>
    %305 = arith.minimumf %281, %293 : vector<1x1xf32>
    %306 = arith.maximumf %275, %287 : vector<1x1xf32>
    %307 = arith.subf %305, %306 : vector<1x1xf32>
    %cst_75 = arith.constant 0.000000e+00 : f32
    %308 = vector.broadcast %cst_75 : f32 to vector<1x1xf32>
    %309 = arith.maximumf %307, %308 : vector<1x1xf32>
    %310 = arith.mulf %304, %309 : vector<1x1xf32>
    %311 = arith.addf %296, %299 : vector<1x1xf32>
    %312 = arith.subf %311, %310 : vector<1x1xf32>
    %cst_76 = arith.constant 1.000000e-07 : f32
    %313 = vector.broadcast %cst_76 : f32 to vector<1x1xf32>
    %314 = arith.addf %312, %313 : vector<1x1xf32>
    %315 = arith.divf %310, %314 : vector<1x1xf32>
    %316 = arith.maximumf %278, %290 : vector<1x1xf32>
    %317 = arith.minimumf %272, %284 : vector<1x1xf32>
    %318 = arith.subf %316, %317 : vector<1x1xf32>
    %cst_77 = arith.constant 0.000000e+00 : f32
    %319 = vector.broadcast %cst_77 : f32 to vector<1x1xf32>
    %320 = arith.maximumf %318, %319 : vector<1x1xf32>
    %321 = arith.maximumf %281, %293 : vector<1x1xf32>
    %322 = arith.minimumf %275, %287 : vector<1x1xf32>
    %323 = arith.subf %321, %322 : vector<1x1xf32>
    %cst_78 = arith.constant 0.000000e+00 : f32
    %324 = vector.broadcast %cst_78 : f32 to vector<1x1xf32>
    %325 = arith.maximumf %323, %324 : vector<1x1xf32>
    %326 = arith.mulf %320, %325 : vector<1x1xf32>
    %327 = arith.subf %326, %312 : vector<1x1xf32>
    %cst_79 = arith.constant 1.000000e-07 : f32
    %328 = vector.broadcast %cst_79 : f32 to vector<1x1xf32>
    %329 = arith.addf %326, %328 : vector<1x1xf32>
    %330 = arith.divf %327, %329 : vector<1x1xf32>
    %331 = arith.subf %315, %330 : vector<1x1xf32>
    %cst_80 = arith.constant 1.000000e+00 : f32
    %332 = vector.broadcast %cst_80 : f32 to vector<1x1xf32>
    %333 = arith.subf %332, %331 : vector<1x1xf32>
    %334 = arith.addf %206, %333 : vector<1x1xf32>
    %c1_81 = arith.constant 1 : index
    %c0_82 = arith.constant 0 : index
    %c0_83 = arith.constant 0 : index
    %335 = vector.load %arg6[%c1_81, %c0_82, %c0_83] : memref<4x8x1680xf32, #tpu.memory_space<vmem>>, vector<1x8x1680xf32>
    %336 = vector.shape_cast %335 : vector<1x8x1680xf32> to vector<8x1680xf32>
    %337 = vector.broadcast %192 : vector<1x1680xf32> to vector<8x1680xf32>
    %338 = arith.mulf %336, %337 : vector<8x1680xf32>
    %cst_84 = arith.constant dense<0.000000e+00> : vector<8xf32>
    %339 = vector.multi_reduction <add>, %338, %cst_84 [1] : vector<8x1680xf32> to vector<8xf32>
    %340 = vector.shape_cast %339 : vector<8xf32> to vector<8x1xf32>
    %c4_i32_85 = arith.constant 4 : i32
    %341 = arith.muli %arg0, %c4_i32_85 : i32
    %c1_i32 = arith.constant 1 : i32
    %342 = arith.addi %341, %c1_i32 : i32
    %343 = arith.index_cast %342 : i32 to index
    %344 = memref.load %arg1[%343] : memref<8xi32, #tpu.memory_space<smem>>
    %345 = vector.broadcast %344 : i32 to vector<1x6xi32>
    %346 = arith.cmpi eq, %0, %345 : vector<1x6xi32>
    %347 = arith.extui %346 : vector<1x6xi1> to vector<1x6xi32>
    %348 = arith.sitofp %347 : vector<1x6xi32> to vector<1x6xf32>
    %349 = vector.broadcast %340 : vector<8x1xf32> to vector<8x6xf32>
    %350 = vector.broadcast %348 : vector<1x6xf32> to vector<8x6xf32>
    %351 = arith.mulf %349, %350 : vector<8x6xf32>
    %352 = arith.addf %224, %351 : vector<8x6xf32>
    %353 = arith.addf %225, %340 : vector<8x1xf32>
    %354 = vector.broadcast %340 : vector<8x1xf32> to vector<8x6xf32>
    %355 = arith.mulf %354, %4 : vector<8x6xf32>
    %cst_86 = arith.constant dense<0.000000e+00> : vector<6xf32>
    %356 = vector.multi_reduction <add>, %355, %cst_86 [0] : vector<8x6xf32> to vector<6xf32>
    %357 = vector.shape_cast %356 : vector<6xf32> to vector<1x6xf32>
    %358 = vector.shape_cast %357 : vector<1x6xf32> to vector<1x1x6xf32>
    %cst_87 = arith.constant dense<0xFF800000> : vector<1xf32>
    %359 = vector.multi_reduction <maximumf>, %358, %cst_87 [1, 2] : vector<1x1x6xf32> to vector<1xf32>
    %360 = vector.shape_cast %359 : vector<1xf32> to vector<1x1x1xf32>
    %361 = vector.extract %360[0, 0, 0] : f32 from vector<1x1x1xf32>
    %362 = vector.broadcast %361 : f32 to vector<1x6xf32>
    %363 = arith.cmpf oeq, %357, %362 : vector<1x6xf32>
    %c6_i32_88 = arith.constant 6 : i32
    %364 = vector.broadcast %c6_i32_88 : i32 to vector<1x6xi32>
    %365 = arith.select %363, %0, %364 : vector<1x6xi1>, vector<1x6xi32>
    %366 = vector.shape_cast %365 : vector<1x6xi32> to vector<1x1x6xi32>
    %cst_89 = arith.constant dense<2147483647> : vector<1xi32>
    %367 = vector.multi_reduction <minsi>, %366, %cst_89 [1, 2] : vector<1x1x6xi32> to vector<1xi32>
    %368 = vector.shape_cast %367 : vector<1xi32> to vector<1x1x1xi32>
    %369 = vector.extract %368[0, 0, 0] : i32 from vector<1x1x1xi32>
    %370 = arith.cmpi eq, %369, %344 : i32
    %cst_90 = arith.constant 1.000000e+00 : f32
    %cst_91 = arith.constant 0.000000e+00 : f32
    %371 = arith.select %370, %cst_90, %cst_91 : f32
    %372 = vector.broadcast %371 : f32 to vector<1x1xf32>
    %373 = arith.addf %245, %372 : vector<1x1xf32>
    %374 = vector.broadcast %340 : vector<8x1xf32> to vector<8x4xf32>
    %375 = arith.mulf %374, %6 : vector<8x4xf32>
    %cst_92 = arith.constant dense<0.000000e+00> : vector<4xf32>
    %376 = vector.multi_reduction <add>, %375, %cst_92 [0] : vector<8x4xf32> to vector<4xf32>
    %377 = vector.shape_cast %376 : vector<4xf32> to vector<1x4xf32>
    %378 = vector.extract_strided_slice %377 {offsets = [0, 0], sizes = [1, 1], strides = [1, 1]} : vector<1x4xf32> to vector<1x1xf32>
    %379 = vector.extract_strided_slice %377 {offsets = [0, 1], sizes = [1, 1], strides = [1, 1]} : vector<1x4xf32> to vector<1x1xf32>
    %380 = vector.extract_strided_slice %377 {offsets = [0, 2], sizes = [1, 1], strides = [1, 1]} : vector<1x4xf32> to vector<1x1xf32>
    %381 = vector.extract_strided_slice %377 {offsets = [0, 3], sizes = [1, 1], strides = [1, 1]} : vector<1x4xf32> to vector<1x1xf32>
    %382 = vector.extract_strided_slice %8 {offsets = [0, 1], sizes = [1, 1], strides = [1, 1]} : vector<4x4xf32> to vector<1x1xf32>
    %383 = vector.extract_strided_slice %8 {offsets = [1, 1], sizes = [1, 1], strides = [1, 1]} : vector<4x4xf32> to vector<1x1xf32>
    %384 = vector.extract_strided_slice %8 {offsets = [2, 1], sizes = [1, 1], strides = [1, 1]} : vector<4x4xf32> to vector<1x1xf32>
    %385 = vector.extract_strided_slice %8 {offsets = [3, 1], sizes = [1, 1], strides = [1, 1]} : vector<4x4xf32> to vector<1x1xf32>
    %386 = arith.subf %378, %382 : vector<1x1xf32>
    %387 = math.absf %386 : vector<1x1xf32>
    %388 = arith.subf %379, %383 : vector<1x1xf32>
    %389 = math.absf %388 : vector<1x1xf32>
    %390 = arith.addf %387, %389 : vector<1x1xf32>
    %391 = arith.subf %380, %384 : vector<1x1xf32>
    %392 = math.absf %391 : vector<1x1xf32>
    %393 = arith.addf %390, %392 : vector<1x1xf32>
    %394 = arith.subf %381, %385 : vector<1x1xf32>
    %395 = math.absf %394 : vector<1x1xf32>
    %396 = arith.addf %393, %395 : vector<1x1xf32>
    %397 = arith.addf %269, %396 : vector<1x1xf32>
    %cst_93 = arith.constant 5.000000e-01 : f32
    %398 = vector.broadcast %cst_93 : f32 to vector<1x1xf32>
    %399 = arith.mulf %398, %380 : vector<1x1xf32>
    %400 = arith.subf %378, %399 : vector<1x1xf32>
    %cst_94 = arith.constant 5.000000e-01 : f32
    %401 = vector.broadcast %cst_94 : f32 to vector<1x1xf32>
    %402 = arith.mulf %401, %381 : vector<1x1xf32>
    %403 = arith.subf %379, %402 : vector<1x1xf32>
    %cst_95 = arith.constant 5.000000e-01 : f32
    %404 = vector.broadcast %cst_95 : f32 to vector<1x1xf32>
    %405 = arith.mulf %404, %380 : vector<1x1xf32>
    %406 = arith.addf %378, %405 : vector<1x1xf32>
    %cst_96 = arith.constant 5.000000e-01 : f32
    %407 = vector.broadcast %cst_96 : f32 to vector<1x1xf32>
    %408 = arith.mulf %407, %381 : vector<1x1xf32>
    %409 = arith.addf %379, %408 : vector<1x1xf32>
    %cst_97 = arith.constant 5.000000e-01 : f32
    %410 = vector.broadcast %cst_97 : f32 to vector<1x1xf32>
    %411 = arith.mulf %410, %384 : vector<1x1xf32>
    %412 = arith.subf %382, %411 : vector<1x1xf32>
    %cst_98 = arith.constant 5.000000e-01 : f32
    %413 = vector.broadcast %cst_98 : f32 to vector<1x1xf32>
    %414 = arith.mulf %413, %385 : vector<1x1xf32>
    %415 = arith.subf %383, %414 : vector<1x1xf32>
    %cst_99 = arith.constant 5.000000e-01 : f32
    %416 = vector.broadcast %cst_99 : f32 to vector<1x1xf32>
    %417 = arith.mulf %416, %384 : vector<1x1xf32>
    %418 = arith.addf %382, %417 : vector<1x1xf32>
    %cst_100 = arith.constant 5.000000e-01 : f32
    %419 = vector.broadcast %cst_100 : f32 to vector<1x1xf32>
    %420 = arith.mulf %419, %385 : vector<1x1xf32>
    %421 = arith.addf %383, %420 : vector<1x1xf32>
    %422 = arith.subf %406, %400 : vector<1x1xf32>
    %423 = arith.subf %409, %403 : vector<1x1xf32>
    %424 = arith.mulf %422, %423 : vector<1x1xf32>
    %425 = arith.subf %418, %412 : vector<1x1xf32>
    %426 = arith.subf %421, %415 : vector<1x1xf32>
    %427 = arith.mulf %425, %426 : vector<1x1xf32>
    %428 = arith.minimumf %406, %418 : vector<1x1xf32>
    %429 = arith.maximumf %400, %412 : vector<1x1xf32>
    %430 = arith.subf %428, %429 : vector<1x1xf32>
    %cst_101 = arith.constant 0.000000e+00 : f32
    %431 = vector.broadcast %cst_101 : f32 to vector<1x1xf32>
    %432 = arith.maximumf %430, %431 : vector<1x1xf32>
    %433 = arith.minimumf %409, %421 : vector<1x1xf32>
    %434 = arith.maximumf %403, %415 : vector<1x1xf32>
    %435 = arith.subf %433, %434 : vector<1x1xf32>
    %cst_102 = arith.constant 0.000000e+00 : f32
    %436 = vector.broadcast %cst_102 : f32 to vector<1x1xf32>
    %437 = arith.maximumf %435, %436 : vector<1x1xf32>
    %438 = arith.mulf %432, %437 : vector<1x1xf32>
    %439 = arith.addf %424, %427 : vector<1x1xf32>
    %440 = arith.subf %439, %438 : vector<1x1xf32>
    %cst_103 = arith.constant 1.000000e-07 : f32
    %441 = vector.broadcast %cst_103 : f32 to vector<1x1xf32>
    %442 = arith.addf %440, %441 : vector<1x1xf32>
    %443 = arith.divf %438, %442 : vector<1x1xf32>
    %444 = arith.maximumf %406, %418 : vector<1x1xf32>
    %445 = arith.minimumf %400, %412 : vector<1x1xf32>
    %446 = arith.subf %444, %445 : vector<1x1xf32>
    %cst_104 = arith.constant 0.000000e+00 : f32
    %447 = vector.broadcast %cst_104 : f32 to vector<1x1xf32>
    %448 = arith.maximumf %446, %447 : vector<1x1xf32>
    %449 = arith.maximumf %409, %421 : vector<1x1xf32>
    %450 = arith.minimumf %403, %415 : vector<1x1xf32>
    %451 = arith.subf %449, %450 : vector<1x1xf32>
    %cst_105 = arith.constant 0.000000e+00 : f32
    %452 = vector.broadcast %cst_105 : f32 to vector<1x1xf32>
    %453 = arith.maximumf %451, %452 : vector<1x1xf32>
    %454 = arith.mulf %448, %453 : vector<1x1xf32>
    %455 = arith.subf %454, %440 : vector<1x1xf32>
    %cst_106 = arith.constant 1.000000e-07 : f32
    %456 = vector.broadcast %cst_106 : f32 to vector<1x1xf32>
    %457 = arith.addf %454, %456 : vector<1x1xf32>
    %458 = arith.divf %455, %457 : vector<1x1xf32>
    %459 = arith.subf %443, %458 : vector<1x1xf32>
    %cst_107 = arith.constant 1.000000e+00 : f32
    %460 = vector.broadcast %cst_107 : f32 to vector<1x1xf32>
    %461 = arith.subf %460, %459 : vector<1x1xf32>
    %462 = arith.addf %334, %461 : vector<1x1xf32>
    %c2_108 = arith.constant 2 : index
    %c0_109 = arith.constant 0 : index
    %c0_110 = arith.constant 0 : index
    %463 = vector.load %arg6[%c2_108, %c0_109, %c0_110] : memref<4x8x1680xf32, #tpu.memory_space<vmem>>, vector<1x8x1680xf32>
    %464 = vector.shape_cast %463 : vector<1x8x1680xf32> to vector<8x1680xf32>
    %465 = vector.broadcast %192 : vector<1x1680xf32> to vector<8x1680xf32>
    %466 = arith.mulf %464, %465 : vector<8x1680xf32>
    %cst_111 = arith.constant dense<0.000000e+00> : vector<8xf32>
    %467 = vector.multi_reduction <add>, %466, %cst_111 [1] : vector<8x1680xf32> to vector<8xf32>
    %468 = vector.shape_cast %467 : vector<8xf32> to vector<8x1xf32>
    %c4_i32_112 = arith.constant 4 : i32
    %469 = arith.muli %arg0, %c4_i32_112 : i32
    %c2_i32 = arith.constant 2 : i32
    %470 = arith.addi %469, %c2_i32 : i32
    %471 = arith.index_cast %470 : i32 to index
    %472 = memref.load %arg1[%471] : memref<8xi32, #tpu.memory_space<smem>>
    %473 = vector.broadcast %472 : i32 to vector<1x6xi32>
    %474 = arith.cmpi eq, %0, %473 : vector<1x6xi32>
    %475 = arith.extui %474 : vector<1x6xi1> to vector<1x6xi32>
    %476 = arith.sitofp %475 : vector<1x6xi32> to vector<1x6xf32>
    %477 = vector.broadcast %468 : vector<8x1xf32> to vector<8x6xf32>
    %478 = vector.broadcast %476 : vector<1x6xf32> to vector<8x6xf32>
    %479 = arith.mulf %477, %478 : vector<8x6xf32>
    %480 = arith.addf %352, %479 : vector<8x6xf32>
    %481 = arith.addf %353, %468 : vector<8x1xf32>
    %482 = vector.broadcast %468 : vector<8x1xf32> to vector<8x6xf32>
    %483 = arith.mulf %482, %4 : vector<8x6xf32>
    %cst_113 = arith.constant dense<0.000000e+00> : vector<6xf32>
    %484 = vector.multi_reduction <add>, %483, %cst_113 [0] : vector<8x6xf32> to vector<6xf32>
    %485 = vector.shape_cast %484 : vector<6xf32> to vector<1x6xf32>
    %486 = vector.shape_cast %485 : vector<1x6xf32> to vector<1x1x6xf32>
    %cst_114 = arith.constant dense<0xFF800000> : vector<1xf32>
    %487 = vector.multi_reduction <maximumf>, %486, %cst_114 [1, 2] : vector<1x1x6xf32> to vector<1xf32>
    %488 = vector.shape_cast %487 : vector<1xf32> to vector<1x1x1xf32>
    %489 = vector.extract %488[0, 0, 0] : f32 from vector<1x1x1xf32>
    %490 = vector.broadcast %489 : f32 to vector<1x6xf32>
    %491 = arith.cmpf oeq, %485, %490 : vector<1x6xf32>
    %c6_i32_115 = arith.constant 6 : i32
    %492 = vector.broadcast %c6_i32_115 : i32 to vector<1x6xi32>
    %493 = arith.select %491, %0, %492 : vector<1x6xi1>, vector<1x6xi32>
    %494 = vector.shape_cast %493 : vector<1x6xi32> to vector<1x1x6xi32>
    %cst_116 = arith.constant dense<2147483647> : vector<1xi32>
    %495 = vector.multi_reduction <minsi>, %494, %cst_116 [1, 2] : vector<1x1x6xi32> to vector<1xi32>
    %496 = vector.shape_cast %495 : vector<1xi32> to vector<1x1x1xi32>
    %497 = vector.extract %496[0, 0, 0] : i32 from vector<1x1x1xi32>
    %498 = arith.cmpi eq, %497, %472 : i32
    %cst_117 = arith.constant 1.000000e+00 : f32
    %cst_118 = arith.constant 0.000000e+00 : f32
    %499 = arith.select %498, %cst_117, %cst_118 : f32
    %500 = vector.broadcast %499 : f32 to vector<1x1xf32>
    %501 = arith.addf %373, %500 : vector<1x1xf32>
    %502 = vector.broadcast %468 : vector<8x1xf32> to vector<8x4xf32>
    %503 = arith.mulf %502, %6 : vector<8x4xf32>
    %cst_119 = arith.constant dense<0.000000e+00> : vector<4xf32>
    %504 = vector.multi_reduction <add>, %503, %cst_119 [0] : vector<8x4xf32> to vector<4xf32>
    %505 = vector.shape_cast %504 : vector<4xf32> to vector<1x4xf32>
    %506 = vector.extract_strided_slice %505 {offsets = [0, 0], sizes = [1, 1], strides = [1, 1]} : vector<1x4xf32> to vector<1x1xf32>
    %507 = vector.extract_strided_slice %505 {offsets = [0, 1], sizes = [1, 1], strides = [1, 1]} : vector<1x4xf32> to vector<1x1xf32>
    %508 = vector.extract_strided_slice %505 {offsets = [0, 2], sizes = [1, 1], strides = [1, 1]} : vector<1x4xf32> to vector<1x1xf32>
    %509 = vector.extract_strided_slice %505 {offsets = [0, 3], sizes = [1, 1], strides = [1, 1]} : vector<1x4xf32> to vector<1x1xf32>
    %510 = vector.extract_strided_slice %8 {offsets = [0, 2], sizes = [1, 1], strides = [1, 1]} : vector<4x4xf32> to vector<1x1xf32>
    %511 = vector.extract_strided_slice %8 {offsets = [1, 2], sizes = [1, 1], strides = [1, 1]} : vector<4x4xf32> to vector<1x1xf32>
    %512 = vector.extract_strided_slice %8 {offsets = [2, 2], sizes = [1, 1], strides = [1, 1]} : vector<4x4xf32> to vector<1x1xf32>
    %513 = vector.extract_strided_slice %8 {offsets = [3, 2], sizes = [1, 1], strides = [1, 1]} : vector<4x4xf32> to vector<1x1xf32>
    %514 = arith.subf %506, %510 : vector<1x1xf32>
    %515 = math.absf %514 : vector<1x1xf32>
    %516 = arith.subf %507, %511 : vector<1x1xf32>
    %517 = math.absf %516 : vector<1x1xf32>
    %518 = arith.addf %515, %517 : vector<1x1xf32>
    %519 = arith.subf %508, %512 : vector<1x1xf32>
    %520 = math.absf %519 : vector<1x1xf32>
    %521 = arith.addf %518, %520 : vector<1x1xf32>
    %522 = arith.subf %509, %513 : vector<1x1xf32>
    %523 = math.absf %522 : vector<1x1xf32>
    %524 = arith.addf %521, %523 : vector<1x1xf32>
    %525 = arith.addf %397, %524 : vector<1x1xf32>
    %cst_120 = arith.constant 5.000000e-01 : f32
    %526 = vector.broadcast %cst_120 : f32 to vector<1x1xf32>
    %527 = arith.mulf %526, %508 : vector<1x1xf32>
    %528 = arith.subf %506, %527 : vector<1x1xf32>
    %cst_121 = arith.constant 5.000000e-01 : f32
    %529 = vector.broadcast %cst_121 : f32 to vector<1x1xf32>
    %530 = arith.mulf %529, %509 : vector<1x1xf32>
    %531 = arith.subf %507, %530 : vector<1x1xf32>
    %cst_122 = arith.constant 5.000000e-01 : f32
    %532 = vector.broadcast %cst_122 : f32 to vector<1x1xf32>
    %533 = arith.mulf %532, %508 : vector<1x1xf32>
    %534 = arith.addf %506, %533 : vector<1x1xf32>
    %cst_123 = arith.constant 5.000000e-01 : f32
    %535 = vector.broadcast %cst_123 : f32 to vector<1x1xf32>
    %536 = arith.mulf %535, %509 : vector<1x1xf32>
    %537 = arith.addf %507, %536 : vector<1x1xf32>
    %cst_124 = arith.constant 5.000000e-01 : f32
    %538 = vector.broadcast %cst_124 : f32 to vector<1x1xf32>
    %539 = arith.mulf %538, %512 : vector<1x1xf32>
    %540 = arith.subf %510, %539 : vector<1x1xf32>
    %cst_125 = arith.constant 5.000000e-01 : f32
    %541 = vector.broadcast %cst_125 : f32 to vector<1x1xf32>
    %542 = arith.mulf %541, %513 : vector<1x1xf32>
    %543 = arith.subf %511, %542 : vector<1x1xf32>
    %cst_126 = arith.constant 5.000000e-01 : f32
    %544 = vector.broadcast %cst_126 : f32 to vector<1x1xf32>
    %545 = arith.mulf %544, %512 : vector<1x1xf32>
    %546 = arith.addf %510, %545 : vector<1x1xf32>
    %cst_127 = arith.constant 5.000000e-01 : f32
    %547 = vector.broadcast %cst_127 : f32 to vector<1x1xf32>
    %548 = arith.mulf %547, %513 : vector<1x1xf32>
    %549 = arith.addf %511, %548 : vector<1x1xf32>
    %550 = arith.subf %534, %528 : vector<1x1xf32>
    %551 = arith.subf %537, %531 : vector<1x1xf32>
    %552 = arith.mulf %550, %551 : vector<1x1xf32>
    %553 = arith.subf %546, %540 : vector<1x1xf32>
    %554 = arith.subf %549, %543 : vector<1x1xf32>
    %555 = arith.mulf %553, %554 : vector<1x1xf32>
    %556 = arith.minimumf %534, %546 : vector<1x1xf32>
    %557 = arith.maximumf %528, %540 : vector<1x1xf32>
    %558 = arith.subf %556, %557 : vector<1x1xf32>
    %cst_128 = arith.constant 0.000000e+00 : f32
    %559 = vector.broadcast %cst_128 : f32 to vector<1x1xf32>
    %560 = arith.maximumf %558, %559 : vector<1x1xf32>
    %561 = arith.minimumf %537, %549 : vector<1x1xf32>
    %562 = arith.maximumf %531, %543 : vector<1x1xf32>
    %563 = arith.subf %561, %562 : vector<1x1xf32>
    %cst_129 = arith.constant 0.000000e+00 : f32
    %564 = vector.broadcast %cst_129 : f32 to vector<1x1xf32>
    %565 = arith.maximumf %563, %564 : vector<1x1xf32>
    %566 = arith.mulf %560, %565 : vector<1x1xf32>
    %567 = arith.addf %552, %555 : vector<1x1xf32>
    %568 = arith.subf %567, %566 : vector<1x1xf32>
    %cst_130 = arith.constant 1.000000e-07 : f32
    %569 = vector.broadcast %cst_130 : f32 to vector<1x1xf32>
    %570 = arith.addf %568, %569 : vector<1x1xf32>
    %571 = arith.divf %566, %570 : vector<1x1xf32>
    %572 = arith.maximumf %534, %546 : vector<1x1xf32>
    %573 = arith.minimumf %528, %540 : vector<1x1xf32>
    %574 = arith.subf %572, %573 : vector<1x1xf32>
    %cst_131 = arith.constant 0.000000e+00 : f32
    %575 = vector.broadcast %cst_131 : f32 to vector<1x1xf32>
    %576 = arith.maximumf %574, %575 : vector<1x1xf32>
    %577 = arith.maximumf %537, %549 : vector<1x1xf32>
    %578 = arith.minimumf %531, %543 : vector<1x1xf32>
    %579 = arith.subf %577, %578 : vector<1x1xf32>
    %cst_132 = arith.constant 0.000000e+00 : f32
    %580 = vector.broadcast %cst_132 : f32 to vector<1x1xf32>
    %581 = arith.maximumf %579, %580 : vector<1x1xf32>
    %582 = arith.mulf %576, %581 : vector<1x1xf32>
    %583 = arith.subf %582, %568 : vector<1x1xf32>
    %cst_133 = arith.constant 1.000000e-07 : f32
    %584 = vector.broadcast %cst_133 : f32 to vector<1x1xf32>
    %585 = arith.addf %582, %584 : vector<1x1xf32>
    %586 = arith.divf %583, %585 : vector<1x1xf32>
    %587 = arith.subf %571, %586 : vector<1x1xf32>
    %cst_134 = arith.constant 1.000000e+00 : f32
    %588 = vector.broadcast %cst_134 : f32 to vector<1x1xf32>
    %589 = arith.subf %588, %587 : vector<1x1xf32>
    %590 = arith.addf %462, %589 : vector<1x1xf32>
    %c3_135 = arith.constant 3 : index
    %c0_136 = arith.constant 0 : index
    %c0_137 = arith.constant 0 : index
    %591 = vector.load %arg6[%c3_135, %c0_136, %c0_137] : memref<4x8x1680xf32, #tpu.memory_space<vmem>>, vector<1x8x1680xf32>
    %592 = vector.shape_cast %591 : vector<1x8x1680xf32> to vector<8x1680xf32>
    %593 = vector.broadcast %192 : vector<1x1680xf32> to vector<8x1680xf32>
    %594 = arith.mulf %592, %593 : vector<8x1680xf32>
    %cst_138 = arith.constant dense<0.000000e+00> : vector<8xf32>
    %595 = vector.multi_reduction <add>, %594, %cst_138 [1] : vector<8x1680xf32> to vector<8xf32>
    %596 = vector.shape_cast %595 : vector<8xf32> to vector<8x1xf32>
    %c4_i32_139 = arith.constant 4 : i32
    %597 = arith.muli %arg0, %c4_i32_139 : i32
    %c3_i32 = arith.constant 3 : i32
    %598 = arith.addi %597, %c3_i32 : i32
    %599 = arith.index_cast %598 : i32 to index
    %600 = memref.load %arg1[%599] : memref<8xi32, #tpu.memory_space<smem>>
    %601 = vector.broadcast %600 : i32 to vector<1x6xi32>
    %602 = arith.cmpi eq, %0, %601 : vector<1x6xi32>
    %603 = arith.extui %602 : vector<1x6xi1> to vector<1x6xi32>
    %604 = arith.sitofp %603 : vector<1x6xi32> to vector<1x6xf32>
    %605 = vector.broadcast %596 : vector<8x1xf32> to vector<8x6xf32>
    %606 = vector.broadcast %604 : vector<1x6xf32> to vector<8x6xf32>
    %607 = arith.mulf %605, %606 : vector<8x6xf32>
    %608 = arith.addf %480, %607 : vector<8x6xf32>
    %609 = arith.addf %481, %596 : vector<8x1xf32>
    %610 = vector.broadcast %596 : vector<8x1xf32> to vector<8x6xf32>
    %611 = arith.mulf %610, %4 : vector<8x6xf32>
    %cst_140 = arith.constant dense<0.000000e+00> : vector<6xf32>
    %612 = vector.multi_reduction <add>, %611, %cst_140 [0] : vector<8x6xf32> to vector<6xf32>
    %613 = vector.shape_cast %612 : vector<6xf32> to vector<1x6xf32>
    %614 = vector.shape_cast %613 : vector<1x6xf32> to vector<1x1x6xf32>
    %cst_141 = arith.constant dense<0xFF800000> : vector<1xf32>
    %615 = vector.multi_reduction <maximumf>, %614, %cst_141 [1, 2] : vector<1x1x6xf32> to vector<1xf32>
    %616 = vector.shape_cast %615 : vector<1xf32> to vector<1x1x1xf32>
    %617 = vector.extract %616[0, 0, 0] : f32 from vector<1x1x1xf32>
    %618 = vector.broadcast %617 : f32 to vector<1x6xf32>
    %619 = arith.cmpf oeq, %613, %618 : vector<1x6xf32>
    %c6_i32_142 = arith.constant 6 : i32
    %620 = vector.broadcast %c6_i32_142 : i32 to vector<1x6xi32>
    %621 = arith.select %619, %0, %620 : vector<1x6xi1>, vector<1x6xi32>
    %622 = vector.shape_cast %621 : vector<1x6xi32> to vector<1x1x6xi32>
    %cst_143 = arith.constant dense<2147483647> : vector<1xi32>
    %623 = vector.multi_reduction <minsi>, %622, %cst_143 [1, 2] : vector<1x1x6xi32> to vector<1xi32>
    %624 = vector.shape_cast %623 : vector<1xi32> to vector<1x1x1xi32>
    %625 = vector.extract %624[0, 0, 0] : i32 from vector<1x1x1xi32>
    %626 = arith.cmpi eq, %625, %600 : i32
    %cst_144 = arith.constant 1.000000e+00 : f32
    %cst_145 = arith.constant 0.000000e+00 : f32
    %627 = arith.select %626, %cst_144, %cst_145 : f32
    %628 = vector.broadcast %627 : f32 to vector<1x1xf32>
    %629 = arith.addf %501, %628 : vector<1x1xf32>
    %630 = vector.broadcast %596 : vector<8x1xf32> to vector<8x4xf32>
    %631 = arith.mulf %630, %6 : vector<8x4xf32>
    %cst_146 = arith.constant dense<0.000000e+00> : vector<4xf32>
    %632 = vector.multi_reduction <add>, %631, %cst_146 [0] : vector<8x4xf32> to vector<4xf32>
    %633 = vector.shape_cast %632 : vector<4xf32> to vector<1x4xf32>
    %634 = vector.extract_strided_slice %633 {offsets = [0, 0], sizes = [1, 1], strides = [1, 1]} : vector<1x4xf32> to vector<1x1xf32>
    %635 = vector.extract_strided_slice %633 {offsets = [0, 1], sizes = [1, 1], strides = [1, 1]} : vector<1x4xf32> to vector<1x1xf32>
    %636 = vector.extract_strided_slice %633 {offsets = [0, 2], sizes = [1, 1], strides = [1, 1]} : vector<1x4xf32> to vector<1x1xf32>
    %637 = vector.extract_strided_slice %633 {offsets = [0, 3], sizes = [1, 1], strides = [1, 1]} : vector<1x4xf32> to vector<1x1xf32>
    %638 = vector.extract_strided_slice %8 {offsets = [0, 3], sizes = [1, 1], strides = [1, 1]} : vector<4x4xf32> to vector<1x1xf32>
    %639 = vector.extract_strided_slice %8 {offsets = [1, 3], sizes = [1, 1], strides = [1, 1]} : vector<4x4xf32> to vector<1x1xf32>
    %640 = vector.extract_strided_slice %8 {offsets = [2, 3], sizes = [1, 1], strides = [1, 1]} : vector<4x4xf32> to vector<1x1xf32>
    %641 = vector.extract_strided_slice %8 {offsets = [3, 3], sizes = [1, 1], strides = [1, 1]} : vector<4x4xf32> to vector<1x1xf32>
    %642 = arith.subf %634, %638 : vector<1x1xf32>
    %643 = math.absf %642 : vector<1x1xf32>
    %644 = arith.subf %635, %639 : vector<1x1xf32>
    %645 = math.absf %644 : vector<1x1xf32>
    %646 = arith.addf %643, %645 : vector<1x1xf32>
    %647 = arith.subf %636, %640 : vector<1x1xf32>
    %648 = math.absf %647 : vector<1x1xf32>
    %649 = arith.addf %646, %648 : vector<1x1xf32>
    %650 = arith.subf %637, %641 : vector<1x1xf32>
    %651 = math.absf %650 : vector<1x1xf32>
    %652 = arith.addf %649, %651 : vector<1x1xf32>
    %653 = arith.addf %525, %652 : vector<1x1xf32>
    %cst_147 = arith.constant 5.000000e-01 : f32
    %654 = vector.broadcast %cst_147 : f32 to vector<1x1xf32>
    %655 = arith.mulf %654, %636 : vector<1x1xf32>
    %656 = arith.subf %634, %655 : vector<1x1xf32>
    %cst_148 = arith.constant 5.000000e-01 : f32
    %657 = vector.broadcast %cst_148 : f32 to vector<1x1xf32>
    %658 = arith.mulf %657, %637 : vector<1x1xf32>
    %659 = arith.subf %635, %658 : vector<1x1xf32>
    %cst_149 = arith.constant 5.000000e-01 : f32
    %660 = vector.broadcast %cst_149 : f32 to vector<1x1xf32>
    %661 = arith.mulf %660, %636 : vector<1x1xf32>
    %662 = arith.addf %634, %661 : vector<1x1xf32>
    %cst_150 = arith.constant 5.000000e-01 : f32
    %663 = vector.broadcast %cst_150 : f32 to vector<1x1xf32>
    %664 = arith.mulf %663, %637 : vector<1x1xf32>
    %665 = arith.addf %635, %664 : vector<1x1xf32>
    %cst_151 = arith.constant 5.000000e-01 : f32
    %666 = vector.broadcast %cst_151 : f32 to vector<1x1xf32>
    %667 = arith.mulf %666, %640 : vector<1x1xf32>
    %668 = arith.subf %638, %667 : vector<1x1xf32>
    %cst_152 = arith.constant 5.000000e-01 : f32
    %669 = vector.broadcast %cst_152 : f32 to vector<1x1xf32>
    %670 = arith.mulf %669, %641 : vector<1x1xf32>
    %671 = arith.subf %639, %670 : vector<1x1xf32>
    %cst_153 = arith.constant 5.000000e-01 : f32
    %672 = vector.broadcast %cst_153 : f32 to vector<1x1xf32>
    %673 = arith.mulf %672, %640 : vector<1x1xf32>
    %674 = arith.addf %638, %673 : vector<1x1xf32>
    %cst_154 = arith.constant 5.000000e-01 : f32
    %675 = vector.broadcast %cst_154 : f32 to vector<1x1xf32>
    %676 = arith.mulf %675, %641 : vector<1x1xf32>
    %677 = arith.addf %639, %676 : vector<1x1xf32>
    %678 = arith.subf %662, %656 : vector<1x1xf32>
    %679 = arith.subf %665, %659 : vector<1x1xf32>
    %680 = arith.mulf %678, %679 : vector<1x1xf32>
    %681 = arith.subf %674, %668 : vector<1x1xf32>
    %682 = arith.subf %677, %671 : vector<1x1xf32>
    %683 = arith.mulf %681, %682 : vector<1x1xf32>
    %684 = arith.minimumf %662, %674 : vector<1x1xf32>
    %685 = arith.maximumf %656, %668 : vector<1x1xf32>
    %686 = arith.subf %684, %685 : vector<1x1xf32>
    %cst_155 = arith.constant 0.000000e+00 : f32
    %687 = vector.broadcast %cst_155 : f32 to vector<1x1xf32>
    %688 = arith.maximumf %686, %687 : vector<1x1xf32>
    %689 = arith.minimumf %665, %677 : vector<1x1xf32>
    %690 = arith.maximumf %659, %671 : vector<1x1xf32>
    %691 = arith.subf %689, %690 : vector<1x1xf32>
    %cst_156 = arith.constant 0.000000e+00 : f32
    %692 = vector.broadcast %cst_156 : f32 to vector<1x1xf32>
    %693 = arith.maximumf %691, %692 : vector<1x1xf32>
    %694 = arith.mulf %688, %693 : vector<1x1xf32>
    %695 = arith.addf %680, %683 : vector<1x1xf32>
    %696 = arith.subf %695, %694 : vector<1x1xf32>
    %cst_157 = arith.constant 1.000000e-07 : f32
    %697 = vector.broadcast %cst_157 : f32 to vector<1x1xf32>
    %698 = arith.addf %696, %697 : vector<1x1xf32>
    %699 = arith.divf %694, %698 : vector<1x1xf32>
    %700 = arith.maximumf %662, %674 : vector<1x1xf32>
    %701 = arith.minimumf %656, %668 : vector<1x1xf32>
    %702 = arith.subf %700, %701 : vector<1x1xf32>
    %cst_158 = arith.constant 0.000000e+00 : f32
    %703 = vector.broadcast %cst_158 : f32 to vector<1x1xf32>
    %704 = arith.maximumf %702, %703 : vector<1x1xf32>
    %705 = arith.maximumf %665, %677 : vector<1x1xf32>
    %706 = arith.minimumf %659, %671 : vector<1x1xf32>
    %707 = arith.subf %705, %706 : vector<1x1xf32>
    %cst_159 = arith.constant 0.000000e+00 : f32
    %708 = vector.broadcast %cst_159 : f32 to vector<1x1xf32>
    %709 = arith.maximumf %707, %708 : vector<1x1xf32>
    %710 = arith.mulf %704, %709 : vector<1x1xf32>
    %711 = arith.subf %710, %696 : vector<1x1xf32>
    %cst_160 = arith.constant 1.000000e-07 : f32
    %712 = vector.broadcast %cst_160 : f32 to vector<1x1xf32>
    %713 = arith.addf %710, %712 : vector<1x1xf32>
    %714 = arith.divf %711, %713 : vector<1x1xf32>
    %715 = arith.subf %699, %714 : vector<1x1xf32>
    %cst_161 = arith.constant 1.000000e+00 : f32
    %716 = vector.broadcast %cst_161 : f32 to vector<1x1xf32>
    %717 = arith.subf %716, %715 : vector<1x1xf32>
    %718 = arith.addf %590, %717 : vector<1x1xf32>
    %cst_162 = arith.constant 1.000000e+00 : f32
    %719 = vector.broadcast %cst_162 : f32 to vector<8x1xf32>
    %720 = arith.subf %719, %609 : vector<8x1xf32>
    %721 = vector.broadcast %720 : vector<8x1xf32> to vector<8x6xf32>
    %722 = vector.broadcast %201 : vector<1x6xf32> to vector<8x6xf32>
    %723 = arith.mulf %721, %722 : vector<8x6xf32>
    %724 = arith.addf %608, %723 : vector<8x6xf32>
    %725 = vector.broadcast %197 : vector<1x6xf32> to vector<8x6xf32>
    %726 = arith.mulf %724, %725 : vector<8x6xf32>
    %727 = arith.mulf %726, %21 : vector<8x6xf32>
    %728 = vector.shape_cast %727 : vector<8x6xf32> to vector<1x8x6xf32>
    %cst_163 = arith.constant dense<0.000000e+00> : vector<1xf32>
    %729 = vector.multi_reduction <add>, %728, %cst_163 [1, 2] : vector<1x8x6xf32> to vector<1xf32>
    %730 = vector.shape_cast %729 : vector<1xf32> to vector<1x1x1xf32>
    %731 = vector.extract %730[0, 0, 0] : f32 from vector<1x1x1xf32>
    %732 = vector.broadcast %197 : vector<1x6xf32> to vector<8x6xf32>
    %733 = arith.mulf %724, %732 : vector<8x6xf32>
    %734 = vector.shape_cast %733 : vector<8x6xf32> to vector<1x8x6xf32>
    %cst_164 = arith.constant dense<0.000000e+00> : vector<1xf32>
    %735 = vector.multi_reduction <add>, %734, %cst_164 [1, 2] : vector<1x8x6xf32> to vector<1xf32>
    %736 = vector.shape_cast %735 : vector<1xf32> to vector<1x1x1xf32>
    %737 = vector.extract %736[0, 0, 0] : f32 from vector<1x1x1xf32>
    %738 = vector.extract_strided_slice %4 {offsets = [0, 5], sizes = [8, 1], strides = [1, 1]} : vector<8x6xf32> to vector<8x1xf32>
    %739 = vector.extract_strided_slice %4 {offsets = [0, 0], sizes = [8, 5], strides = [1, 1]} : vector<8x6xf32> to vector<8x5xf32>
    %cst_165 = arith.constant dense<0xFF800000> : vector<8xf32>
    %740 = vector.multi_reduction <maximumf>, %739, %cst_165 [1] : vector<8x5xf32> to vector<8xf32>
    %741 = vector.shape_cast %740 : vector<8xf32> to vector<8x1xf32>
    %742 = arith.cmpf oge, %741, %738 : vector<8x1xf32>
    %743 = arith.extui %742 : vector<8x1xi1> to vector<8x1xi32>
    %744 = arith.sitofp %743 : vector<8x1xi32> to vector<8x1xf32>
    %745 = vector.shape_cast %744 : vector<8x1xf32> to vector<1x8x1xf32>
    %cst_166 = arith.constant dense<0.000000e+00> : vector<1xf32>
    %746 = vector.multi_reduction <add>, %745, %cst_166 [1, 2] : vector<1x8x1xf32> to vector<1xf32>
    %747 = vector.shape_cast %746 : vector<1xf32> to vector<1x1x1xf32>
    %748 = vector.extract %747[0, 0, 0] : f32 from vector<1x1x1xf32>
    %cst_167 = arith.constant 4.000000e+00 : f32
    %749 = arith.subf %748, %cst_167 : f32
    %750 = math.absf %749 : f32
    %cst_168 = arith.constant 0.000000e+00 : f32
    %751 = vector.broadcast %cst_168 : f32 to vector<1x128xf32>
    %c0_i32_169 = arith.constant 0 : i32
    %752 = vector.broadcast %c0_i32_169 : i32 to vector<1x128xi32>
    %753 = arith.cmpi eq, %2, %752 : vector<1x128xi32>
    %754 = arith.extui %753 : vector<1x128xi1> to vector<1x128xi32>
    %755 = arith.sitofp %754 : vector<1x128xi32> to vector<1x128xf32>
    %756 = vector.broadcast %731 : f32 to vector<1x128xf32>
    %757 = arith.mulf %755, %756 : vector<1x128xf32>
    %758 = arith.addf %751, %757 : vector<1x128xf32>
    %c1_i32_170 = arith.constant 1 : i32
    %759 = vector.broadcast %c1_i32_170 : i32 to vector<1x128xi32>
    %760 = arith.cmpi eq, %2, %759 : vector<1x128xi32>
    %761 = arith.extui %760 : vector<1x128xi1> to vector<1x128xi32>
    %762 = arith.sitofp %761 : vector<1x128xi32> to vector<1x128xf32>
    %763 = vector.broadcast %737 : f32 to vector<1x128xf32>
    %764 = arith.mulf %762, %763 : vector<1x128xf32>
    %765 = arith.addf %758, %764 : vector<1x128xf32>
    %c2_i32_171 = arith.constant 2 : i32
    %766 = vector.broadcast %c2_i32_171 : i32 to vector<1x128xi32>
    %767 = arith.cmpi eq, %2, %766 : vector<1x128xi32>
    %768 = arith.extui %767 : vector<1x128xi1> to vector<1x128xi32>
    %769 = arith.sitofp %768 : vector<1x128xi32> to vector<1x128xf32>
    %770 = vector.broadcast %629 : vector<1x1xf32> to vector<1x128xf32>
    %771 = arith.mulf %769, %770 : vector<1x128xf32>
    %772 = arith.addf %765, %771 : vector<1x128xf32>
    %c3_i32_172 = arith.constant 3 : i32
    %773 = vector.broadcast %c3_i32_172 : i32 to vector<1x128xi32>
    %774 = arith.cmpi eq, %2, %773 : vector<1x128xi32>
    %775 = arith.extui %774 : vector<1x128xi1> to vector<1x128xi32>
    %776 = arith.sitofp %775 : vector<1x128xi32> to vector<1x128xf32>
    %777 = vector.broadcast %750 : f32 to vector<1x128xf32>
    %778 = arith.mulf %776, %777 : vector<1x128xf32>
    %779 = arith.addf %772, %778 : vector<1x128xf32>
    %c4_i32_173 = arith.constant 4 : i32
    %780 = vector.broadcast %c4_i32_173 : i32 to vector<1x128xi32>
    %781 = arith.cmpi eq, %2, %780 : vector<1x128xi32>
    %782 = arith.extui %781 : vector<1x128xi1> to vector<1x128xi32>
    %783 = arith.sitofp %782 : vector<1x128xi32> to vector<1x128xf32>
    %784 = vector.broadcast %653 : vector<1x1xf32> to vector<1x128xf32>
    %785 = arith.mulf %783, %784 : vector<1x128xf32>
    %786 = arith.addf %779, %785 : vector<1x128xf32>
    %c5_i32_174 = arith.constant 5 : i32
    %787 = vector.broadcast %c5_i32_174 : i32 to vector<1x128xi32>
    %788 = arith.cmpi eq, %2, %787 : vector<1x128xi32>
    %789 = arith.extui %788 : vector<1x128xi1> to vector<1x128xi32>
    %790 = arith.sitofp %789 : vector<1x128xi32> to vector<1x128xf32>
    %791 = vector.broadcast %718 : vector<1x1xf32> to vector<1x128xf32>
    %792 = arith.mulf %790, %791 : vector<1x128xf32>
    %793 = arith.addf %786, %792 : vector<1x128xf32>
    %c0_175 = arith.constant 0 : index
    %c0_176 = arith.constant 0 : index
    %c0_177 = arith.constant 0 : index
    %794 = vector.load %arg7[%c0_175, %c0_176, %c0_177] : memref<1x1x128xf32, #tpu.memory_space<vmem>>, vector<1x1x128xf32>
    %795 = vector.shape_cast %794 : vector<1x1x128xf32> to vector<1x128xf32>
    %796 = vector.shape_cast %793 : vector<1x128xf32> to vector<1x1x128xf32>
    tpu.vector_store %arg7[%c0_175, %c0_176, %c0_177], %796 {strides = array<i32>} : memref<1x1x128xf32, #tpu.memory_space<vmem>>, vector<1x1x128xf32>,
    return
  }
  func.func @transform_0(%arg0: i32, %arg1: memref<8xi32, #tpu.memory_space<smem>>) -> (i32, i32, i32) {
    %c0_i32 = arith.constant 0 : i32
    %c0_i32_0 = arith.constant 0 : i32
    %c0_i32_1 = arith.constant 0 : i32
    return %arg0, %c0_i32, %c0_i32_0 : i32, i32, i32
  }
  func.func @transform_1(%arg0: i32, %arg1: memref<8xi32, #tpu.memory_space<smem>>) -> (i32, i32, i32) {
    %c0_i32 = arith.constant 0 : i32
    %c0_i32_0 = arith.constant 0 : i32
    %c0_i32_1 = arith.constant 0 : i32
    return %arg0, %c0_i32, %c0_i32_0 : i32, i32, i32
  }
  func.func @transform_2(%arg0: i32, %arg1: memref<8xi32, #tpu.memory_space<smem>>) -> (i32, i32, i32) {
    %c0_i32 = arith.constant 0 : i32
    %c0_i32_0 = arith.constant 0 : i32
    %c0_i32_1 = arith.constant 0 : i32
    return %arg0, %c0_i32, %c0_i32_0 : i32, i32, i32
  }
  func.func @transform_3(%arg0: i32, %arg1: memref<8xi32, #tpu.memory_space<smem>>) -> (i32, i32, i32) {
    %c0_i32 = arith.constant 0 : i32
    %c0_i32_0 = arith.constant 0 : i32
    %c0_i32_1 = arith.constant 0 : i32
    return %arg0, %c0_i32, %c0_i32_0 : i32, i32, i32
  }
  func.func @transform_4(%arg0: i32, %arg1: memref<8xi32, #tpu.memory_space<smem>>) -> (i32, i32, i32) {
    %c0_i32 = arith.constant 0 : i32
    %c0_i32_0 = arith.constant 0 : i32
    %c0_i32_1 = arith.constant 0 : i32
    %c0_i32_2 = arith.constant 0 : i32
    return %c0_i32, %c0_i32_0, %c0_i32_1 : i32, i32, i32
  }
  func.func @transform_5(%arg0: i32, %arg1: memref<8xi32, #tpu.memory_space<smem>>) -> (i32, i32, i32) {
    %c0_i32 = arith.constant 0 : i32
    %c0_i32_0 = arith.constant 0 : i32
    %c0_i32_1 = arith.constant 0 : i32
    return %arg0, %c0_i32, %c0_i32_0 : i32, i32, i32
  }
}

</mosaic_0001>

<bundles_post_ra>
// kernel: tpu_custom_call.1
= control target key start
LH: loop header
LB: loop body
LE: loop exit
PB: predicated region body
PF: predicated region fallthrough
CT: control target
= control target key end

     0   :  { %s3665_s0 = inlined_call_operand.vmem [shape: s32[8], index: 0, kind: input, shape index: {}]   ;;  %s3666_s1 = inlined_call_operand.vmem [shape: f32[2,8,6], index: 1, kind: input, shape index: {}]   ;;  %s3667_s2 = inlined_call_operand.vmem [shape: f32[2,8,4], index: 2, kind: input, shape index: {}]   ;;  %s3668_s3 = inlined_call_operand.vmem [shape: f32[2,4,4], index: 3, kind: input, shape index: {}]   ;;  %s3669_s4 = inlined_call_operand.vmem [shape: f32[2,6,4], index: 4, kind: input, shape index: {}]   ;;  %s3670_s5 = inlined_call_operand.hbm [shape: f32[4,8,1680], index: 5, kind: input, shape index: {}]   ;;  %s3671_s6 = inlined_call_operand.hbm [shape: f32[2,1,128], index: 6, kind: output, shape index: {}]  }
   0x1   :  { %s11_s23 = sshll.u32 %s3665_s0, 4  ;;  %s12_s23 = int_to_ptr.vmem [resolvable:$true] %s11_s23 }
   0x2   :  { %s2355_s24 = scalar_lea.vmem %s12_s23, 16  ;;  %p2360_p1 = scmp.lt.s32.totalorder %s12_s23, %s12_s23 }
   0x3   :  { %p2356_p0 = scmp.ne.s32.totalorder %s12_s23, %s2355_s24  ;;  %p2361_p2 = scmp.lt.s32.totalorder %s2355_s24, %s2355_s24 }
   0x5   :  { %p2362_p3 = por %p2361_p2, %p2360_p1 }
   0x7   :  { %p2363_p4 = pnand %p2362_p3, %p2356_p0 }
   0x9   :  { %2366 = shalt.err (!%p2363_p4)  }
   0xa   :  { %s2461_s25 = smov [#allocation3]  }
   0xb   :  { %14 = dma.vmem_to_smem %s12_s23, 16, %s2461_s25, [#allocation2] }
   0xc   :  { %2435 = dma.done.wait [#allocation2], 16 }
   0xd   :  { %2436 = vsyncadd [#allocation2], 4294967280 }
   0xe   :  { %16 = sfence }
   0xf   :  { %17 = vsyncpa [#allocation5], 0 }
  0x10   :  { %18 = vsyncpa [#allocation6], 0 }
  0x11   :  { %20 = vsyncpa [#allocation6 + $0x1], 0  ;;  %s2518_s26 = smov 0   ;;  %s2520_s27 = smov 0  }
  0x12   :  { %s2522_s0 = smov 0   ;;  %s2524_s28 = smov 0  }
  0x13 LB: > { %s2539_s29 = sadd.s32 4294967295, %s2459_s28   ;;  %s2143_s30 = sadd.s32 4294967294, %s2459_s28   ;;  %s2459_s28 = sphi %s2524_s28, %s3768_s28   ;;  %s2455_s0 = sphi %s2522_s0, %s3767_s0   ;;  %s2451_s27 = sphi %s2520_s27, %s3766_s27   ;;  %s2447_s26 = sphi %s2518_s26, %s3765_s26  }
  0x14   : > { %s2543_s7 = sadd.s32 1, %s2459_s28   ;;  %s158_s8 = sadd.s32 1, %s2455_s0 }
  0x15   : > { %s155_s9 = ssub.s32 %s2459_s28, %s2543_s7  ;;  %p168_p5 = scmp.ne.s32.totalorder %s2455_s0, %s2451_s27 }
  0x16   : > { %p156_p6 = scmp.eq.s32.totalorder %s155_s9, 0  ;;  %p169_p7 = scmp.eq.s32.totalorder %s2539_s29, 1 }
  0x17   : > { %p174_p8 = scmp.ne.s32.totalorder %s2451_s27, %s2447_s26  ;;  %p175_p9 = scmp.eq.s32.totalorder %s2143_s30, 1 }
  0x18   : > { %s2554_s10 = scalar_select %p156_p6, %s2455_s0, %s158_s8  }
  0x19   : > { %p2556_p10 = por %p169_p7, %p168_p5  ;;  %p2560_p11 = por %p175_p9, %p174_p8 }
  0x1a   : > { %p2144_p12 = scmp.ge.s32.totalorder %s2459_s28, 1  ;;  %p182_p13 = scmp.lt.s32.totalorder %s2459_s28, 3 }
  0x1b   : > { %s3706_s12 = scalar_select %p2560_p11, 1, 0 }
  0x1c   : > { %p2232_p0 = scmp.eq.s32.totalorder %s2539_s29, 0  ;;  %p2567_p1 = pnand %p2144_p12, %p182_p13 }
  0x1d   : > { %s2462_s14 = smov [#allocation4]  }
  0x1e   : > { %s194_s15 = sshll.u32 %s2462_s14, 4  ;;  %p2224_p2 = pneg %p2567_p1  ;;  %s195_s15 = int_to_ptr.vmem [resolvable:$true] %s194_s15 }
  0x1f   : > { %s2378_s16 = scalar_lea.vmem %s195_s15, 7168  ;;  %p2386_p8 = scmp.lt.s32.totalorder %s195_s15, %s195_s15 }
  0x20   : > { %p2225_p3 = pnand %p2232_p0, %p2224_p2  ;;  %p2379_p5 = scmp.ne.s32.totalorder %s195_s15, %s2378_s16 }
  0x21   : > { %p2387_p9 = scmp.lt.s32.totalorder %s2378_s16, %s2378_s16 }
  0x22   : > { %p2369_p4 = pneg %p2225_p3 }
  0x23   : > { %p2388_p11 = por %p2387_p9, %p2386_p8 }
  0x24   : > { %p2381_p6 = pnand %p2379_p5, %p2369_p4 }
  0x26   : > { %p2382_p7 = pneg %p2381_p6 }
  0x28   : > { %p2389_p12 = pnand %p2388_p11, %p2382_p7 }
  0x2a   : > { %2392 = shalt.err (!%p2389_p12)
}
  0x2b   : > { %s2463_s17 = smov 1792   ;;  %s2464_s18 = smov 112  }
  0x2c   : > { %2227 = dma.hbm_to_vmem [thread:$0]  (!%p2225_p3), %s3670_s5, 7168, %s195_s15, [#allocation5], %s2463_s17, %s2463_s17, %s2464_s18  }
  0x2d   : > { %238 = sbr.rel (%p2567_p1) target bundleno = 3561 (0xde9), region = 40 }
  0x32   : > { %2438 = dma.done.wait (%p2232_p0), [#allocation5], 7168  }
  0x33   : > { %2440 = vsyncadd (%p2232_p0), [#allocation5], 4294960128  ;;  %p276_p13 = scmp.lt.s32.totalorder %s2539_s29, 1  ;;  %vm310_vm0 = vcmask 48128   ;;  %s2465_s13 = smov 126   ;;  %v2466_v4 = vmov 0   ;;  %v3674_v26 = vlaneseq }
  0x34   : > { %2286 = vset.pattern.permute.xlu1 %v2466_v4  ;;  %2285 = vset.pattern.permute.xlu0 %v2466_v4  ;;  %s2467_s14 = smov 127   ;;  %v2468_v9 = vmov 1   ;;  %v3672_v15 = vmov 0.0   ;;  %vm330_vm1 = vcmask 1045504   ;;  %vm2470_vm2 = vmmov 0   ;;  %s2170_s8 = sshll.u32 %s2539_s29, 2 }
  0x35   : > { %s2586_s21 = scalar_select %p276_p13, %s2539_s29, 1  ;;  %2187 = vmatprep.subr.mxu0 %v3672_v15  ;;  %2189 = vmatprep.mubr.msk.f32.mxu0 %vm2470_vm2, %v3672_v15  ;;  %v2471_v17 = vmov 3   ;;  %v2472_v20 = vmov 2   ;;  %v411_v29 = vshrl.u32 %v3674_v26, 7  ;;  %vm660_vm3 = vcmask 130048  }
  0x36   : > { %s1424_s15 = sadd.s32 1, %s2170_s8  ;;  %s1603_s16 = sadd.s32 2, %s2170_s8 }
  0x37   : > { %s2589_s22 = sshll.u32 %s2586_s21, 3  ;;  %s2151_s18 = sshll.u32 %s2586_s21, 2  ;;  %v412_v33 = vsub.s32 0, %v411_v29  ;;  %v422_v34 = vsub.s32 1, %v411_v29 }
  0x38   : > { %s2595_s25 = scalar_lea.vmem %s3666_s1, %s2589_s22  ;;  %s2601_s9 = scalar_lea.vmem %s3667_s2, %s2589_s22 }
  0x39   : > { %v307_v0 = vld [vmem:[%s2595_s25] sm:$0xff]  ;;  %s291_s17 = scalar_lea.vmem %s3669_s4, %s2589_s22  ;;  %s2633_s22 = scalar_lea.vmem %s3668_s3, %s2151_s18 }
  0x3a   : > { %v308_v1 = vld [vmem:[%s2601_s9] sm:$0xff]  ;;  %v311_v2 = vsel %vm310_vm0, %v307_v0, -inf  ;;  %s3251_s18 = sld [smem:[#allocation3 + %s2170_s8]]  ;;  %s1785_s19 = sadd.s32 3, %s2170_s8 }
  0x3b   : > { %v449_v3 = vmul.f32 0.5, %v308_v1  ;;  %312 = vmax.xlane.f32.xlu0 %v311_v2  ;;  %v326_v16 = vld [vmem:[%s291_s17] sm:$0x3f]  ;;  %s3249_s17 = sld [smem:[#allocation3 + %s1424_s15]]  ;;  %s2475_s15 = smov 2  }
  0x3c   : > { %2188 = vmatpush3.msk.msra.mxu0 %vm330_vm1, %v326_v16  ;;  %v309_v24 = vld [vmem:[%s2633_s22] sm:$0xf]  ;;  %s3253_s20 = sld [smem:[#allocation3 + %s1603_s16]]  ;;  %s2478_s16 = smov 123  }
  0x3d   : > { %451 = vrot.lane.b32.xlu1 %v449_v3, %s2465_s13  ;;  %v456_v25 = vmul.f32 0.5, %v309_v24 }
  0x3f   : > { %v458_v28 = vrot.slane %v456_v25, 2 }
  0x41   : > { %v2637_v30 = vsub.f32 %v309_v24, %v458_v28  ;;  %v2639_v31 = vadd.f32 %v458_v28, %v309_v24 }
  0x43   : > { %3710 = vst [vmem:[#allocation13_spill] sm:$0xff] %v2637_v30  ;;  %3711 = vst [vmem:[#allocation14_spill] sm:$0xff] %v2639_v31  ;;  %v468_v35 = vsub.f32 %v2639_v31, %v2637_v30  ;;  %v491_v36 = vrot.slane %v2637_v30, %v412_v33  ;;  %v502_v37 = vrot.slane %v2639_v31, %v422_v34 }
  0x44   : > { %v511_v38 = vrot.slane %v2637_v30, %v422_v34  ;;  %v481_v39 = vrot.slane %v2639_v31, %v412_v33 }
  0x45   : > { %v470_v42 = vrot.slane %v468_v35, 1 }
  0x47   : > { %v2647_v49 = vmul.f32 %v470_v42, %v468_v35 }
  0x49   : > { %3712 = vst [vmem:[#allocation15_spill] sm:$0xff] %v2647_v49  ;;  %v524_v56 = vrot.slane %v2647_v49, %v412_v33 }
  0xaf   : > { %v452_v5 = vpop.permute.xlu1 %451 }
  0xb0   : > { %v454_v6 = vsub.f32 %v308_v1, %v452_v5  ;;  %v455_v7 = vadd.f32 %v452_v5, %v308_v1 }
  0xb2   : > { %v462_v8 = vsub.f32 %v455_v7, %v454_v6 }
  0xb4   : > { %464 = vrot.lane.b32.xlu1 %v462_v8, %s2467_s14 }
  0xb8   : > { %485 = vperm.xlu1 %2286, %v454_v6  }
  0xbc   : > { %2287 = vset.pattern.permute.xlu1 %v2468_v9 }
  0xbd   : > { %496 = vperm.xlu1 %2287, %v455_v7  }
  0xc1   : > { %505 = vperm.xlu1 %2287, %v454_v6  }
  0xc4   : > { %v2611_v10 = vpop.xlane.xlu0 %312 }
  0xc5   : > { %3708 = vst [vmem:[#allocation11_spill] sm:$0xff] %v2611_v10  ;;  %2288 = vset.pattern.permute.xlu1 %v2466_v4  ;;  %v314_v11 = vsub.f32 %v307_v0, %v2611_v10 }
  0xc7   : > { %v315_v12 = vmul.f32 1.442695, %v314_v11  ;;  %v433_v11 = vsub.s32 2, %v411_v29 }
  0xc9   : > { %2298 = vpow2.f32 %v315_v12  ;;  %v434_v16 = vrot.slane %v309_v24, %v433_v11 }
  0xd6   : > { %v2299_v13 = vpop.eup %2298 }
  0xd7   : > { %v317_v14 = vsel %vm310_vm0, %v2299_v13, 0.0 }
  0xd8   : > { %318 = vadd.xlane.f32.xlu0 %v317_v14 }
  0xee   : > { %475 = vperm.xlu0 %2285, %v455_v7   ;;  %v413_v7 = vrot.slane %v309_v24, %v412_v33 }
  0xf2   : > { %2295 = vset.pattern.permute.xlu0 %v2471_v17 }
 0x126   : > { %v465_v18 = vpop.permute.xlu1 %464 }
 0x127   : > { %v467_v19 = vmul.f32 %v465_v18, %v462_v8  ;;  %v423_v8 = vrot.slane %v309_v24, %v422_v34 }
 0x129   : > { %518 = vperm.xlu1 %2288, %v467_v19  }
 0x12d   : > { %407 = vperm.xlu1 %2288, %v308_v1  }
 0x131   : > { %2289 = vset.pattern.permute.xlu1 %v2468_v9 }
 0x132   : > { %417 = vperm.xlu1 %2289, %v308_v1  }
 0x133   : > { %v486_v27 = vpop.permute.xlu1 %485 }
 0x134   : > { %v492_v43 = vmax.f32 %v486_v27, %v491_v36  ;;  %v531_v50 = vmin.f32 %v486_v27, %v491_v36 }
 0x136   : > { %2290 = vset.pattern.permute.xlu1 %v2472_v20 }
 0x137   : > { %428 = vperm.xlu1 %2290, %v308_v1  }
 0x138   : > { %v497_v32 = vpop.permute.xlu1 %496 }
 0x139   : > { %v503_v44 = vmin.f32 %v497_v32, %v502_v37  ;;  %v534_v51 = vmax.f32 %v497_v32, %v502_v37 }
 0x13b   : > { %2291 = vset.pattern.permute.xlu1 %v2471_v17  ;;  %v444_v17 = vsub.s32 3, %v411_v29 }
 0x13c   : > { %439 = vperm.xlu1 %2291, %v308_v1   ;;  %v506_v40 = vpop.permute.xlu1 %505 }
 0x13d   : > { %v512_v45 = vmax.f32 %v506_v40, %v511_v38  ;;  %v535_v52 = vmin.f32 %v506_v40, %v511_v38 }
 0x13f   : > { %v513_v47 = vsub.f32 %v503_v44, %v512_v45  ;;  %v536_v58 = vsub.f32 %v534_v51, %v535_v52  ;;  %v551_v51 = vld [vmem:[#allocation4 + $0x10] sm:$0xff]  ;;  %v552_v52 = vld [vmem:[#allocation4 + $0x18] sm:$0xff] }
 0x140   : > { %2292 = vset.pattern.permute.xlu1 %v2466_v4 }
 0x141   : > { %v514_v54 = vmax.f32 %v513_v47, 0.0  ;;  %v537_v62 = vmax.f32 %v536_v58, 0.0  ;;  %v557_v58 = vld [vmem:[#allocation4 + $0x40] sm:$0xff] }
 0x161   : > { %v2625_v21 = vpop.xlane.xlu0 %318 }
 0x162   : > { %3709 = vst [vmem:[#allocation12_spill] sm:$0xff] %v2625_v21  ;;  %2300 = vrcp.f32 %v2625_v21 }
 0x169   : > { %v476_v41 = vpop.permute.xlu0 %475 }
 0x16a   : > { %v482_v46 = vmin.f32 %v476_v41, %v481_v39  ;;  %v530_v53 = vmax.f32 %v476_v41, %v481_v39 }
 0x16c   : > { %v493_v48 = vsub.f32 %v482_v46, %v492_v43  ;;  %v532_v59 = vsub.f32 %v530_v53, %v531_v50  ;;  %v550_v50 = vld [vmem:[#allocation4 + $0x8] sm:$0xff]  ;;  %v553_v53 = vld [vmem:[#allocation4 + $0x20] sm:$0xff] }
 0x16e   : > { %v494_v55 = vmax.f32 %v493_v48, 0.0  ;;  %v533_v63 = vmax.f32 %v532_v59, 0.0  ;;  %v549_v48 = vld [vmem:[#allocation4] sm:$0xff]  ;;  %v558_v59 = vld [vmem:[#allocation4 + $0x48] sm:$0xff] }
 0x16f   : > { %v2301_v22 = vpop.eup %2300 }
 0x170   : > { %v321_v23 = vmul.f32 %v2301_v22, %v2299_v13  ;;  %v515_v60 = vmul.f32 %v514_v54, %v494_v55  ;;  %v538_v2 = vmul.f32 %v537_v62, %v533_v63  ;;  %v554_v54 = vld [vmem:[#allocation4 + $0x28] sm:$0xff]  ;;  %v555_v55 = vld [vmem:[#allocation4 + $0x30] sm:$0xff] }
 0x172   : > { %2190 = vmatmul.mubr.msk.f32.vlgmr.msra.gmra.mxu0 %vm310_vm0, %v321_v23  ;;  %v540_v5 = vadd.f32 1e-07, %v538_v2  ;;  %v445_v23 = vrot.slane %v309_v24, %v444_v17 }
 0x1a4   : > { %v519_v57 = vpop.permute.xlu1 %518 }
 0x1a5   : > { %v525_v61 = vadd.f32 %v524_v56, %v519_v57  ;;  %v556_v56 = vld [vmem:[#allocation4 + $0x38] sm:$0xff] }
 0x1a7   : > { %v526_v0 = vsub.f32 %v525_v61, %v515_v60  ;;  %v561_v61 = vld [vmem:[#allocation4 + $0x60] sm:$0xff] }
 0x1a8   : > { %v408_v1 = vpop.permute.xlu1 %407 }
 0x1a9   : > { %v527_v3 = vadd.f32 1e-07, %v526_v0  ;;  %v414_v13 = vsub.f32 %v408_v1, %v413_v7  ;;  %v539_v28 = vsub.f32 %v538_v2, %v526_v0 }
 0x1ab   : > { %2302 = vrcp.f32 %v527_v3  ;;  %v415_v18 = vand.u32 2147483647, %v414_v13 }
 0x1ac   : > { %2304 = vrcp.f32 %v540_v5 }
 0x1ad   : > { %v418_v6 = vpop.permute.xlu1 %417 }
 0x1ae   : > { %v424_v14 = vsub.f32 %v418_v6, %v423_v8 }
 0x1b0   : > { %v425_v19 = vand.u32 2147483647, %v424_v14 }
 0x1b2   : > { %v429_v12 = vpop.permute.xlu1 %428  ;;  %v426_v32 = vadd.f32 %v425_v19, %v415_v18 }
 0x1b3   : > { %v435_v22 = vsub.f32 %v429_v12, %v434_v16 }
 0x1b5   : > { %v436_v35 = vand.u32 2147483647, %v435_v22 }
 0x1b7   : > { %v440_v25 = vpop.permute.xlu1 %439  ;;  %v437_v34 = vadd.f32 %v436_v35, %v426_v32 }
 0x1b8   : > { %v2303_v27 = vpop.eup %2302  ;;  %v446_v36 = vsub.f32 %v440_v25, %v445_v23 }
 0x1b9   : > { %v2305_v37 = vpop.eup %2304  ;;  %v529_v38 = vmul.f32 %v2303_v27, %v515_v60  ;;  %v560_v60 = vld [vmem:[#allocation4 + $0x58] sm:$0xff] }
 0x1ba   : > { %v542_v33 = vmul.f32 %v2305_v37, %v539_v28  ;;  %v447_v39 = vand.u32 2147483647, %v446_v36 }
 0x1bc   : > { %v543_v40 = vsub.f32 %v529_v38, %v542_v33  ;;  %v448_v41 = vadd.f32 %v447_v39, %v437_v34 }
 0x1be   : > { %v546_v42 = vsub.f32 0.0, %v543_v40  ;;  %v544_v29 = vmul.f32 5.0, %v448_v41 }
 0x1c0   : > { %v547_v24 = vmul.f32 2.0, %v546_v42  ;;  %v562_v42 = vld [vmem:[#allocation4 + $0x68] sm:$0xff] }
 0x232   : > { %v400_v43 = vpop.f32.mrf.mxu0 }
 0x233   : > { %v404_v44 = vsub.f32 0.0, %v400_v43 }
 0x234   : > { %v2191_v45 = vpop.f32.mrf.mxu0 }
 0x235   : > { %v545_v46 = vadd.f32 %v544_v29, %v404_v44 }
 0x237   : > { %v548_v47 = vadd.f32 %v547_v24, %v545_v46 }
 0x239   : > { %962 = vperm.xlu0 %2295, %v548_v47   ;;  %565 = vperm.xlu1 %2292, %v548_v47  }
 0x23d   : > { %2293 = vset.pattern.permute.xlu1 %v2468_v9  ;;  %2296 = vset.pattern.permute.xlu0 %v2466_v4  ;;  %v559_v9 = vld [vmem:[#allocation4 + $0x50] sm:$0xff] }
 0x23e   : > { %698 = vperm.xlu1 %2293, %v548_v47  }
 0x242   : > { %2294 = vset.pattern.permute.xlu1 %v2472_v20 }
 0x243   : > { %830 = vperm.xlu1 %2294, %v548_v47  }
 0x247   : > { %2297 = vset.pattern.permute.xlu1 %v2466_v4 }
 0x2b4   : > { %v566_v57 = vpop.permute.xlu1 %565 }
 0x2b5   : > { %v568_v62 = vmul.f32 %v566_v57, %v549_v48  ;;  %v569_v63 = vmul.f32 %v566_v57, %v550_v50  ;;  %v570_v20 = vmul.f32 %v566_v57, %v551_v51  ;;  %v571_v0 = vmul.f32 %v566_v57, %v552_v52 }
 0x2b6   : > { %v572_v1 = vmul.f32 %v566_v57, %v553_v53  ;;  %v573_v4 = vmul.f32 %v566_v57, %v554_v54  ;;  %v574_v2 = vmul.f32 %v566_v57, %v555_v55  ;;  %v575_v3 = vmul.f32 %v566_v57, %v556_v56 }
 0x2b7   : > { %v576_v5 = vmul.f32 %v566_v57, %v557_v58  ;;  %v577_v6 = vmul.f32 %v566_v57, %v558_v59  ;;  %v2654_v7 = vmul.f32 %v566_v57, %v559_v9  ;;  %v2656_v8 = vmul.f32 %v566_v57, %v560_v60 }
 0x2b8   : > { %v2658_v11 = vmul.f32 %v566_v57, %v561_v61  ;;  %v582_v12 = vrot.slane %v568_v62, 4  ;;  %v588_v13 = vrot.slane %v569_v63, 4  ;;  %v594_v14 = vrot.slane %v570_v20, 4 }
 0x2b9   : > { %v600_v16 = vrot.slane %v571_v0, 4  ;;  %v606_v17 = vrot.slane %v572_v1, 4  ;;  %v612_v18 = vrot.slane %v573_v4, 4  ;;  %v618_v23 = vrot.slane %v574_v2, 4 }
 0x2ba   : > { %v583_v19 = vadd.f32 %v582_v12, %v568_v62  ;;  %v589_v22 = vadd.f32 %v588_v13, %v569_v63  ;;  %v624_v25 = vrot.slane %v575_v3, 4  ;;  %v595_v27 = vadd.f32 %v594_v14, %v570_v20  ;;  %v2674_v13 = vpop.permute.xlu1 %698 }
 0x2bb   : > { %v601_v28 = vadd.f32 %v600_v16, %v571_v0  ;;  %v607_v32 = vadd.f32 %v606_v17, %v572_v1  ;;  %v613_v35 = vadd.f32 %v612_v18, %v573_v4  ;;  %v619_v38 = vadd.f32 %v618_v23, %v574_v2 }
 0x2bc   : > { %v584_v36 = vrot.slane %v583_v19, 2  ;;  %v590_v37 = vrot.slane %v589_v22, 2  ;;  %v625_v33 = vadd.f32 %v624_v25, %v575_v3  ;;  %v596_v34 = vrot.slane %v595_v27, 2 }
 0x2bd   : > { %v602_v39 = vrot.slane %v601_v28, 2  ;;  %v608_v40 = vrot.slane %v607_v32, 2  ;;  %v614_v41 = vrot.slane %v613_v35, 2  ;;  %v620_v44 = vrot.slane %v619_v38, 2 }
 0x2be   : > { %v585_v43 = vadd.f32 %v584_v36, %v583_v19  ;;  %v591_v29 = vadd.f32 %v590_v37, %v589_v22  ;;  %v626_v45 = vrot.slane %v625_v33, 2  ;;  %v597_v46 = vadd.f32 %v596_v34, %v595_v27  ;;  %v683_v19 = vld [vmem:[#allocation4 + $0x70] sm:$0xff]  ;;  %v686_v34 = vld [vmem:[#allocation4 + $0x88] sm:$0xff] }
 0x2bf   : > { %v603_v24 = vadd.f32 %v602_v39, %v601_v28  ;;  %v609_v47 = vadd.f32 %v608_v40, %v607_v32  ;;  %v615_v48 = vadd.f32 %v614_v41, %v613_v35  ;;  %v621_v52 = vadd.f32 %v620_v44, %v619_v38  ;;  %v684_v28 = vld [vmem:[#allocation4 + $0x78] sm:$0xff]  ;;  %v685_v38 = vld [vmem:[#allocation4 + $0x80] sm:$0xff] }
 0x2c0   : > { %v586_v50 = vrot.slane %v585_v43, 1  ;;  %v592_v51 = vrot.slane %v591_v29, 1  ;;  %v627_v53 = vadd.f32 %v626_v45, %v625_v33  ;;  %v581_v54 = vmul.f32 %v566_v57, %v562_v42  ;;  %v687_v42 = vld [vmem:[#allocation4 + $0x90] sm:$0xff]  ;;  %v689_v45 = vld [vmem:[#allocation4 + $0xa0] sm:$0xff] }
 0x2c1   : > { %v598_v55 = vrot.slane %v597_v46, 1  ;;  %v604_v56 = vrot.slane %v603_v24, 1  ;;  %v610_v58 = vrot.slane %v609_v47, 1  ;;  %v616_v9 = vrot.slane %v615_v48, 1 }
 0x2c2   : > { %v2660_v59 = vadd.f32 %v586_v50, %v585_v43  ;;  %v2662_v60 = vadd.f32 %v592_v51, %v591_v29  ;;  %v622_v62 = vrot.slane %v621_v52, 1  ;;  %v628_v63 = vrot.slane %v627_v53, 1  ;;  %v691_v51 = vld [vmem:[#allocation4 + $0xb0] sm:$0xff] }
 0x2c3   : > { %v2664_v61 = vadd.f32 %v598_v55, %v597_v46  ;;  %v2666_v20 = vadd.f32 %v604_v56, %v603_v24  ;;  %v2668_v0 = vadd.f32 %v610_v58, %v609_v47  ;;  %v630_v1 = vrot.slane %v576_v5, 4  ;;  %v690_v46 = vld [vmem:[#allocation4 + $0xa8] sm:$0xff]  ;;  %v692_v55 = vld [vmem:[#allocation4 + $0xb8] sm:$0xff]  ;;  %v693_v56 = vld [vmem:[#allocation4 + $0xc0] sm:$0xff] }
 0x2c4   : > { %v636_v4 = vrot.slane %v577_v6, 4  ;;  %v642_v57 = vrot.slane %v2654_v7, 4  ;;  %v648_v2 = vrot.slane %v2656_v8, 4  ;;  %v654_v3 = vrot.slane %v2658_v11, 4  ;;  %v694_v58 = vld [vmem:[#allocation4 + $0xc8] sm:$0xff] }
 0x2c5   : > { %v661_v12 = vsel %vm660_vm3, %v581_v54, 0.0  ;;  %v2676_v14 = vadd.f32 %v616_v9, %v615_v48  ;;  %v631_v16 = vadd.f32 %v630_v1, %v576_v5  ;;  %v2678_v22 = vadd.f32 %v622_v62, %v621_v52 }
 0x2c6   : > { %v637_v17 = vadd.f32 %v636_v4, %v577_v6  ;;  %v662_v18 = vrot.slane %v661_v12, 4  ;;  %v643_v23 = vadd.f32 %v642_v57, %v2654_v7  ;;  %v649_v25 = vadd.f32 %v648_v2, %v2656_v8  ;;  %v688_v8 = vld [vmem:[#allocation4 + $0x98] sm:$0xff]  ;;  %v695_v4 = vld [vmem:[#allocation4 + $0xd0] sm:$0xff] }
 0x2c7   : > { %v655_v27 = vadd.f32 %v654_v3, %v2658_v11  ;;  %v2683_v32 = vadd.f32 %v628_v63, %v627_v53  ;;  %v632_v35 = vrot.slane %v631_v16, 2  ;;  %v701_v39 = vmul.f32 %v2674_v13, %v683_v19 }
 0x2c8   : > { %v638_v36 = vrot.slane %v637_v17, 2  ;;  %v663_v37 = vadd.f32 %v662_v18, %v661_v12  ;;  %v644_v33 = vrot.slane %v643_v23, 2  ;;  %v650_v5 = vrot.slane %v649_v25, 2 }
 0x2c9   : > { %v656_v6 = vrot.slane %v655_v27, 2  ;;  %v633_v40 = vadd.f32 %v632_v35, %v631_v16  ;;  %v702_v11 = vmul.f32 %v2674_v13, %v684_v28  ;;  %v703_v24 = vmul.f32 %v2674_v13, %v685_v38 }
 0x2ca   : > { %v639_v41 = vadd.f32 %v638_v36, %v637_v17  ;;  %v664_v7 = vrot.slane %v663_v37, 2  ;;  %v645_v43 = vadd.f32 %v644_v33, %v643_v23  ;;  %v651_v29 = vadd.f32 %v650_v5, %v649_v25 }
 0x2cb   : > { %v2687_v44 = vadd.f32 %v656_v6, %v655_v27  ;;  %v634_v47 = vrot.slane %v633_v40, 1  ;;  %v704_v52 = vmul.f32 %v2674_v13, %v686_v34  ;;  %v705_v9 = vmul.f32 %v2674_v13, %v687_v42 }
 0x2cc   : > { %v640_v48 = vrot.slane %v639_v41, 1  ;;  %v2690_v50 = vadd.f32 %v664_v7, %v663_v37  ;;  %v646_v53 = vrot.slane %v645_v43, 1  ;;  %v652_v54 = vrot.slane %v651_v29, 1 }
 0x2cd   : > { %v706_v62 = vmul.f32 %v2674_v13, %v688_v8  ;;  %v2695_v63 = vadd.f32 %v634_v47, %v633_v40  ;;  %v658_v1 = vrot.slane %v2687_v44, 1  ;;  %v707_v57 = vmul.f32 %v2674_v13, %v689_v45 }
 0x2ce   : > { %v708_v2 = vmul.f32 %v2674_v13, %v690_v46  ;;  %v2700_v3 = vadd.f32 %v640_v48, %v639_v41  ;;  %v2702_v12 = vadd.f32 %v646_v53, %v645_v43  ;;  %v666_v16 = vrot.slane %v2690_v50, 1 }
 0x2cf   : > { %v709_v17 = vmul.f32 %v2674_v13, %v691_v51  ;;  %v2706_v18 = vadd.f32 %v652_v54, %v651_v29  ;;  %v710_v19 = vmul.f32 %v2674_v13, %v692_v55  ;;  %v711_v23 = vmul.f32 %v2674_v13, %v693_v56  ;;  %v696_v55 = vld [vmem:[#allocation4 + $0xd8] sm:$0xff] }
 0x2d0   : > { %v2711_v25 = vmul.f32 %v2674_v13, %v694_v58  ;;  %v2714_v27 = vmul.f32 %v2674_v13, %v695_v4  ;;  %v715_v28 = vrot.slane %v701_v39, 4  ;;  %v721_v35 = vrot.slane %v702_v11, 4 }
 0x2d1   : > { %v727_v36 = vrot.slane %v703_v24, 4  ;;  %v733_v37 = vrot.slane %v704_v52, 4  ;;  %v739_v38 = vrot.slane %v705_v9, 4  ;;  %v745_v33 = vrot.slane %v706_v62, 4 }
 0x2d2   : > { %v751_v5 = vrot.slane %v707_v57, 4  ;;  %v716_v6 = vadd.f32 %v715_v28, %v701_v39  ;;  %v722_v34 = vadd.f32 %v721_v35, %v702_v11  ;;  %v757_v41 = vrot.slane %v708_v2, 4 }
 0x2d3   : > { %v728_v40 = vadd.f32 %v727_v36, %v703_v24  ;;  %v734_v7 = vadd.f32 %v733_v37, %v704_v52  ;;  %v740_v42 = vadd.f32 %v739_v38, %v705_v9  ;;  %v746_v8 = vadd.f32 %v745_v33, %v706_v62 }
 0x2d4   : > { %v752_v43 = vadd.f32 %v751_v5, %v707_v57  ;;  %v717_v29 = vrot.slane %v716_v6, 2  ;;  %v723_v45 = vrot.slane %v722_v34, 2  ;;  %v758_v47 = vadd.f32 %v757_v41, %v708_v2 }
 0x2d5   : > { %v729_v46 = vrot.slane %v728_v40, 2  ;;  %v735_v48 = vrot.slane %v734_v7, 2  ;;  %v741_v51 = vrot.slane %v740_v42, 2  ;;  %v747_v53 = vrot.slane %v746_v8, 2 }
 0x2d6   : > { %v753_v54 = vrot.slane %v752_v43, 2  ;;  %v718_v56 = vadd.f32 %v717_v29, %v716_v6  ;;  %v724_v58 = vadd.f32 %v723_v45, %v722_v34  ;;  %v759_v39 = vrot.slane %v758_v47, 2 }
 0x2d7   : > { %v730_v4 = vadd.f32 %v729_v46, %v728_v40  ;;  %v736_v11 = vadd.f32 %v735_v48, %v734_v7  ;;  %v742_v24 = vadd.f32 %v741_v51, %v740_v42  ;;  %v748_v28 = vadd.f32 %v747_v53, %v746_v8 }
 0x2d8   : > { %v754_v52 = vadd.f32 %v753_v54, %v752_v43  ;;  %v719_v9 = vrot.slane %v718_v56, 1  ;;  %v725_v62 = vrot.slane %v724_v58, 1  ;;  %v760_v35 = vadd.f32 %v759_v39, %v758_v47 }
 0x2d9   : > { %v731_v57 = vrot.slane %v730_v4, 1  ;;  %v714_v36 = vmul.f32 %v2674_v13, %v696_v55  ;;  %v737_v2 = vrot.slane %v736_v11, 1  ;;  %v743_v37 = vrot.slane %v742_v24, 1 }
 0x2da   : > { %v749_v38 = vrot.slane %v748_v28, 1  ;;  %v2718_v33 = vadd.f32 %v658_v1, %v2687_v44  ;;  %v2721_v5 = vadd.f32 %v666_v16, %v2690_v50  ;;  %v720_v6 = vadd.f32 %v719_v9, %v718_v56 }
 0x2db   : > { %v755_v34 = vrot.slane %v754_v52, 1  ;;  %v726_v40 = vadd.f32 %v725_v62, %v724_v58  ;;  %v732_v41 = vadd.f32 %v731_v57, %v730_v4  ;;  %v738_v7 = vadd.f32 %v737_v2, %v736_v11 }
 0x2dc   : > { %v761_v42 = vrot.slane %v760_v35, 1  ;;  %v744_v8 = vadd.f32 %v743_v37, %v742_v24  ;;  %v763_v43 = vrot.slane %v709_v17, 4  ;;  %v769_v29 = vrot.slane %v710_v19, 4 }
 0x2dd   : > { %v775_v45 = vrot.slane %v711_v23, 4  ;;  %v750_v13 = vadd.f32 %v749_v38, %v748_v28  ;;  %v781_v46 = vrot.slane %v2711_v25, 4  ;;  %v787_v47 = vrot.slane %v2714_v27, 4 }
 0x2de   : > { %v793_v44 = vsel %vm660_vm3, %v714_v36, 0.0  ;;  %v764_v1 = vadd.f32 %v763_v43, %v709_v17  ;;  %v770_v50 = vadd.f32 %v769_v29, %v710_v19  ;;  %v756_v51 = vadd.f32 %v755_v34, %v754_v52  ;;  %v2754_v29 = vld [vmem:[#allocation4 + $0xf8] sm:$0xff] }
 0x2df   : > { %v776_v16 = vadd.f32 %v775_v45, %v711_v23  ;;  %v794_v48 = vrot.slane %v793_v44, 4  ;;  %v762_v53 = vadd.f32 %v761_v42, %v760_v35  ;;  %v782_v54 = vadd.f32 %v781_v46, %v2711_v25  ;;  %v2740_v35 = vpop.permute.xlu1 %830  ;;  %v2756_v45 = vld [vmem:[#allocation4 + $0x100] sm:$0xff] }
 0x2e0   : > { %v788_v55 = vadd.f32 %v787_v47, %v2714_v27  ;;  %v765_v56 = vrot.slane %v764_v1, 2  ;;  %v771_v58 = vrot.slane %v770_v50, 2  ;;  %v2729_v28 = vadd.f32 %v720_v6, %v2660_v59  ;;  %3713 = vst [vmem:[#allocation16_spill] sm:$0xff] %v2756_v45 }
 0x2e1   : > { %v777_v4 = vrot.slane %v776_v16, 2  ;;  %v795_v39 = vadd.f32 %v794_v48, %v793_v44  ;;  %v783_v11 = vrot.slane %v782_v54, 2  ;;  %v2732_v17 = vadd.f32 %v726_v40, %v2662_v60  ;;  %v2742_v60 = vld [vmem:[#allocation4 + $0xe0] sm:$0xff]  ;;  %v2774_v48 = vld [vmem:[#allocation4 + $0x128] sm:$0xff] }
 0x2e2   : > { %v789_v24 = vrot.slane %v788_v55, 2  ;;  %v766_v19 = vadd.f32 %v765_v56, %v764_v1  ;;  %v772_v23 = vadd.f32 %v771_v58, %v770_v50  ;;  %v2735_v27 = vadd.f32 %v732_v41, %v2664_v61  ;;  %v2750_v61 = vld [vmem:[#allocation4 + $0xe8] sm:$0xff]  ;;  %3718 = vst [vmem:[#allocation21_spill] sm:$0xff] %v2774_v48  ;;  %v2790_v56 = vld [vmem:[#allocation4 + $0x140] sm:$0xff] }
 0x2e3   : > { %v778_v52 = vadd.f32 %v777_v4, %v776_v16  ;;  %v796_v9 = vrot.slane %v795_v39, 2  ;;  %v784_v62 = vadd.f32 %v783_v11, %v782_v54  ;;  %v2738_v57 = vadd.f32 %v738_v7, %v2666_v20  ;;  %v2752_v20 = vld [vmem:[#allocation4 + $0xf0] sm:$0xff]  ;;  %v2772_v16 = vld [vmem:[#allocation4 + $0x120] sm:$0xff]  ;;  %3721 = vst [vmem:[#allocation24_spill] sm:$0xff] %v2790_v56 }
 0x2e4   : > { %v790_v25 = vadd.f32 %v789_v24, %v788_v55  ;;  %v767_v36 = vrot.slane %v766_v19, 1  ;;  %v773_v59 = vrot.slane %v772_v23, 1  ;;  %v2745_v34 = vadd.f32 %v744_v8, %v2668_v0  ;;  %v2766_v8 = vld [vmem:[#allocation4 + $0x110] sm:$0xff]  ;;  %3717 = vst [vmem:[#allocation20_spill] sm:$0xff] %v2772_v16  ;;  %v2788_v55 = vld [vmem:[#allocation4 + $0x138] sm:$0xff] }
 0x2e5   : > { %v779_v2 = vrot.slane %v778_v52, 1  ;;  %v797_v37 = vadd.f32 %v796_v9, %v795_v39  ;;  %v785_v38 = vrot.slane %v784_v62, 1  ;;  %v2748_v40 = vadd.f32 %v750_v13, %v2676_v14  ;;  %v2764_v14 = vld [vmem:[#allocation4 + $0x108] sm:$0xff]  ;;  %3715 = vst [vmem:[#allocation18_spill] sm:$0xff] %v2766_v8  ;;  %v2768_v13 = vld [vmem:[#allocation4 + $0x118] sm:$0xff]  ;;  %3720 = vst [vmem:[#allocation23_spill] sm:$0xff] %v2788_v55 }
 0x2e6   : > { %v791_v6 = vrot.slane %v790_v25, 1  ;;  %v768_v41 = vadd.f32 %v767_v36, %v766_v19  ;;  %v774_v7 = vadd.f32 %v773_v59, %v772_v23  ;;  %v2759_v47 = vadd.f32 %v756_v51, %v2678_v22  ;;  %3714 = vst [vmem:[#allocation17_spill] sm:$0xff] %v2764_v14  ;;  %3716 = vst [vmem:[#allocation19_spill] sm:$0xff] %v2768_v13  ;;  %v2776_v22 = vld [vmem:[#allocation4 + $0x130] sm:$0xff] }
 0x2e7   : > { %v780_v42 = vadd.f32 %v779_v2, %v778_v52  ;;  %v798_v43 = vrot.slane %v797_v37, 1  ;;  %v786_v46 = vadd.f32 %v785_v38, %v784_v62  ;;  %v2762_v0 = vadd.f32 %v762_v53, %v2683_v32  ;;  %3719 = vst [vmem:[#allocation22_spill] sm:$0xff] %v2776_v22 }
 0x2e8   : > { %v833_v44 = vmul.f32 %v2740_v35, %v2742_v60  ;;  %v792_v1 = vadd.f32 %v791_v6, %v790_v25  ;;  %v834_v32 = vmul.f32 %v2740_v35, %v2750_v61  ;;  %v835_v51 = vmul.f32 %v2740_v35, %v2752_v20 }
 0x2e9   : > { %v799_v50 = vadd.f32 %v798_v43, %v797_v37  ;;  %v2783_v53 = vadd.f32 %v768_v41, %v2695_v63  ;;  %v2786_v54 = vadd.f32 %v774_v7, %v2700_v3  ;;  %v836_v58 = vmul.f32 %v2740_v35, %v2754_v29 }
 0x2ea   : > { %v837_v4 = vmul.f32 %v2740_v35, %v2756_v45  ;;  %v2797_v39 = vadd.f32 %v780_v42, %v2702_v12  ;;  %v838_v63 = vmul.f32 %v2740_v35, %v2764_v14  ;;  %v839_v3 = vmul.f32 %v2740_v35, %v2766_v8 }
 0x2eb   : > { %v840_v11 = vmul.f32 %v2740_v35, %v2768_v13  ;;  %v2806_v24 = vadd.f32 %v786_v46, %v2706_v18  ;;  %v841_v19 = vmul.f32 %v2740_v35, %v2772_v16  ;;  %v842_v23 = vmul.f32 %v2740_v35, %v2774_v48 }
 0x2ec   : > { %v2814_v12 = vmul.f32 %v2740_v35, %v2776_v22  ;;  %v2818_v52 = vmul.f32 %v2740_v35, %v2788_v55  ;;  %v2822_v9 = vmul.f32 %v2740_v35, %v2790_v56  ;;  %v847_v18 = vrot.slane %v833_v44, 4  ;;  %v2824_v55 = vld [vmem:[#allocation4 + $0x148] sm:$0xff] }
 0x2ed   : > { %v853_v62 = vrot.slane %v834_v32, 4  ;;  %v859_v25 = vrot.slane %v835_v51, 4  ;;  %v865_v36 = vrot.slane %v836_v58, 4  ;;  %v871_v59 = vrot.slane %v837_v4, 4  ;;  %3722 = vst [vmem:[#allocation25_spill] sm:$0xff] %v2824_v55 }
 0x2ee   : > { %v877_v2 = vrot.slane %v838_v63, 4  ;;  %v848_v37 = vadd.f32 %v847_v18, %v833_v44  ;;  %v883_v6 = vrot.slane %v839_v3, 4  ;;  %v889_v41 = vrot.slane %v840_v11, 4 }
 0x2ef   : > { %v854_v38 = vadd.f32 %v853_v62, %v834_v32  ;;  %v860_v7 = vadd.f32 %v859_v25, %v835_v51  ;;  %v866_v42 = vadd.f32 %v865_v36, %v836_v58  ;;  %v872_v43 = vadd.f32 %v871_v59, %v837_v4 }
 0x2f0   : > { %v878_v46 = vadd.f32 %v877_v2, %v838_v63  ;;  %v849_v15 = vrot.slane %v848_v37, 2  ;;  %v884_v49 = vadd.f32 %v883_v6, %v839_v3  ;;  %v890_v30 = vadd.f32 %v889_v41, %v840_v11 }
 0x2f1   : > { %v855_v26 = vrot.slane %v854_v38, 2  ;;  %v861_v31 = vrot.slane %v860_v7, 2  ;;  %v867_v10 = vrot.slane %v866_v42, 2  ;;  %v873_v21 = vrot.slane %v872_v43, 2 }
 0x2f2   : > { %v879_v56 = vrot.slane %v878_v46, 2  ;;  %v850_v22 = vadd.f32 %v849_v15, %v848_v37  ;;  %v885_v44 = vrot.slane %v884_v49, 2  ;;  %v891_v32 = vrot.slane %v890_v30, 2 }
 0x2f3   : > { %v856_v48 = vadd.f32 %v855_v26, %v854_v38  ;;  %v862_v18 = vadd.f32 %v861_v31, %v860_v7  ;;  %v868_v62 = vadd.f32 %v867_v10, %v866_v42  ;;  %v874_v51 = vadd.f32 %v873_v21, %v872_v43 }
 0x2f4   : > { %v880_v58 = vadd.f32 %v879_v56, %v878_v46  ;;  %v851_v4 = vrot.slane %v850_v22, 1  ;;  %v886_v25 = vadd.f32 %v885_v44, %v884_v49  ;;  %v892_v36 = vadd.f32 %v891_v32, %v890_v30 }
 0x2f5   : > { %v857_v63 = vrot.slane %v856_v48, 1  ;;  %v846_v3 = vmul.f32 %v2740_v35, %v2824_v55  ;;  %v863_v11 = vrot.slane %v862_v18, 1  ;;  %v869_v59 = vrot.slane %v868_v62, 1 }
 0x2f6   : > { %v875_v2 = vrot.slane %v874_v51, 1  ;;  %v2829_v6 = vadd.f32 %v792_v1, %v2718_v33  ;;  %v2832_v15 = vadd.f32 %v799_v50, %v2721_v5  ;;  %v852_v26 = vadd.f32 %v851_v4, %v850_v22 }
 0x2f7   : > { %v881_v10 = vrot.slane %v880_v58, 1  ;;  %v858_v21 = vadd.f32 %v857_v63, %v856_v48  ;;  %v864_v31 = vadd.f32 %v863_v11, %v862_v18  ;;  %v887_v56 = vrot.slane %v886_v25, 1 }
 0x2f8   : > { %v893_v37 = vrot.slane %v892_v36, 1  ;;  %v870_v49 = vadd.f32 %v869_v59, %v868_v62  ;;  %v876_v30 = vadd.f32 %v875_v2, %v874_v51  ;;  %v895_v38 = vrot.slane %v841_v19, 4 }
 0x2f9   : > { %v901_v41 = vrot.slane %v842_v23, 4  ;;  %v907_v35 = vrot.slane %v2814_v12, 4  ;;  %v913_v7 = vrot.slane %v2818_v52, 4  ;;  %v919_v33 = vrot.slane %v2822_v9, 4 }
 0x2fa   : > { %v925_v1 = vsel %vm660_vm3, %v846_v3, 0.0  ;;  %v882_v5 = vadd.f32 %v881_v10, %v880_v58  ;;  %v896_v50 = vadd.f32 %v895_v38, %v841_v19  ;;  %v888_v48 = vadd.f32 %v887_v56, %v886_v25 }
 0x2fb   : > { %v902_v22 = vadd.f32 %v901_v41, %v842_v23  ;;  %v926_v42 = vrot.slane %v925_v1, 4  ;;  %v908_v43 = vadd.f32 %v907_v35, %v2814_v12  ;;  %v914_v46 = vadd.f32 %v913_v7, %v2818_v52 }
 0x2fc   : > { %v920_v44 = vadd.f32 %v919_v33, %v2822_v9  ;;  %v894_v32 = vadd.f32 %v893_v37, %v892_v36  ;;  %v897_v18 = vrot.slane %v896_v50, 2  ;;  %v2842_v3 = vadd.f32 %v852_v26, %v2729_v28  ;;  %v963_v36 = vpop.permute.xlu0 %962  ;;  %v2853_v28 = vld [vmem:[#allocation4 + $0x150] sm:$0xff]  ;;  %v2863_v33 = vld [vmem:[#allocation4 + $0x160] sm:$0xff] }
 0x2fd   : > { %v903_v62 = vrot.slane %v902_v22, 2  ;;  %v927_v51 = vadd.f32 %v926_v42, %v925_v1  ;;  %v909_v4 = vrot.slane %v908_v43, 2  ;;  %v915_v63 = vrot.slane %v914_v46, 2  ;;  %3723 = vst [vmem:[#allocation26_spill] sm:$0xff] %v2863_v33  ;;  %v2879_v42 = vld [vmem:[#allocation4 + $0x188] sm:$0xff] }
 0x2fe   : > { %v921_v11 = vrot.slane %v920_v44, 2  ;;  %v898_v19 = vadd.f32 %v897_v18, %v896_v50  ;;  %v2845_v25 = vadd.f32 %v858_v21, %v2732_v17  ;;  %v2848_v9 = vadd.f32 %v864_v31, %v2735_v27  ;;  %v2858_v21 = vld [vmem:[#allocation4 + $0x158] sm:$0xff]  ;;  %3728 = vst [vmem:[#allocation31_spill] sm:$0xff] %v2879_v42 }
 0x2ff   : > { %v904_v23 = vadd.f32 %v903_v62, %v902_v22  ;;  %v928_v58 = vrot.slane %v927_v51, 2  ;;  %v910_v12 = vadd.f32 %v909_v4, %v908_v43  ;;  %v916_v52 = vadd.f32 %v915_v63, %v914_v46  ;;  %v2877_v22 = vld [vmem:[#allocation4 + $0x180] sm:$0xff]  ;;  %v2901_v62 = vld [vmem:[#allocation4 + $0x1a8] sm:$0xff]  ;;  %v2905_v4 = vld [vmem:[#allocation4 + $0x1b8] sm:$0xff] }
 0x300   : > { %v922_v59 = vadd.f32 %v921_v11, %v920_v44  ;;  %v899_v2 = vrot.slane %v898_v19, 1  ;;  %v2851_v37 = vadd.f32 %v870_v49, %v2738_v57  ;;  %v2856_v17 = vadd.f32 %v876_v30, %v2745_v34  ;;  %v2865_v57 = vld [vmem:[#allocation4 + $0x168] sm:$0xff]  ;;  %v2867_v49 = vld [vmem:[#allocation4 + $0x170] sm:$0xff]  ;;  %v2875_v30 = vld [vmem:[#allocation4 + $0x178] sm:$0xff]  ;;  %3727 = vst [vmem:[#allocation30_spill] sm:$0xff] %v2877_v22 }
 0x301   : > { %v905_v10 = vrot.slane %v904_v23, 1  ;;  %v929_v56 = vadd.f32 %v928_v58, %v927_v51  ;;  %v911_v26 = vrot.slane %v910_v12, 1  ;;  %v917_v38 = vrot.slane %v916_v52, 1  ;;  %3724 = vst [vmem:[#allocation27_spill] sm:$0xff] %v2865_v57  ;;  %3725 = vst [vmem:[#allocation28_spill] sm:$0xff] %v2867_v49  ;;  %v2888_v44 = vld [vmem:[#allocation4 + $0x190] sm:$0xff] }
 0x302   : > { %v923_v41 = vrot.slane %v922_v59, 1  ;;  %v900_v35 = vadd.f32 %v899_v2, %v898_v19  ;;  %v2861_v7 = vadd.f32 %v882_v5, %v2748_v40  ;;  %v2870_v50 = vadd.f32 %v888_v48, %v2759_v47  ;;  %3726 = vst [vmem:[#allocation29_spill] sm:$0xff] %v2875_v30  ;;  %3729 = vst [vmem:[#allocation32_spill] sm:$0xff] %v2888_v44  ;;  %v2890_v47 = vld [vmem:[#allocation4 + $0x198] sm:$0xff]  ;;  %v2903_v51 = vld [vmem:[#allocation4 + $0x1b0] sm:$0xff] }
 0x303   : > { %v906_v27 = vadd.f32 %v905_v10, %v904_v23  ;;  %v930_v31 = vrot.slane %v929_v56, 1  ;;  %v912_v1 = vadd.f32 %v911_v26, %v910_v12  ;;  %v2873_v34 = vadd.f32 %v894_v32, %v2762_v0  ;;  %3730 = vst [vmem:[#allocation33_spill] sm:$0xff] %v2890_v47  ;;  %v2892_v0 = vld [vmem:[#allocation4 + $0x1a0] sm:$0xff]  ;;  %3732 = vst [vmem:[#allocation35_spill] sm:$0xff] %v2901_v62 }
 0x304   : > { %v965_v40 = vmul.f32 %v963_v36, %v2853_v28  ;;  %v2882_v5 = vadd.f32 %v917_v38, %v916_v52  ;;  %v2884_v43 = vadd.f32 %v923_v41, %v922_v59  ;;  %3731 = vst [vmem:[#allocation34_spill] sm:$0xff] %v2892_v0  ;;  %v966_v48 = vmul.f32 %v963_v36, %v2858_v21 }
 0x305   : > { %v2886_v46 = vadd.f32 %v930_v31, %v929_v56  ;;  %v2896_v32 = vadd.f32 %v900_v35, %v2783_v53  ;;  %v2899_v18 = vadd.f32 %v906_v27, %v2786_v54  ;;  %3733 = vst [vmem:[#allocation36_spill] sm:$0xff] %v2903_v51  ;;  %3734 = vst [vmem:[#allocation37_spill] sm:$0xff] %v2905_v4 }
 0x306   : > { %v967_v63 = vmul.f32 %v963_v36, %v2863_v33  ;;  %v968_v11 = vmul.f32 %v963_v36, %v2865_v57  ;;  %v2910_v19 = vadd.f32 %v912_v1, %v2797_v39  ;;  %v969_v23 = vmul.f32 %v963_v36, %v2867_v49 }
 0x307   : > { %v970_v53 = vmul.f32 %v963_v36, %v2875_v30  ;;  %v971_v54 = vmul.f32 %v963_v36, %v2877_v22  ;;  %v972_v58 = vmul.f32 %v963_v36, %v2879_v42  ;;  %v973_v12 = vmul.f32 %v963_v36, %v2888_v44 }
 0x308   : > { %v974_v52 = vmul.f32 %v963_v36, %v2890_v47  ;;  %v975_v59 = vmul.f32 %v963_v36, %v2892_v0  ;;  %v976_v2 = vmul.f32 %v963_v36, %v2901_v62  ;;  %v977_v10 = vmul.f32 %v963_v36, %v2903_v51 }
 0x309   : > { %v978_v39 = vmul.f32 %v963_v36, %v2905_v4  ;;  %v979_v56 = vrot.slane %v965_v40, 4  ;;  %v985_v26 = vrot.slane %v966_v48, 4  ;;  %v991_v38 = vrot.slane %v967_v63, 4 }
 0x30a   : > { %v997_v41 = vrot.slane %v968_v11, 4  ;;  %v1003_v35 = vrot.slane %v969_v23, 4  ;;  %v1009_v31 = vrot.slane %v970_v53, 4  ;;  %v1015_v1 = vrot.slane %v971_v54, 4 }
 0x30b   : > { %v980_v27 = vadd.f32 %v979_v56, %v965_v40  ;;  %v1021_v55 = vrot.slane %v972_v58, 4  ;;  %v986_v44 = vadd.f32 %v985_v26, %v966_v48  ;;  %v992_v42 = vadd.f32 %v991_v38, %v967_v63 }
 0x30c   : > { %v998_v47 = vadd.f32 %v997_v41, %v968_v11  ;;  %v1004_v22 = vadd.f32 %v1003_v35, %v969_v23  ;;  %v1010_v30 = vadd.f32 %v1009_v31, %v970_v53  ;;  %v1016_v62 = vadd.f32 %v1015_v1, %v971_v54 }
 0x30d   : > { %v981_v0 = vrot.slane %v980_v27, 2  ;;  %v1022_v16 = vadd.f32 %v1021_v55, %v972_v58  ;;  %v987_v51 = vrot.slane %v986_v44, 2  ;;  %v993_v49 = vrot.slane %v992_v42, 2 }
 0x30e   : > { %v999_v36 = vrot.slane %v998_v47, 2  ;;  %v1005_v4 = vrot.slane %v1004_v22, 2  ;;  %v1011_v57 = vrot.slane %v1010_v30, 2  ;;  %v1017_v8 = vrot.slane %v1016_v62, 2 }
 0x30f   : > { %v982_v13 = vadd.f32 %v981_v0, %v980_v27  ;;  %v1023_v33 = vrot.slane %v1022_v16, 2  ;;  %v988_v40 = vadd.f32 %v987_v51, %v986_v44  ;;  %v994_v56 = vadd.f32 %v993_v49, %v992_v42 }
 0x310   : > { %v1000_v14 = vadd.f32 %v999_v36, %v998_v47  ;;  %v1006_v45 = vadd.f32 %v1005_v4, %v1004_v22  ;;  %v1012_v63 = vadd.f32 %v1011_v57, %v1010_v30  ;;  %v1018_v11 = vadd.f32 %v1017_v8, %v1016_v62 }
 0x311   : > { %v983_v48 = vrot.slane %v982_v13, 1  ;;  %v1024_v23 = vadd.f32 %v1023_v33, %v1022_v16  ;;  %v989_v26 = vrot.slane %v988_v40, 1  ;;  %v995_v53 = vrot.slane %v994_v56, 1 }
 0x312   : > { %v1001_v54 = vrot.slane %v1000_v14, 1  ;;  %v1007_v55 = vrot.slane %v1006_v45, 1  ;;  %v1013_v38 = vrot.slane %v1012_v63, 1  ;;  %v1019_v41 = vrot.slane %v1018_v11, 1 }
 0x313   : > { %v984_v58 = vadd.f32 %v983_v48, %v982_v13  ;;  %v1025_v35 = vrot.slane %v1024_v23, 1  ;;  %v990_v0 = vadd.f32 %v989_v26, %v988_v40  ;;  %v996_v27 = vadd.f32 %v995_v53, %v994_v56 }
 0x314   : > { %v1002_v31 = vadd.f32 %v1001_v54, %v1000_v14  ;;  %v1008_v1 = vadd.f32 %v1007_v55, %v1006_v45  ;;  %v1014_v44 = vadd.f32 %v1013_v38, %v1012_v63  ;;  %v1020_v49 = vadd.f32 %v1019_v41, %v1018_v11 }
 0x315   : > { %v1026_v42 = vadd.f32 %v1025_v35, %v1024_v23  ;;  %v1027_v22 = vrot.slane %v973_v12, 4  ;;  %v1033_v47 = vrot.slane %v974_v52, 4  ;;  %v1039_v57 = vrot.slane %v975_v59, 4 }
 0x316   : > { %v1045_v8 = vrot.slane %v976_v2, 4  ;;  %v1051_v16 = vrot.slane %v977_v10, 4  ;;  %v1057_v30 = vsel %vm660_vm3, %v978_v39, 0.0  ;;  %v2924_v13 = vadd.f32 %v984_v58, %v2842_v3 }
 0x317   : > { %v1028_v33 = vadd.f32 %v1027_v22, %v973_v12  ;;  %v2927_v62 = vadd.f32 %v990_v0, %v2845_v25  ;;  %v1034_v51 = vadd.f32 %v1033_v47, %v974_v52  ;;  %v1040_v14 = vadd.f32 %v1039_v57, %v975_v59 }
 0x318   : > { %v1046_v45 = vadd.f32 %v1045_v8, %v976_v2  ;;  %v1052_v4 = vadd.f32 %v1051_v16, %v977_v10  ;;  %v1058_v40 = vrot.slane %v1057_v30, 4  ;;  %v2930_v56 = vadd.f32 %v996_v27, %v2848_v9 }
 0x319   : > { %v1029_v36 = vrot.slane %v1028_v33, 2  ;;  %v2933_v48 = vadd.f32 %v1002_v31, %v2851_v37  ;;  %v1035_v12 = vrot.slane %v1034_v51, 2  ;;  %v1041_v39 = vrot.slane %v1040_v14, 2 }
 0x31a   : > { %v1047_v63 = vrot.slane %v1046_v45, 2  ;;  %v1053_v3 = vrot.slane %v1052_v4, 2  ;;  %v1059_v23 = vadd.f32 %v1058_v40, %v1057_v30  ;;  %v2936_v25 = vadd.f32 %v1008_v1, %v2856_v17 }
 0x31b   : > { %v1030_v11 = vadd.f32 %v1029_v36, %v1028_v33  ;;  %v2939_v52 = vadd.f32 %v1014_v44, %v2861_v7  ;;  %v1036_v59 = vadd.f32 %v1035_v12, %v1034_v51  ;;  %v1042_v2 = vadd.f32 %v1041_v39, %v1040_v14 }
 0x31c   : > { %v1048_v10 = vadd.f32 %v1047_v63, %v1046_v45  ;;  %v1054_v9 = vadd.f32 %v1053_v3, %v1052_v4  ;;  %v1060_v53 = vrot.slane %v1059_v23, 2  ;;  %v2942_v37 = vadd.f32 %v1020_v49, %v2870_v50 }
 0x31d   : > { %v1031_v26 = vrot.slane %v1030_v11, 1  ;;  %v2945_v54 = vadd.f32 %v1026_v42, %v2873_v34  ;;  %v1037_v55 = vrot.slane %v1036_v59, 1  ;;  %v1043_v58 = vrot.slane %v1042_v2, 1 }
 0x31e   : > { %v1049_v38 = vrot.slane %v1048_v10, 1  ;;  %v1055_v17 = vrot.slane %v1054_v9, 1  ;;  %v943_v7 = vadd.f32 %v2882_v5, %v2806_v24  ;;  %v1061_v35 = vadd.f32 %v1060_v53, %v1059_v23 }
 0x31f   : > { %v1032_v41 = vadd.f32 %v1031_v26, %v1030_v11  ;;  %v1078_v0 = vmin.f32 %v2924_v13, %v2936_v25  ;;  %v944_v27 = vadd.f32 %v2884_v43, %v2829_v6  ;;  %v945_v50 = vadd.f32 %v2886_v46, %v2832_v15 }
 0x320   : > { %v1038_v34 = vadd.f32 %v1037_v55, %v1036_v59  ;;  %v1079_v31 = vmin.f32 %v2927_v62, %v2939_v52  ;;  %v1044_v1 = vadd.f32 %v1043_v58, %v1042_v2  ;;  %v1050_v44 = vadd.f32 %v1049_v38, %v1048_v10 }
 0x321   : > { %v1062_v49 = vrot.slane %v1061_v35, 1  ;;  %v1072_v24 = vadd.f32 %v1032_v41, %v2896_v32  ;;  %v1056_v5 = vadd.f32 %v1055_v17, %v1054_v9  ;;  %v1080_v22 = vmin.f32 %v2930_v56, %v2942_v37 }
 0x322   : > { %v1073_v42 = vadd.f32 %v1038_v34, %v2899_v18  ;;  %v1081_v6 = vmin.f32 %v2933_v48, %v2945_v54  ;;  %v1074_v46 = vadd.f32 %v1044_v1, %v2910_v19  ;;  %v1075_v47 = vadd.f32 %v1050_v44, %v943_v7 }
 0x323   : > { %v1063_v43 = vadd.f32 %v1062_v49, %v1061_v35  ;;  %v1082_v15 = vmin.f32 %v1078_v0, %v1072_v24  ;;  %v1076_v57 = vadd.f32 %v1056_v5, %v944_v27  ;;  %v3735_v40 = vlaneseq }
 0x324   : > { %v1083_v8 = vmin.f32 %v1079_v31, %v1073_v42  ;;  %v1084_v33 = vmin.f32 %v1080_v22, %v1074_v46  ;;  %v1085_v30 = vmin.f32 %v1081_v6, %v1075_v47 }
 0x325   : > { %v1077_v16 = vadd.f32 %v1063_v43, %v945_v50  ;;  %v1086_v32 = vmin.f32 %v1082_v15, %v1076_v57  ;;  %v2966_v12 = vand.u32 127, %v3735_v40 }
 0x326   : > { %v1090_v45 = vmin.f32 %v1084_v33, %v1085_v30 }
 0x327   : > { %v1087_v51 = vsel %vm660_vm3, %v1077_v16, inf  ;;  %v2969_v19 = vadd.s32 128, %v2966_v12  ;;  %v2972_v39 = vadd.s32 256, %v2966_v12  ;;  %v2975_v63 = vadd.s32 384, %v2966_v12 }
 0x328   : > { %v1088_v18 = vmin.f32 %v1083_v8, %v1087_v51  ;;  %v2978_v3 = vadd.s32 512, %v2966_v12  ;;  %v2981_v11 = vadd.s32 640, %v2966_v12  ;;  %v2984_v23 = vadd.s32 768, %v2966_v12 }
 0x329   : > { %v2987_v59 = vadd.s32 896, %v2966_v12  ;;  %v2990_v2 = vadd.s32 1024, %v2966_v12  ;;  %v2993_v10 = vadd.s32 1152, %v2966_v12  ;;  %v2996_v9 = vadd.s32 1280, %v2966_v12 }
 0x32a   : > { %v1089_v14 = vmin.f32 %v1086_v32, %v1088_v18  ;;  %v2999_v53 = vadd.s32 1408, %v2966_v12  ;;  %v3002_v55 = vadd.s32 1536, %v2966_v12  ;;  %v3005_v58 = vadd.s32 1664, %v2966_v12 }
 0x32c   : > { %v1091_v4 = vmin.f32 %v1089_v14, %v1090_v45 }
 0x32e   : > { %1092 = vmin.xlane.f32.xlu1 %v1091_v4  ;;  %v3736_v4 = vmov 0.0  }
 0x3b7   : > { %v1093_v36 = vpop.xlane.xlu1 %1092 }
 0x3b8   : > { %2192 = vpush %v1093_v36 }
 0x3e9   : > { %s2193_s21 = spop %2192 }
 0x3ea   : > { %v1095_v26 = vstv %s2193_s21  ;;  %s3255_s21 = sld [smem:[#allocation3 + %s1785_s19]] }
 0x3eb   : > { %vm1096_vm4 = vcmp.eq.f32.partialorder %v2924_v13, %v1095_v26  ;;  %vm1097_vm5 = vcmp.eq.f32.partialorder %v2927_v62, %v1095_v26  ;;  %vm1098_vm6 = vcmp.eq.f32.partialorder %v2930_v56, %v1095_v26  ;;  %vm1099_vm7 = vcmp.eq.f32.partialorder %v2933_v48, %v1095_v26 }
 0x3ec   : > { %vm1100_vm8 = vcmp.eq.f32.partialorder %v2936_v25, %v1095_v26  ;;  %vm1101_vm9 = vcmp.eq.f32.partialorder %v2939_v52, %v1095_v26  ;;  %vm1102_vm10 = vcmp.eq.f32.partialorder %v2942_v37, %v1095_v26  ;;  %vm1103_vm11 = vcmp.eq.f32.partialorder %v2945_v54, %v1095_v26 }
 0x3ed   : > { %vm1104_vm12 = vcmp.eq.f32.partialorder %v1072_v24, %v1095_v26  ;;  %vm1105_vm13 = vcmp.eq.f32.partialorder %v1073_v42, %v1095_v26  ;;  %vm1106_vm14 = vcmp.eq.f32.partialorder %v1074_v46, %v1095_v26  ;;  %vm1107_vm15 = vcmp.eq.f32.partialorder %v1075_v47, %v1095_v26 }
 0x3ee   : > { %vm1108_vm1 = vcmp.eq.f32.partialorder %v1076_v57, %v1095_v26  ;;  %vm1109_vm2 = vcmp.eq.f32.partialorder %v1077_v16, %v1095_v26  ;;  %v1110_v13 = vsel %vm1096_vm4, %v2966_v12, 1680  ;;  %v1111_v62 = vsel %vm1097_vm5, %v2969_v19, 1680 }
 0x3ef   : > { %v1112_v56 = vsel %vm1098_vm6, %v2972_v39, 1680  ;;  %v1113_v48 = vsel %vm1099_vm7, %v2975_v63, 1680  ;;  %v1114_v25 = vsel %vm1100_vm8, %v2978_v3, 1680  ;;  %v1115_v52 = vsel %vm1101_vm9, %v2981_v11, 1680 }
 0x3f0   : > { %v1116_v37 = vsel %vm1102_vm10, %v2984_v23, 1680  ;;  %v1117_v54 = vsel %vm1103_vm11, %v2987_v59, 1680  ;;  %v1118_v38 = vsel %vm1104_vm12, %v2990_v2, 1680  ;;  %v1119_v17 = vsel %vm1105_vm13, %v2993_v10, 1680 }
 0x3f1   : > { %v1120_v7 = vsel %vm1106_vm14, %v2996_v9, 1680  ;;  %v1121_v41 = vsel %vm1107_vm15, %v2999_v53, 1680  ;;  %v1122_v35 = vsel %vm1108_vm1, %v3002_v55, 1680  ;;  %v1123_v0 = vsel %vm1109_vm2, %v3005_v58, 1680 }
 0x3f2   : > { %vm1124_vm4 = vcmp.lt.s32.totalorder %v1110_v13, %v1114_v25  ;;  %vm1126_vm5 = vcmp.lt.s32.totalorder %v1111_v62, %v1115_v52  ;;  %vm1128_vm6 = vcmp.lt.s32.totalorder %v1112_v56, %v1116_v37  ;;  %vm1130_vm7 = vcmp.lt.s32.totalorder %v1113_v48, %v1117_v54 }
 0x3f3   : > { %v1125_v27 = vsel %vm1124_vm4, %v1110_v13, %v1114_v25  ;;  %v1127_v50 = vsel %vm1126_vm5, %v1111_v62, %v1115_v52  ;;  %v1129_v34 = vsel %vm1128_vm6, %v1112_v56, %v1116_v37  ;;  %v1131_v31 = vsel %vm1130_vm7, %v1113_v48, %v1117_v54  ;;  %v2324_v13 = vld [vmem:[#allocation4] sm:$0xff]  ;;  %v2325_v56 = vld [vmem:[#allocation4 + $0x8] sm:$0xff]  ;;  %v2326_v48 = vld [vmem:[#allocation4 + $0x10] sm:$0xff] }
 0x3f4   : > { %vm1132_vm8 = vcmp.lt.s32.totalorder %v1125_v27, %v1118_v38  ;;  %vm1134_vm9 = vcmp.lt.s32.totalorder %v1127_v50, %v1119_v17  ;;  %vm1136_vm10 = vcmp.lt.s32.totalorder %v1129_v34, %v1120_v7  ;;  %vm1138_vm11 = vcmp.lt.s32.totalorder %v1131_v31, %v1121_v41  ;;  %v2327_v37 = vld [vmem:[#allocation4 + $0x70] sm:$0xff] }
 0x3f5   : > { %v1133_v1 = vsel %vm1132_vm8, %v1125_v27, %v1118_v38  ;;  %v1135_v44 = vsel %vm1134_vm9, %v1127_v50, %v1119_v17  ;;  %v1137_v49 = vsel %vm1136_vm10, %v1129_v34, %v1120_v7  ;;  %v1139_v24 = vsel %vm1138_vm11, %v1131_v31, %v1121_v41  ;;  %v2328_v38 = vld [vmem:[#allocation4 + $0x78] sm:$0xff]  ;;  %v2331_v34 = vld [vmem:[#allocation4 + $0x80] sm:$0xff] }
 0x3f6   : > { %vm1140_vm12 = vcmp.lt.s32.totalorder %v1133_v1, %v1122_v35  ;;  %v1142_v5 = vsel %vm660_vm3, %v1123_v0, 2147483647  ;;  %vm1147_vm14 = vcmp.lt.s32.totalorder %v1137_v49, %v1139_v24 }
 0x3f7   : > { %v1141_v42 = vsel %vm1140_vm12, %v1133_v1, %v1122_v35  ;;  %vm1143_vm13 = vcmp.lt.s32.totalorder %v1135_v44, %v1142_v5  ;;  %v1148_v43 = vsel %vm1147_vm14, %v1137_v49, %v1139_v24  ;;  %v2330_v35 = vld [vmem:[#allocation4 + $0x20] sm:$0xff]  ;;  %v2332_v1 = vld [vmem:[#allocation4 + $0x28] sm:$0xff] }
 0x3f8   : > { %v1144_v22 = vsel %vm1143_vm13, %v1135_v44, %v1142_v5 }
 0x3f9   : > { %vm1145_vm15 = vcmp.lt.s32.totalorder %v1141_v42, %v1144_v22 }
 0x3fa   : > { %v1146_v6 = vsel %vm1145_vm15, %v1141_v42, %v1144_v22 }
 0x3fb   : > { %vm1149_vm1 = vcmp.lt.s32.totalorder %v1146_v6, %v1148_v43 }
 0x3fc   : > { %v1150_v15 = vsel %vm1149_vm1, %v1146_v6, %v1148_v43  ;;  %v2333_v6 = vld [vmem:[#allocation4 + $0x88] sm:$0xff] }
 0x3fd   : > { %v1152_v46 = vshra.s32 %v1150_v15, 16  ;;  %v1151_v57 = vand.u32 65535, %v1150_v15 }
 0x3ff   : > { %v1154_v47 = vcvt.s32.f32 %v1152_v46  ;;  %v1153_v16 = vcvt.s32.f32 %v1151_v57  ;;  %v2335_v57 = vld [vmem:[#allocation4 + $0x90] sm:$0xff] }
 0x401   : > { %1155 = vmin.xlane.f32.xlu0 %v1154_v47 }
 0x48a   : > { %v1156_v8 = vpop.xlane.xlu0 %1155 }
 0x48b   : > { %vm1157_vm2 = vcmp.eq.f32.partialorder %v1154_v47, %v1156_v8  ;;  %v1162_v30 = vcvt.f32.s32 %v1156_v8 }
 0x48c   : > { %v1158_v33 = vsel %vm1157_vm2, %v1153_v16, inf  ;;  %v2336_v16 = vld [vmem:[#allocation4 + $0x38] sm:$0xff] }
 0x48d   : > { %1159 = vmin.xlane.f32.xlu1 %v1158_v33  ;;  %v1163_v51 = vshll.u32 %v1162_v30, 16 }
 0x516   : > { %v1160_v32 = vpop.xlane.xlu1 %1159 }
 0x517   : > { %v1161_v18 = vcvt.f32.s32 %v1160_v32 }
 0x519   : > { %v1164_v14 = vadd.s32 %v1163_v51, %v1161_v18  ;;  %v2337_v51 = vld [vmem:[#allocation4 + $0x40] sm:$0xff] }
 0x51b   : > { %2194 = vpush %v1164_v14  ;;  %v2338_v14 = vld [vmem:[#allocation4 + $0x98] sm:$0xff] }
 0x54c   : > { %s2195_s23 = spop %2194 }
 0x54d   : > { %v3030_v45 = vstv %s2195_s23 }
 0x54e   : > { %vm1167_vm4 = vcmp.eq.s32.totalorder %v2966_v12, %v3030_v45  ;;  %vm1168_vm5 = vcmp.eq.s32.totalorder %v2969_v19, %v3030_v45  ;;  %vm1169_vm6 = vcmp.eq.s32.totalorder %v2972_v39, %v3030_v45  ;;  %vm1170_vm7 = vcmp.eq.s32.totalorder %v2975_v63, %v3030_v45 }
 0x54f   : > { %v3039_v36 = vsel %vm1167_vm4, 1.0, %v3736_v4  ;;  %v3042_v40 = vsel %vm1168_vm5, 1.0, %v3736_v4  ;;  %v3047_v26 = vsel %vm1169_vm6, 1.0, %v3736_v4  ;;  %vm1171_vm8 = vcmp.eq.s32.totalorder %v2978_v3, %v3030_v45  ;;  %v2329_v3 = vld [vmem:[#allocation4 + $0x18] sm:$0xff] }
 0x550   : > { %v1213_v62 = vmul.f32 %v2324_v13, %v3039_v36  ;;  %v1214_v19 = vmul.f32 %v2325_v56, %v3042_v40  ;;  %v3054_v39 = vsel %vm1170_vm7, 1.0, %v3736_v4  ;;  %vm1172_vm9 = vcmp.eq.s32.totalorder %v2981_v11, %v3030_v45 }
 0x551   : > { %v1215_v63 = vmul.f32 %v2326_v48, %v3047_v26  ;;  %v3060_v52 = vsel %vm1171_vm8, 1.0, %v3736_v4  ;;  %v1394_v54 = vmul.f32 %v2327_v37, %v3039_v36  ;;  %v1395_v17 = vmul.f32 %v2328_v38, %v3042_v40 }
 0x552   : > { %v1227_v25 = vadd.f32 %v1214_v19, %v1213_v62  ;;  %vm1173_vm10 = vcmp.eq.s32.totalorder %v2984_v23, %v3030_v45  ;;  %vm1174_vm11 = vcmp.eq.s32.totalorder %v2987_v59, %v3030_v45  ;;  %v1216_v7 = vmul.f32 %v2329_v3, %v3054_v39  ;;  %v2334_v59 = vld [vmem:[#allocation4 + $0x30] sm:$0xff] }
 0x553   : > { %vm1175_vm12 = vcmp.eq.s32.totalorder %v2990_v2, %v3030_v45  ;;  %vm1176_vm13 = vcmp.eq.s32.totalorder %v2993_v10, %v3030_v45  ;;  %vm1177_vm14 = vcmp.eq.s32.totalorder %v2996_v9, %v3030_v45  ;;  %v3079_v23 = vsel %vm1172_vm9, 1.0, %v3736_v4 }
 0x554   : > { %v1228_v41 = vadd.f32 %v1227_v25, %v1215_v63  ;;  %vm1178_vm15 = vcmp.eq.s32.totalorder %v2999_v53, %v3030_v45  ;;  %vm1179_vm1 = vcmp.eq.s32.totalorder %v3002_v55, %v3030_v45  ;;  %v1217_v0 = vmul.f32 %v2330_v35, %v3060_v52  ;;  %v2339_v25 = vld [vmem:[#allocation4 + $0x48] sm:$0xff] }
 0x555   : > { %vm1180_vm2 = vcmp.eq.s32.totalorder %v3005_v58, %v3030_v45  ;;  %v3089_v50 = vsel %vm1173_vm10, 1.0, %v3736_v4  ;;  %v1396_v11 = vmul.f32 %v2331_v34, %v3047_v26  ;;  %v1408_v31 = vadd.f32 %v1395_v17, %v1394_v54  ;;  %v2340_v54 = vld [vmem:[#allocation4 + $0xa0] sm:$0xff]  ;;  %v2341_v17 = vld [vmem:[#allocation4 + $0x50] sm:$0xff]  ;;  %v2343_v45 = vld [vmem:[#allocation4 + $0xa8] sm:$0xff] }
 0x556   : > { %v1229_v27 = vadd.f32 %v1228_v41, %v1216_v7  ;;  %v1218_v44 = vmul.f32 %v2332_v1, %v3079_v23  ;;  %v1573_v24 = vmul.f32 %v3039_v36, %v2742_v60  ;;  %v1574_v5 = vmul.f32 %v3042_v40, %v2750_v61  ;;  %v2342_v7 = vld [vmem:[#allocation4 + $0x58] sm:$0xff] }
 0x557   : > { %v3101_v42 = vsel %vm1174_vm11, 1.0, %v3736_v4  ;;  %v3107_v22 = vsel %vm1175_vm12, 1.0, %v3736_v4  ;;  %v1397_v43 = vmul.f32 %v2333_v6, %v3054_v39  ;;  %v1409_v15 = vadd.f32 %v1408_v31, %v1396_v11  ;;  %v3739_v31 = vld [vmem:[#allocation26_spill] sm:$0xff] }
 0x558   : > { %v1230_v49 = vadd.f32 %v1229_v27, %v1217_v0  ;;  %v3114_v60 = vsel %vm1176_vm13, 1.0, %v3736_v4  ;;  %v3120_v61 = vsel %vm1177_vm14, 1.0, %v3736_v4  ;;  %v1219_v2 = vmul.f32 %v2334_v59, %v3089_v50  ;;  %v3738_v0 = vld [vmem:[#allocation17_spill] sm:$0xff] }
 0x559   : > { %v3127_v47 = vsel %vm1178_vm15, 1.0, %v3736_v4  ;;  %v3133_v10 = vsel %vm1179_vm1, 1.0, %v3736_v4  ;;  %v1398_v9 = vmul.f32 %v2335_v57, %v3060_v52  ;;  %v1410_v8 = vadd.f32 %v1409_v15, %v1397_v43  ;;  %v3740_v15 = vld [vmem:[#allocation18_spill] sm:$0xff]  ;;  %v3741_v57 = vld [vmem:[#allocation27_spill] sm:$0xff] }
 0x55a   : > { %v1231_v46 = vadd.f32 %v1230_v49, %v1218_v44  ;;  %v1220_v33 = vmul.f32 %v2336_v16, %v3101_v42  ;;  %v1575_v32 = vmul.f32 %v3047_v26, %v2752_v20  ;;  %v1587_v53 = vadd.f32 %v1574_v5, %v1573_v24  ;;  %v2344_v49 = vld [vmem:[#allocation4 + $0x68] sm:$0xff]  ;;  %v2345_v5 = vld [vmem:[#allocation4 + $0xb0] sm:$0xff]  ;;  %v2346_v16 = vld [vmem:[#allocation4 + $0x60] sm:$0xff] }
 0x55b   : > { %v1221_v18 = vmul.f32 %v2337_v51, %v3107_v22  ;;  %v1399_v55 = vmul.f32 %v2338_v14, %v3079_v23  ;;  %v1411_v13 = vadd.f32 %v1410_v8, %v1398_v9  ;;  %v1576_v62 = vmul.f32 %v3054_v39, %v2754_v29 }
 0x55c   : > { %v1232_v30 = vadd.f32 %v1231_v46, %v1219_v2  ;;  %v1588_v19 = vadd.f32 %v1587_v53, %v1575_v32  ;;  %v1755_v48 = vmul.f32 %v3039_v36, %v2853_v28  ;;  %v1756_v63 = vmul.f32 %v3042_v40, %v2858_v21  ;;  %v3737_v36 = vld [vmem:[#allocation16_spill] sm:$0xff]  ;;  %v3742_v53 = vld [vmem:[#allocation19_spill] sm:$0xff] }
 0x55d   : > { %v3151_v20 = vsel %vm1180_vm2, 1.0, %v3736_v4  ;;  %v1222_v37 = vmul.f32 %v2339_v25, %v3114_v60  ;;  %v1400_v29 = vmul.f32 %v2340_v54, %v3089_v50  ;;  %v1412_v38 = vadd.f32 %v1411_v13, %v1399_v55  ;;  %v3743_v55 = vld [vmem:[#allocation28_spill] sm:$0xff] }
 0x55e   : > { %v1233_v56 = vadd.f32 %v1232_v30, %v1220_v33  ;;  %v1223_v3 = vmul.f32 %v2341_v17, %v3120_v61  ;;  %v1577_v21 = vmul.f32 %v3060_v52, %v3737_v36  ;;  %v1589_v40 = vadd.f32 %v1588_v19, %v1576_v62  ;;  %v2347_v33 = vld [vmem:[#allocation4 + $0xb8] sm:$0xff] }
 0x55f   : > { %v1224_v58 = vmul.f32 %v2342_v7, %v3127_v47  ;;  %v1401_v41 = vmul.f32 %v2343_v45, %v3101_v42  ;;  %v1413_v35 = vadd.f32 %v1412_v38, %v1400_v29  ;;  %v1578_v27 = vmul.f32 %v3079_v23, %v3738_v0  ;;  %v3745_v29 = vld [vmem:[#allocation29_spill] sm:$0xff] }
 0x560   : > { %v1234_v28 = vadd.f32 %v1233_v56, %v1221_v18  ;;  %v1590_v11 = vadd.f32 %v1589_v40, %v1577_v21  ;;  %v1757_v1 = vmul.f32 %v3047_v26, %v3739_v31  ;;  %v1769_v44 = vadd.f32 %v1756_v63, %v1755_v48  ;;  %v3744_v63 = vld [vmem:[#allocation20_spill] sm:$0xff]  ;;  %v3746_v40 = vld [vmem:[#allocation21_spill] sm:$0xff] }
 0x561   : > { %v1226_v24 = vmul.f32 %v2344_v49, %v3151_v20  ;;  %v1402_v6 = vmul.f32 %v2345_v5, %v3107_v22  ;;  %v1414_v43 = vadd.f32 %v1413_v35, %v1401_v41  ;;  %v1579_v59 = vmul.f32 %v3089_v50, %v3740_v15  ;;  %v3747_v41 = vld [vmem:[#allocation30_spill] sm:$0xff] }
 0x562   : > { %v1235_v34 = vadd.f32 %v1234_v28, %v1222_v37  ;;  %v1591_v46 = vadd.f32 %v1590_v11, %v1578_v27  ;;  %v1758_v9 = vmul.f32 %v3054_v39, %v3741_v57  ;;  %v1770_v8 = vadd.f32 %v1769_v44, %v1757_v1  ;;  %v2348_v39 = vld [vmem:[#allocation4 + $0xc0] sm:$0xff]  ;;  %v2351_v27 = vld [vmem:[#allocation4 + $0xd0] sm:$0xff] }
 0x563   : > { %v1225_v26 = vmul.f32 %v2346_v16, %v3133_v10  ;;  %v1403_v30 = vmul.f32 %v2347_v33, %v3114_v60  ;;  %v1415_v32 = vadd.f32 %v1414_v43, %v1402_v6  ;;  %v1580_v51 = vmul.f32 %v3101_v42, %v3742_v53  ;;  %v3748_v11 = vld [vmem:[#allocation22_spill] sm:$0xff]  ;;  %v3749_v44 = vld [vmem:[#allocation31_spill] sm:$0xff]  ;;  %v3753_v16 = vld [vmem:[#allocation24_spill] sm:$0xff] }
 0x564   : > { %v1236_v2 = vadd.f32 %v1235_v34, %v1223_v3  ;;  %v1592_v14 = vadd.f32 %v1591_v46, %v1579_v59  ;;  %v1759_v13 = vmul.f32 %v3060_v52, %v3743_v55  ;;  %v1771_v62 = vadd.f32 %v1770_v8, %v1758_v9  ;;  %v2349_v3 = vld [vmem:[#allocation4 + $0xc8] sm:$0xff]  ;;  %v2350_v52 = vld [vmem:[#allocation4 + $0xd8] sm:$0xff] }
 0x565   : > { %v1239_v56 = vsel %vm660_vm3, %v1226_v24, 0.0  ;;  %v1404_v19 = vmul.f32 %v2348_v39, %v3120_v61  ;;  %v1416_v48 = vadd.f32 %v1415_v32, %v1403_v30  ;;  %v1581_v25 = vmul.f32 %v3107_v22, %v3744_v63  ;;  %v3750_v43 = vld [vmem:[#allocation23_spill] sm:$0xff]  ;;  %v3751_v59 = vld [vmem:[#allocation32_spill] sm:$0xff]  ;;  %v3752_v9 = vld [vmem:[#allocation25_spill] sm:$0xff] }
 0x566   : > { %v1237_v18 = vadd.f32 %v1236_v2, %v1224_v58  ;;  %v1593_v54 = vadd.f32 %v1592_v14, %v1580_v51  ;;  %v1760_v38 = vmul.f32 %v3079_v23, %v3745_v29  ;;  %v1772_v17 = vadd.f32 %v1771_v62, %v1759_v13  ;;  %v3754_v33 = vld [vmem:[#allocation33_spill] sm:$0xff]  ;;  %v3755_v51 = vld [vmem:[#allocation34_spill] sm:$0xff]  ;;  %v3756_v13 = vld [vmem:[#allocation35_spill] sm:$0xff] }
 0x567   : > { %v1405_v28 = vmul.f32 %v2349_v3, %v3127_v47  ;;  %v1407_v36 = vmul.f32 %v2350_v52, %v3151_v20  ;;  %v1417_v21 = vadd.f32 %v1416_v48, %v1404_v19  ;;  %v1582_v7 = vmul.f32 %v3114_v60, %v3746_v40  ;;  %v3757_v39 = vld [vmem:[#allocation37_spill] sm:$0xff]  ;;  %v3758_v48 = vld [vmem:[#allocation36_spill] sm:$0xff]  ;;  %v3219_v29 = vld [vmem:[%s2595_s25] sm:$0xff] }
 0x568   : > { %v1238_v37 = vadd.f32 %v1237_v18, %v1225_v26  ;;  %v1594_v45 = vadd.f32 %v1593_v54, %v1581_v25  ;;  %v1761_v35 = vmul.f32 %v3089_v50, %v3747_v41  ;;  %v1773_v0 = vadd.f32 %v1772_v17, %v1760_v38 }
 0x569   : > { %v1406_v23 = vmul.f32 %v2351_v27, %v3133_v10  ;;  %v1418_v34 = vadd.f32 %v1417_v21, %v1405_v28  ;;  %v1583_v31 = vmul.f32 %v3120_v61, %v3748_v11  ;;  %v1762_v49 = vmul.f32 %v3101_v42, %v3749_v44 }
 0x56a   : > { %v1240_v58 = vadd.f32 %v1239_v56, %v1238_v37  ;;  %v1595_v1 = vadd.f32 %v1594_v45, %v1582_v7  ;;  %v1774_v24 = vadd.f32 %v1773_v0, %v1761_v35  ;;  %v1420_v6 = vsel %vm660_vm3, %v1407_v36, 0.0 }
 0x56b   : > { %v1419_v5 = vadd.f32 %v1418_v34, %v1406_v23  ;;  %v1584_v50 = vmul.f32 %v3127_v47, %v3750_v43  ;;  %v1763_v2 = vmul.f32 %v3107_v22, %v3751_v59  ;;  %v1586_v8 = vmul.f32 %v3151_v20, %v3752_v9 }
 0x56c   : > { %1241 = vadd.xlane.f32.xlu0 %v1240_v58  ;;  %v1596_v15 = vadd.f32 %v1595_v1, %v1583_v31  ;;  %v1775_v46 = vadd.f32 %v1774_v24, %v1762_v49  ;;  %v1585_v26 = vmul.f32 %v3133_v10, %v3753_v16  ;;  %v1764_v30 = vmul.f32 %v3114_v60, %v3754_v33 }
 0x56d   : > { %v1421_v57 = vadd.f32 %v1420_v6, %v1419_v5  ;;  %v1765_v18 = vmul.f32 %v3120_v61, %v3755_v51  ;;  %v1599_v14 = vsel %vm660_vm3, %v1586_v8, 0.0  ;;  %v1766_v62 = vmul.f32 %v3127_v47, %v3756_v13 }
 0x56e   : > { %v1597_v42 = vadd.f32 %v1596_v15, %v1584_v50  ;;  %v1776_v32 = vadd.f32 %v1775_v46, %v1763_v2  ;;  %v1768_v19 = vmul.f32 %v3151_v20, %v3757_v39  ;;  %v1767_v60 = vmul.f32 %v3133_v10, %v3758_v48 }
 0x56f   : > { %vm1962_vm7 = vcmask 39936   ;;  %vm1209_vm12 = vcmp.eq.s32.totalorder %v2966_v12, 5  ;;  %vm1288_vm14 = vcmask 31744  }
 0x570   : > { %1422 = vadd.xlane.f32.xlu0 %v1421_v57  ;;  %v1598_v53 = vadd.f32 %v1597_v42, %v1585_v26  ;;  %v1777_v22 = vadd.f32 %v1776_v32, %v1764_v30  ;;  %v1781_v37 = vsel %vm660_vm3, %v1768_v19, 0.0  ;;  %v1963_v48 = vsel %vm1962_vm7, %v3219_v29, -inf }
 0x571   : > { %vm2003_vm7 = vcmp.eq.s32.totalorder %v2966_v12, 3 }
 0x572   : > { %v1600_v55 = vadd.f32 %v1599_v14, %v1598_v53  ;;  %v1778_v56 = vadd.f32 %v1777_v22, %v1765_v18 }
 0x574   : > { %v1779_v63 = vadd.f32 %v1778_v56, %v1766_v62 }
 0x576   : > { %v1780_v25 = vadd.f32 %v1779_v63, %v1767_v60  ;;  %v3759_v60 = vld [vmem:[#allocation12_spill] sm:$0xff]  ;;  %v1426_v63 = vstv %s3249_s17 }
 0x577   : > { %2306 = vlog2.f32 %v3759_v60  ;;  %vm1427_vm8 = vcmp.eq.s32.totalorder %v2966_v12, %v1426_v63  ;;  %v3325_v63 = vld [vmem:[%s2601_s9] sm:$0xff]  ;;  %s2476_s9 = smov 3  }
 0x578   : > { %v3214_v54 = vadd.f32 %v1781_v37, %v1780_v25  ;;  %v1245_v25 = vstv %s3251_s18  ;;  %v1605_v37 = vstv %s3253_s20 }
 0x579   : > { %vm1246_vm9 = vcmp.eq.s32.totalorder %v2966_v12, %v1245_v25  ;;  %vm1606_vm10 = vcmp.eq.s32.totalorder %v2966_v12, %v1605_v37 }
 0x5f5   : > { %v3216_v61 = vpop.xlane.xlu0 %1241 }
 0x5f6   : > { %v1252_v47 = vmul.f32 %v3219_v29, %v3216_v61  ;;  %v1287_v25 = vmul.f32 %v3325_v63, %v3216_v61 }
 0x5f8   : > { %v1253_v38 = vsel %vm310_vm0, %v1252_v47, 0.0  ;;  %v1289_v37 = vsel %vm1288_vm14, %v1287_v25, 0.0 }
 0x5f9   : > { %v1254_v17 = vrot.slane %v1253_v38, 4  ;;  %v3225_v40 = vpop.xlane.xlu0 %1422 }
 0x5fa   : > { %v1433_v7 = vmul.f32 %v3219_v29, %v3225_v40 }
 0x5fb   : > { %v1255_v20 = vadd.f32 %v1254_v17, %v1253_v38  ;;  %v2172_v38 = vsel %vm1427_vm8, 1.0, %v3736_v4  ;;  %v2171_v17 = vsel %vm1246_vm9, 1.0, %v3736_v4  ;;  %vm2009_vm8 = vcmp.eq.s32.totalorder %v2966_v12, 4 }
 0x5fc   : > { %v1434_v58 = vsel %vm310_vm0, %v1433_v7, 0.0  ;;  %v1249_v7 = vmul.f32 %v2171_v17, %v3216_v61 }
 0x5fd   : > { %v1256_v3 = vrot.slane %v1255_v20, 2  ;;  %v1435_v45 = vrot.slane %v1434_v58, 4 }
 0x5ff   : > { %v1257_v28 = vadd.f32 %v1256_v3, %v1255_v20  ;;  %v1436_v41 = vadd.f32 %v1435_v45, %v1434_v58  ;;  %v2173_v20 = vsel %vm1606_vm10, 1.0, %v3736_v4 }
 0x601   : > { %v1258_v10 = vrot.slane %v1257_v28, 1  ;;  %v1437_v35 = vrot.slane %v1436_v41, 2 }
 0x603   : > { %v1259_v52 = vadd.f32 %v1258_v10, %v1257_v28  ;;  %v1438_v0 = vadd.f32 %v1437_v35, %v1436_v41  ;;  %v1430_v28 = vmul.f32 %v2172_v38, %v3225_v40  ;;  %v1432_v10 = vadd.f32 %v3225_v40, %v3216_v61 }
 0x605   : > { %v1260_v36 = vsel %vm310_vm0, %v1259_v52, -inf  ;;  %v1439_v11 = vrot.slane %v1438_v0, 1 }
 0x606   : > { %1261 = vmax.xlane.f32.xlu1 %v1260_v36 }
 0x607   : > { %v1440_v44 = vadd.f32 %v1439_v11, %v1438_v0 }
 0x609   : > { %v1441_v49 = vsel %vm310_vm0, %v1440_v44, -inf }
 0x68f   : > { %v1262_v21 = vpop.xlane.xlu1 %1261 }
 0x690   : > { %2196 = vpush %v1262_v21  ;;  %v2307_v21 = vpop.eup %2306 }
 0x6c1   : > { %s2197_s24 = spop %2196 }
 0x6c2   : > { %v1264_v27 = vstv %s2197_s24 }
 0x6c3   : > { %vm1265_vm3 = vcmp.eq.f32.partialorder %v1259_v52, %v1264_v27  ;;  %v323_v27 = vmul.f32 0.6931472, %v2307_v21 }
 0x6c4   : > { %v1266_v23 = vsel %vm1265_vm3, %v2966_v12, 6  ;;  %vm1973_vm3 = vcmask 7168  }
 0x6c5   : > { %v1267_v34 = vsel %vm310_vm0, %v1266_v23, 2147483647  ;;  %v1431_v23 = vadd.f32 %v1430_v28, %v1249_v7 }
 0x6c6   : > { %v1269_v31 = vshra.s32 %v1267_v34, 16  ;;  %v1268_v24 = vand.u32 65535, %v1267_v34 }
 0x6c8   : > { %v1271_v1 = vcvt.s32.f32 %v1269_v31  ;;  %v1270_v6 = vcvt.s32.f32 %v1268_v24 }
 0x6ca   : > { %1272 = vmin.xlane.f32.xlu1 %v1271_v1 }
 0x6ce   : > { %1442 = vmax.xlane.f32.xlu1 %v1441_v49 }
 0x753   : > { %v1273_v5 = vpop.xlane.xlu1 %1272 }
 0x754   : > { %vm1274_vm4 = vcmp.eq.f32.partialorder %v1271_v1, %v1273_v5  ;;  %v1279_v50 = vcvt.f32.s32 %v1273_v5  ;;  %v3284_v1 = vsel %vm1209_vm12, 1.0, %v3736_v4  ;;  %v3760_v5 = vld [vmem:[#allocation11_spill] sm:$0xff] }
 0x755   : > { %v1275_v43 = vsel %vm1274_vm4, %v1270_v6, inf  ;;  %v324_v6 = vadd.f32 %v323_v27, %v3760_v5  ;;  %vm1986_vm4 = vcmp.eq.s32.totalorder %v2966_v12, 0 }
 0x756   : > { %1276 = vmin.xlane.f32.xlu0 %v1275_v43  ;;  %v1280_v59 = vshll.u32 %v1279_v50, 16  ;;  %v2473_v50 = vmov 1.0  }
 0x757   : > { %v1443_v57 = vpop.xlane.xlu1 %1442 }
 0x75a   : > { %1601 = vadd.xlane.f32.xlu0 %v1600_v55 }
 0x7df   : > { %v1277_v15 = vpop.xlane.xlu0 %1276 }
 0x7e0   : > { %v1278_v2 = vcvt.f32.s32 %v1277_v15  ;;  %v1210_v15 = vsel %vm1209_vm12, 0.1, %v2473_v50 }
 0x7e2   : > { %v1281_v46 = vadd.s32 %v1280_v59, %v1278_v2  ;;  %v325_v2 = vsub.f32 %v324_v6, %v3219_v29 }
 0x7e3   : > { %v3233_v9 = vpop.xlane.xlu0 %1601 }
 0x7e4   : > { %2198 = vpush %v1281_v46  ;;  %v1612_v8 = vmul.f32 %v3219_v29, %v3233_v9  ;;  %v1609_v45 = vmul.f32 %v2173_v20, %v3233_v9  ;;  %v1611_v41 = vadd.f32 %v3233_v9, %v1432_v10 }
 0x7e5   : > { %2200 = vpush %v1443_v57 }
 0x7e6   : > { %v1613_v16 = vsel %vm310_vm0, %v1612_v8, 0.0 }
 0x7e7   : > { %v1614_v26 = vrot.slane %v1613_v16, 4 }
 0x7e9   : > { %v1615_v42 = vadd.f32 %v1614_v26, %v1613_v16 }
 0x7eb   : > { %v1616_v33 = vrot.slane %v1615_v42, 2 }
 0x7ed   : > { %v1617_v30 = vadd.f32 %v1616_v33, %v1615_v42 }
 0x7ef   : > { %v1618_v18 = vrot.slane %v1617_v30, 1 }
 0x7f1   : > { %v3242_v55 = vadd.f32 %v1618_v18, %v1617_v30 }
 0x7f3   : > { %v1620_v13 = vsel %vm310_vm0, %v3242_v55, -inf }
 0x815   : > { %s3238_s25 = spop %2198 }
 0x816   : > { %s2201_s30 = spop %2200  ;;  %p1283_p11 = scmp.eq.s32.totalorder %s3238_s25, %s3251_s18 }
 0x817   : > { %v1445_v32 = vstv %s2201_s30  ;;  %s2474_s25 = smov 1  }
 0x818   : > { %vm1446_vm5 = vcmp.eq.f32.partialorder %v1440_v44, %v1445_v32  ;;  %v1610_v44 = vadd.f32 %v1609_v45, %v1431_v23  ;;  %s1284_s23 = scalar_select %p1283_p11, 1.0, 0.0 }
 0x819   : > { %v1447_v53 = vsel %vm1446_vm5, %v2966_v12, 6  ;;  %vm1992_vm5 = vcmp.eq.s32.totalorder %v2966_v12, 1 }
 0x81a   : > { %v1448_v51 = vsel %vm310_vm0, %v1447_v53, 2147483647 }
 0x81b   : > { %v1450_v22 = vshra.s32 %v1448_v51, 16  ;;  %v1449_v62 = vand.u32 65535, %v1448_v51  ;;  %v1285_v51 = vstv %s1284_s23 }
 0x81d   : > { %v1452_v14 = vcvt.s32.f32 %v1450_v22  ;;  %v1451_v39 = vcvt.s32.f32 %v1449_v62 }
 0x81f   : > { %1453 = vmin.xlane.f32.xlu1 %v1452_v14 }
 0x823   : > { %1621 = vmax.xlane.f32.xlu1 %v1620_v13 }
 0x8a8   : > { %v1454_v56 = vpop.xlane.xlu1 %1453 }
 0x8a9   : > { %vm1455_vm6 = vcmp.eq.f32.partialorder %v1452_v14, %v1454_v56  ;;  %v1460_v47 = vcvt.f32.s32 %v1454_v56 }
 0x8aa   : > { %v1456_v19 = vsel %vm1455_vm6, %v1451_v39, inf  ;;  %vm1998_vm6 = vcmp.eq.s32.totalorder %v2966_v12, 2 }
 0x8ab   : > { %1457 = vmin.xlane.f32.xlu0 %v1456_v19  ;;  %v1461_v52 = vshll.u32 %v1460_v47, 16 }
 0x8ac   : > { %v1622_v34 = vpop.xlane.xlu1 %1621 }
 0x8af   : > { %1783 = vadd.xlane.f32.xlu0 %v3214_v54  ;;  %v1787_v54 = vstv %s3255_s21 }
 0x8b0   : > { %vm1788_vm11 = vcmp.eq.s32.totalorder %v2966_v12, %v1787_v54  ;;  %v1290_v54 = vrot.slane %v1289_v37, 4 }
 0x8b1   : > { %v2174_v58 = vsel %vm1788_vm11, 1.0, %v3736_v4 }
 0x8b2   : > { %v1291_v47 = vadd.f32 %v1290_v54, %v1289_v37 }
 0x8b3   : > { %1964 = vmax.xlane.f32.xlu0 %v1963_v48 }
 0x8b4   : > { %v1292_v38 = vrot.slane %v1291_v47, 2 }
 0x8b6   : > { %v1293_v20 = vadd.f32 %v1292_v38, %v1291_v47 }
 0x934   : > { %v1458_v3 = vpop.xlane.xlu0 %1457 }
 0x935   : > { %v1459_v36 = vcvt.f32.s32 %v1458_v3 }
 0x937   : > { %v1462_v35 = vadd.s32 %v1461_v52, %v1459_v36  ;;  %v1294_v52 = vrot.slane %v1293_v20, 1 }
 0x938   : > { %v3277_v0 = vpop.xlane.xlu0 %1783 }
 0x939   : > { %v1791_v11 = vmul.f32 %v2174_v58, %v3277_v0  ;;  %v1793_v31 = vadd.f32 %v3277_v0, %v1611_v41  ;;  %2202 = vpush %v1462_v35  ;;  %v1794_v8 = vmul.f32 %v3219_v29, %v3277_v0  ;;  %v1295_v21 = vadd.f32 %v1294_v52, %v1293_v20 }
 0x93a   : > { %2204 = vpush %v1622_v34  ;;  %v3761_v34 = vld [vmem:[#allocation14_spill] sm:$0xff] }
 0x93b   : > { %v1937_v49 = vsub.f32 1.0, %v1793_v31  ;;  %v1792_v24 = vadd.f32 %v1791_v11, %v1610_v44  ;;  %v1795_v16 = vsel %vm310_vm0, %v1794_v8, 0.0  ;;  %v1333_v23 = vmul.f32 0.5, %v1295_v21 }
 0x93c   : > { %v1796_v26 = vrot.slane %v1795_v16, 4  ;;  %v3345_v11 = vrot.slane %v3761_v34, 1  ;;  %v3349_v31 = vpop.xlane.xlu0 %1964  ;;  %v1468_v8 = vmul.f32 %v3325_v63, %v3225_v40 }
 0x93d   : > { %v1938_v43 = vmul.f32 %v3284_v1, %v1937_v49  ;;  %vm1966_vm1 = vcmp.ge.f32.partialorder %v3349_v31, %v3219_v29  ;;  %v1647_v29 = vmul.f32 %v3325_v63, %v3233_v9 }
 0x93e   : > { %v1797_v42 = vadd.f32 %v1796_v26, %v1795_v16  ;;  %v1469_v16 = vsel %vm1288_vm14, %v1468_v8, 0.0 }
 0x93f   : > { %v1939_v59 = vadd.f32 %v1938_v43, %v1792_v24  ;;  %v1470_v26 = vrot.slane %v1469_v16, 4 }
 0x940   : > { %v1798_v33 = vrot.slane %v1797_v42, 2 }
 0x941   : > { %v3291_v46 = vmul.f32 %v1939_v59, %v1210_v15  ;;  %v3762_v59 = vld [vmem:[#allocation13_spill] sm:$0xff] }
 0x942   : > { %v1799_v30 = vadd.f32 %v1798_v33, %v1797_v42  ;;  %v1471_v42 = vadd.f32 %v1470_v26, %v1469_v16 }
 0x943   : > { %v3294_v57 = vmul.f32 %v3291_v46, %v325_v2  ;;  %v3363_v2 = vrot.slane %v3762_v59, 1 }
 0x944   : > { %v1800_v14 = vrot.slane %v1799_v30, 1 }
 0x946   : > { %v3307_v39 = vadd.f32 %v1800_v14, %v1799_v30  ;;  %v1472_v30 = vrot.slane %v1471_v42, 2 }
 0x948   : > { %v1802_v19 = vsel %vm310_vm0, %v3307_v39, -inf }
 0x96a   : > { %s2203_s24 = spop %2202 }
 0x96b   : > { %p1464_p0 = scmp.eq.s32.totalorder %s2203_s24, %s3249_s17  ;;  %s2205_s30 = spop %2204 }
 0x96c   : > { %v1624_v32 = vstv %s2205_s30 }
 0x96d   : > { %s1465_s8 = scalar_select %p1464_p0, 1.0, 0.0  ;;  %vm1625_vm13 = vcmp.eq.f32.partialorder %v3242_v55, %v1624_v32  ;;  %v3312_v55 = vld [vmem:[%s2633_s22] sm:$0xf] }
 0x96e   : > { %v1626_v53 = vsel %vm1625_vm13, %v2966_v12, 6  ;;  %v3315_v48 = vrot.slane %v3312_v55, 1  ;;  %v3320_v60 = vrot.slane %v3312_v55, 2  ;;  %v3339_v35 = vrot.slane %v3312_v55, 3  ;;  %s2477_s22 = smov 125  }
 0x96f   : > { %v1466_v18 = vstv %s1465_s8  ;;  %v1627_v22 = vsel %vm310_vm0, %v1626_v53, 2147483647  ;;  %v1296_v33 = vsub.f32 %v1295_v21, %v3312_v55  ;;  %v1473_v53 = vadd.f32 %v1472_v30, %v1471_v42  ;;  %s274_s8 = sand.u32 1, %s2451_s27  }
 0x970   : > { %v3305_v13 = vadd.f32 %v1466_v18, %v1285_v51  ;;  %v1629_v62 = vshra.s32 %v1627_v22, 16  ;;  %v1628_v17 = vand.u32 65535, %v1627_v22 }
 0x971   : > { %v1297_v32 = vand.u32 2147483647, %v1296_v33  ;;  %v1474_v14 = vrot.slane %v1473_v53, 1 }
 0x972   : > { %v1631_v56 = vcvt.s32.f32 %v1629_v62  ;;  %v1630_v28 = vcvt.s32.f32 %v1628_v17 }
 0x974   : > { %1632 = vmin.xlane.f32.xlu1 %v1631_v56 }
 0x978   : > { %1803 = vmax.xlane.f32.xlu1 %v1802_v19  ;;  %v3373_v19 = vadd.f32 %v1474_v14, %v1473_v53  ;;  %v3763_v53 = vld [vmem:[#allocation15_spill] sm:$0xff] }
 0x97a   : > { %v1481_v54 = vsub.f32 %v3373_v19, %v3312_v55 }
 0x989   : > { %1300 = vrot.lane.b32.xlu1 %v3315_v48, %s2474_s25 }
 0x98d   : > { %1311 = vrot.lane.b32.xlu1 %v3320_v60, %s2475_s15 }
 0x9fd   : > { %v3330_v3 = vpop.xlane.xlu1 %1632 }
 0x9fe   : > { %vm1634_vm15 = vcmp.eq.f32.partialorder %v1631_v56, %v3330_v3 }
 0x9ff   : > { %v3333_v10 = vsel %vm1634_vm15, %v1630_v28, inf }
 0xa01   : > { %v3335_v36 = vpop.xlane.xlu1 %1803 }
 0xa05   : > { %v1301_v61 = vpop.permute.xlu1 %1300 }
 0xa06   : > { %v1303_v7 = vsub.f32 %v1295_v21, %v1301_v61 }
 0xa08   : > { %v1304_v58 = vand.u32 2147483647, %v1303_v7  ;;  %v1482_v7 = vand.u32 2147483647, %v1481_v54 }
 0xa09   : > { %v1312_v45 = vpop.permute.xlu1 %1311 }
 0xa0a   : > { %v1314_v41 = vsub.f32 %v1295_v21, %v1312_v45  ;;  %1306 = vrot.lane.b32.xlu0 %v1304_v58, %s2467_s14  ;;  %v1484_v58 = vrot.slane %v1482_v7, 1  ;;  %v1510_v45 = vmul.f32 0.5, %v3373_v19 }
 0xa0c   : > { %v1315_v27 = vand.u32 2147483647, %v1314_v41  ;;  %v1829_v41 = vmul.f32 %v3325_v63, %v3277_v0  ;;  %v2175_v0 = vsel %vm1966_vm1, 1.0, %v3736_v4 }
 0xa0e   : > { %1322 = vrot.lane.b32.xlu0 %v3339_v35, %s2476_s9  ;;  %1317 = vrot.lane.b32.xlu1 %v1315_v27, %s2465_s13  ;;  %v1830_v27 = vsel %vm1288_vm14, %v1829_v41, 0.0 }
 0xa12   : > { %1335 = vrot.lane.b32.xlu0 %v1333_v23, %s2465_s13  ;;  %v1831_v23 = vrot.slane %v1830_v27, 4 }
 0xa16   : > { %1352 = vrot.lane.b32.xlu0 %v3345_v11, %s2474_s25 }
 0xa7c   : > { %v1307_v44 = vpop.permute.xlu0 %1306 }
 0xa7d   : > { %v1309_v18 = vadd.f32 %v1307_v44, %v1297_v32  ;;  %v1832_v44 = vadd.f32 %v1831_v23, %v1830_v27 }
 0xa80   : > { %v1323_v49 = vpop.permute.xlu0 %1322  ;;  %v1318_v51 = vpop.permute.xlu1 %1317 }
 0xa81   : > { %v1325_v24 = vsub.f32 %v1295_v21, %v1323_v49  ;;  %v1320_v22 = vadd.f32 %v1318_v51, %v1309_v18  ;;  %v1833_v49 = vrot.slane %v1832_v44, 2 }
 0xa83   : > { %v1326_v5 = vand.u32 2147483647, %v1325_v24  ;;  %v1834_v24 = vadd.f32 %v1833_v49, %v1832_v44 }
 0xa84   : > { %v1336_v6 = vpop.permute.xlu0 %1335 }
 0xa85   : > { %v3351_v43 = vsub.f32 %v1295_v21, %v1336_v6  ;;  %v3353_v50 = vadd.f32 %v1336_v6, %v1295_v21  ;;  %1328 = vrot.lane.b32.xlu1 %v1326_v5, %s2477_s22  ;;  %v1835_v5 = vrot.slane %v1834_v24, 1 }
 0xa87   : > { %v3358_v15 = vsub.f32 %v3353_v50, %v3351_v43  ;;  %v3400_v6 = vadd.f32 %v1835_v5, %v1834_v24  ;;  %v1375_v31 = vmin.f32 %v3351_v43, %v3762_v59 }
 0xa88   : > { %v1353_v40 = vpop.permute.xlu0 %1352 }
 0xa89   : > { %1342 = vrot.lane.b32.xlu1 %v3358_v15, %s2467_s14  ;;  %v1355_v47 = vmin.f32 %v3353_v50, %v1353_v40  ;;  %v1378_v38 = vmax.f32 %v3353_v50, %v1353_v40  ;;  %v1871_v8 = vmul.f32 0.5, %v3400_v6 }
 0xa8d   : > { %1358 = vrot.lane.b32.xlu1 %v3363_v2, %s2474_s25 }
 0xaf7   : > { %v1329_v62 = vpop.permute.xlu1 %1328 }
 0xaf8   : > { %v3371_v56 = vadd.f32 %v1329_v62, %v1320_v22 }
 0xafb   : > { %v1343_v25 = vpop.permute.xlu1 %1342 }
 0xafc   : > { %v1345_v9 = vmul.f32 %v1343_v25, %v3358_v15 }
 0xafe   : > { %v1369_v51 = vadd.f32 %v1345_v9, %v3763_v53 }
 0xaff   : > { %v1359_v37 = vpop.permute.xlu1 %1358 }
 0xb00   : > { %v1361_v17 = vmax.f32 %v3351_v43, %v1359_v37  ;;  %v1379_v20 = vmin.f32 %v3351_v43, %v1359_v37 }
 0xb02   : > { %v1362_v28 = vsub.f32 %v1355_v47, %v1361_v17  ;;  %v1380_v52 = vsub.f32 %v1378_v38, %v1379_v20 }
 0xb04   : > { %v1381_v21 = vmax.f32 %v1380_v52, 0.0  ;;  %v1363_v61 = vmax.f32 %v1362_v28, 0.0 }
 0xb06   : > { %1383 = vrot.lane.b32.xlu1 %v1381_v21, %s2467_s14  ;;  %1365 = vrot.lane.b32.xlu0 %v1363_v61, %s2467_s14 }
 0xb0a   : > { %1485 = vrot.lane.b32.xlu1 %v1484_v58, %s2467_s14  ;;  %1476 = vrot.lane.b32.xlu0 %v3312_v55, %s2467_s14 }
 0xb0e   : > { %1489 = vrot.lane.b32.xlu0 %v3320_v60, %s2474_s25 }
 0xb12   : > { %1499 = vrot.lane.b32.xlu0 %v3339_v35, %s2475_s15  ;;  %s275_s15 = scalar_lea.vmem [#allocation7], %s274_s8 }
 0xb13   : > { %s2040_s9 = sshll.u32 %s275_s15, 4  ;;  %s2041_s9 = int_to_ptr.vmem [resolvable:$true] %s2040_s9 }
 0xb16   : > { %1512 = vrot.lane.b32.xlu0 %v1510_v45, %s2465_s13 }
 0xb1a   : > { %1523 = vrot.lane.b32.xlu0 %v3761_v34, %s2467_s14 }
 0xb1e   : > { %1712 = vrot.lane.b32.xlu0 %v3345_v11, %s2467_s14 }
 0xb3d   : > { %1636 = vmin.xlane.f32.xlu0 %v3333_v10  ;;  %v1374_v10 = vmax.f32 %v3353_v50, %v3761_v34 }
 0xb3f   : > { %v1376_v16 = vsub.f32 %v1374_v10, %v1375_v31 }
 0xb41   : > { %v1377_v42 = vmax.f32 %v1376_v16, 0.0 }
 0xb53   : > { %1873 = vrot.lane.b32.xlu0 %v1871_v8, %s2465_s13 }
 0xb57   : > { %1898 = vrot.lane.b32.xlu0 %v3363_v2, %s2465_s13 }
 0xb5b   : > { %1970 = vrot.lane.b32.xlu0 %v2175_v0, %s2478_s16 }
 0xb5f   : > { %1660 = vrot.lane.b32.xlu0 %v3315_v48, %s2467_s14 }
 0xb63   : > { %1842 = vrot.lane.b32.xlu0 %v3315_v48, %s2465_s13  ;;  %v1346_v48 = vmin.f32 %v3353_v50, %v3761_v34 }
 0xb67   : > { %1678 = vrot.lane.b32.xlu0 %v3339_v35, %s2474_s25  ;;  %v1347_v35 = vmax.f32 %v3351_v43, %v3762_v59  ;;  %s2182_s25 = sshll.u32 %s2539_s29, 4 }
 0xb69   : > { %v1348_v26 = vsub.f32 %v1346_v48, %v1347_v35 }
 0xb6b   : > { %1852 = vrot.lane.b32.xlu0 %v3320_v60, %s2467_s14  ;;  %v1648_v60 = vsel %vm1288_vm14, %v1647_v29, 0.0  ;;  %v1349_v33 = vmax.f32 %v1348_v26, 0.0 }
 0xb6c   : > { %v1649_v63 = vrot.slane %v1648_v60, 4 }
 0xb6e   : > { %v1650_v14 = vadd.f32 %v1649_v63, %v1648_v60  ;;  %v1639_v63 = vcvt.f32.s32 %v3330_v3 }
 0xb6f   : > { %1527 = vrot.lane.b32.xlu0 %v3762_v59, %s2467_s14 }
 0xb70   : > { %v1651_v54 = vrot.slane %v1650_v14, 2 }
 0xb72   : > { %v1652_v47 = vadd.f32 %v1651_v54, %v1650_v14 }
 0xb74   : > { %v1653_v28 = vrot.slane %v1652_v47, 1 }
 0xb76   : > { %v3444_v45 = vadd.f32 %v1653_v28, %v1652_v47 }
 0xb78   : > { %v1384_v30 = vpop.permute.xlu1 %1383  ;;  %v1366_v32 = vpop.permute.xlu0 %1365  ;;  %v1689_v10 = vmul.f32 0.5, %v3444_v45 }
 0xb79   : > { %v1386_v18 = vmul.f32 %v1384_v30, %v1377_v42  ;;  %v1368_v22 = vmul.f32 %v1366_v32, %v1349_v33  ;;  %v1640_v33 = vshll.u32 %v1639_v63, 16 }
 0xb7b   : > { %v1388_v50 = vadd.f32 1e-07, %v1386_v18  ;;  %v1370_v62 = vsub.f32 %v1369_v51, %v1368_v22 }
 0xb7c   : > { %v3432_v40 = vpop.permute.xlu0 %1476 }
 0xb7d   : > { %2308 = vrcp.f32 %v1388_v50  ;;  %v1371_v43 = vadd.f32 1e-07, %v1370_v62  ;;  %v1387_v37 = vsub.f32 %v1386_v18, %v1370_v62 }
 0xb7f   : > { %2310 = vrcp.f32 %v1371_v43  ;;  %v1486_v43 = vpop.permute.xlu1 %1485 }
 0xb80   : > { %v1490_v15 = vpop.permute.xlu0 %1489 }
 0xb81   : > { %v1492_v25 = vsub.f32 %v3373_v19, %v1490_v15 }
 0xb83   : > { %v1493_v38 = vand.u32 2147483647, %v1492_v25 }
 0xb84   : > { %v1500_v17 = vpop.permute.xlu0 %1499 }
 0xb85   : > { %v1502_v20 = vsub.f32 %v3373_v19, %v1500_v17  ;;  %1495 = vrot.lane.b32.xlu1 %v1493_v38, %s2465_s13 }
 0xb87   : > { %v1503_v52 = vand.u32 2147483647, %v1502_v20 }
 0xb88   : > { %v1513_v21 = vpop.permute.xlu0 %1512 }
 0xb89   : > { %v3438_v61 = vsub.f32 %v3373_v19, %v1513_v21  ;;  %v3441_v7 = vadd.f32 %v1513_v21, %v3373_v19  ;;  %1505 = vrot.lane.b32.xlu1 %v1503_v52, %s2477_s22 }
 0xb8a   : > { %v2309_v58 = vpop.eup %2308 }
 0xb8b   : > { %v3446_v41 = vmul.f32 %v2309_v58, %v1387_v37  ;;  %v3450_v27 = vsub.f32 %v3441_v7, %v3438_v61  ;;  %v1534_v23 = vmin.f32 %v3441_v7, %v3345_v11  ;;  %v1536_v44 = vmax.f32 %v3438_v61, %v3363_v2 }
 0xb8c   : > { %v2311_v49 = vpop.eup %2310  ;;  %v3456_v24 = vpop.permute.xlu0 %1523  ;;  %v1557_v35 = vmax.f32 %v3441_v7, %v3345_v11  ;;  %v1558_v60 = vmin.f32 %v3438_v61, %v3363_v2 }
 0xb8d   : > { %v3458_v5 = vmul.f32 %v2311_v49, %v1368_v22  ;;  %v1526_v8 = vmin.f32 %v3441_v7, %v3456_v24  ;;  %v1553_v0 = vmax.f32 %v3441_v7, %v3456_v24  ;;  %1519 = vrot.lane.b32.xlu1 %v3450_v27, %s2467_s14  ;;  %v1537_v29 = vsub.f32 %v1534_v23, %v1536_v44 }
 0xb8e   : > { %v1559_v16 = vsub.f32 %v1557_v35, %v1558_v60 }
 0xb8f   : > { %v1391_v31 = vsub.f32 %v3458_v5, %v3446_v41  ;;  %v1538_v48 = vmax.f32 %v1537_v29, 0.0 }
 0xb90   : > { %v1560_v26 = vmax.f32 %v1559_v16, 0.0  ;;  %v1713_v9 = vpop.permute.xlu0 %1712 }
 0xb91   : > { %1540 = vrot.lane.b32.xlu0 %v1538_v48, %s2467_s14  ;;  %1691 = vrot.lane.b32.xlu1 %v1689_v10, %s2465_s13 }
 0xb95   : > { %1545 = vrot.lane.b32.xlu0 %v3763_v53, %s2467_s14  ;;  %1716 = vrot.lane.b32.xlu1 %v3363_v2, %s2467_s14 }
 0xb99   : > { %1562 = vrot.lane.b32.xlu0 %v1560_v26, %s2467_s14  ;;  %1894 = vrot.lane.b32.xlu1 %v3345_v11, %s2465_s13 }
 0xb9d   : > { %1655 = vrot.lane.b32.xlu1 %v3312_v55, %s2465_s13 }
 0xba1   : > { %1888 = vrot.lane.b32.xlu1 %v3762_v59, %s2477_s22 }
 0xbc6   : > { %v1637_v42 = vpop.xlane.xlu0 %1636 }
 0xbc7   : > { %v1638_v30 = vcvt.f32.s32 %v1637_v42 }
 0xbc9   : > { %v1641_v32 = vadd.s32 %v1640_v33, %v1638_v30 }
 0xbca   : > { %v1874_v2 = vpop.permute.xlu0 %1873 }
 0xbcb   : > { %2206 = vpush %v1641_v32  ;;  %v3538_v24 = vadd.f32 %v1874_v2, %v3400_v6 }
 0xbcc   : > { %2208 = vpush %v3335_v36  ;;  %v1479_v36 = vsub.f32 %v3373_v19, %v3432_v40 }
 0xbce   : > { %v3488_v51 = vpop.permute.xlu0 %1898  ;;  %v1480_v62 = vand.u32 2147483647, %v1479_v36 }
 0xbd0   : > { %v1488_v54 = vadd.f32 %v1486_v43, %v1480_v62 }
 0xbd2   : > { %v3490_v11 = vpop.permute.xlu0 %1970 }
 0xbd3   : > { %v1974_v5 = vsel %vm1973_vm3, %v3490_v11, 0.0 }
 0xbd6   : > { %v1661_v18 = vpop.permute.xlu0 %1660 }
 0xbd7   : > { %v1663_v22 = vsub.f32 %v3444_v45, %v1661_v18 }
 0xbd9   : > { %v1664_v14 = vand.u32 2147483647, %v1663_v22 }
 0xbda   : > { %v3500_v3 = vpop.permute.xlu0 %1842 }
 0xbdb   : > { %1666 = vrot.lane.b32.xlu0 %v1664_v14, %s2467_s14 }
 0xbde   : > { %v3504_v50 = vpop.permute.xlu0 %1678 }
 0xbdf   : > { %1702 = vrot.lane.b32.xlu0 %v3761_v34, %s2465_s13 }
 0xbe2   : > { %v3506_v37 = vpop.permute.xlu0 %1852 }
 0xbe3   : > { %1706 = vrot.lane.b32.xlu0 %v3762_v59, %s2465_s13 }
 0xbe6   : > { %v1528_v47 = vpop.permute.xlu0 %1527 }
 0xbe7   : > { %1884 = vrot.lane.b32.xlu0 %v3761_v34, %s2477_s22  ;;  %v1530_v34 = vmax.f32 %v3438_v61, %v1528_v47  ;;  %v1554_v28 = vmin.f32 %v3438_v61, %v1528_v47 }
 0xbe9   : > { %v1531_v20 = vsub.f32 %v1526_v8, %v1530_v34 }
 0xbeb   : > { %v1532_v49 = vmax.f32 %v1531_v20, 0.0 }
 0xbf7   : > { %v1496_v15 = vpop.permute.xlu1 %1495 }
 0xbf8   : > { %v1498_v25 = vadd.f32 %v1496_v15, %v1488_v54 }
 0xbfb   : > { %v1506_v59 = vpop.permute.xlu1 %1505 }
 0xbfc   : > { %v1508_v38 = vadd.f32 %v1506_v59, %v1498_v25  ;;  %s2207_s17 = spop %2206 }
 0xbfd   : > { %p1643_p1 = scmp.eq.s32.totalorder %s2207_s17, %s3253_s20  ;;  %s2209_s19 = spop %2208 }
 0xbfe   : > { %v3511_v17 = vadd.f32 %v1508_v38, %v3371_v56  ;;  %s2038_s17 = scalar_lea.hbm %s3671_s6, %s2182_s25 }
 0xbff   : > { %s1644_s18 = scalar_select %p1643_p1, 1.0, 0.0  ;;  %v1520_v19 = vpop.permute.xlu1 %1519 }
 0xc00   : > { %v1522_v56 = vmul.f32 %v1520_v19, %v3450_v27  ;;  %v1392_v19 = vsub.f32 1.0, %v1391_v31 }
 0xc01   : > { %v1645_v40 = vstv %s1644_s18  ;;  %s2028_s18 = scalar_lea.sflag [#allocation6], %s274_s8 }
 0xc02   : > { %v3515_v52 = vadd.f32 %v1645_v40, %v3305_v13  ;;  %v1555_v13 = vsub.f32 %v1553_v0, %v1554_v28  ;;  %v1806_v28 = vstv %s2209_s19  ;;  %s2393_s19 = scalar_lea.vmem %s2041_s9, 16 }
 0xc03   : > { %v1692_v21 = vpop.permute.xlu1 %1691  ;;  %v1541_v58 = vpop.permute.xlu0 %1540  ;;  %vm1807_vm2 = vcmp.eq.f32.partialorder %v3307_v39, %v1806_v28  ;;  %p2394_p3 = scmp.ne.s32.totalorder %s2041_s9, %s2393_s19 }
 0xc04   : > { %v3518_v23 = vsub.f32 %v3444_v45, %v1692_v21  ;;  %v3521_v44 = vadd.f32 %v1692_v21, %v3444_v45  ;;  %v1543_v61 = vmul.f32 %v1541_v58, %v1532_v49  ;;  %v1556_v7 = vmax.f32 %v1555_v13, 0.0 }
 0xc05   : > { %v1942_v21 = vsel %vm310_vm0, %v3294_v57, 0.0  ;;  %v1670_v49 = vsub.f32 %v3444_v45, %v3312_v55  ;;  %p2395_p4 = pnand %p2394_p3, %p2556_p10 }
 0xc06   : > { %v3526_v29 = vsub.f32 %v3521_v44, %v3518_v23  ;;  %v1715_v10 = vmin.f32 %v3521_v44, %v1713_v9  ;;  %v1739_v60 = vmax.f32 %v3521_v44, %v1713_v9  ;;  %v3543_v9 = vsub.f32 %v3400_v6, %v1874_v2 }
 0xc07   : > { %v1717_v8 = vpop.permute.xlu1 %1716  ;;  %v1546_v48 = vpop.permute.xlu0 %1545  ;;  %p2396_p5 = pneg %p2395_p4 }
 0xc08   : > { %v1719_v35 = vmax.f32 %v3518_v23, %v1717_v8  ;;  %v1740_v16 = vmin.f32 %v3518_v23, %v1717_v8  ;;  %v1548_v27 = vadd.f32 %v1546_v48, %v1522_v56  ;;  %1698 = vrot.lane.b32.xlu0 %v3526_v29, %s2467_s14  ;;  %v1901_v62 = vmax.f32 %v3543_v9, %v3488_v51 }
 0xc09   : > { %v3552_v2 = vsub.f32 %v3538_v24, %v3543_v9  ;;  %v1922_v57 = vmin.f32 %v3543_v9, %v3488_v51  ;;  %v1845_v51 = vsub.f32 %v3400_v6, %v3500_v3 }
 0xc0a   : > { %v1720_v26 = vsub.f32 %v1715_v10, %v1719_v35  ;;  %v1741_v63 = vsub.f32 %v1739_v60, %v1740_v16  ;;  %v1549_v42 = vsub.f32 %v1548_v27, %v1543_v61  ;;  %v1952_v16 = vsel %vm310_vm0, %v3291_v46, 0.0 }
 0xc0b   : > { %v1895_v0 = vpop.permute.xlu1 %1894  ;;  %v1563_v33 = vpop.permute.xlu0 %1562  ;;  %v1846_v27 = vand.u32 2147483647, %v1845_v51 }
 0xc0c   : > { %v1550_v30 = vadd.f32 1e-07, %v1549_v42  ;;  %v1565_v32 = vmul.f32 %v1563_v33, %v1556_v7  ;;  %1727 = vrot.lane.b32.xlu0 %v3763_v53, %s2465_s13  ;;  %v1897_v18 = vmin.f32 %v3538_v24, %v1895_v0  ;;  %v1721_v22 = vmax.f32 %v1720_v26, 0.0 }
 0xc0d   : > { %v1742_v36 = vmax.f32 %v1741_v63, 0.0  ;;  %v1921_v39 = vmax.f32 %v3538_v24, %v1895_v0  ;;  %v1681_v26 = vsub.f32 %v3444_v45, %v3504_v50  ;;  %v1862_v63 = vsub.f32 %v3400_v6, %v3312_v55 }
 0xc0e   : > { %2312 = vrcp.f32 %v1550_v30  ;;  %v1566_v14 = vsub.f32 %v1565_v32, %v1549_v42  ;;  %v1567_v43 = vadd.f32 1e-07, %v1565_v32  ;;  %1723 = vrot.lane.b32.xlu1 %v1721_v22, %s2467_s14  ;;  %v1902_v54 = vsub.f32 %v1897_v18, %v1901_v62 }
 0xc0f   : > { %v1656_v56 = vpop.permute.xlu1 %1655  ;;  %v1923_v13 = vsub.f32 %v1921_v39, %v1922_v57  ;;  %v1682_v42 = vand.u32 2147483647, %v1681_v26  ;;  %v1863_v7 = vand.u32 2147483647, %v1862_v63 }
 0xc10   : > { %1744 = vrot.lane.b32.xlu0 %v1742_v36, %s2467_s14  ;;  %2314 = vrcp.f32 %v1567_v43  ;;  %v1903_v15 = vmax.f32 %v1902_v54, 0.0  ;;  %v1658_v8 = vsub.f32 %v3444_v45, %v1656_v56 }
 0xc11   : > { %v1924_v10 = vmax.f32 %v1923_v13, 0.0  ;;  %v1865_v46 = vrot.slane %v1863_v7, 3 }
 0xc12   : > { %1880 = vrot.lane.b32.xlu1 %v3552_v2, %s2467_s14  ;;  %v1659_v48 = vand.u32 2147483647, %v1658_v8 }
 0xc13   : > { %v1889_v32 = vpop.permute.xlu1 %1888 }
 0xc14   : > { %1909 = vrot.lane.b32.xlu0 %v3763_v53, %s2477_s22  ;;  %v1808_v53 = vsel %vm1807_vm2, %v2966_v12, 6 }
 0xc15   : > { %v3569_v58 = vsel %vm310_vm0, %v1808_v53, 2147483647 }
 0xc16   : > { %1905 = vrot.lane.b32.xlu1 %v1903_v15, %s2467_s14  ;;  %v1811_v41 = vshra.s32 %v3569_v58, 16  ;;  %v1810_v56 = vand.u32 65535, %v3569_v58 }
 0xc18   : > { %v3573_v31 = vcvt.s32.f32 %v1811_v41 }
 0xc1b   : > { %v2313_v25 = vpop.eup %2312 }
 0xc1c   : > { %v1552_v47 = vmul.f32 %v2313_v25, %v1543_v61  ;;  %v1671_v61 = vand.u32 2147483647, %v1670_v49  ;;  %v1891_v25 = vmax.f32 %v3543_v9, %v1889_v32 }
 0xc1d   : > { %v2315_v59 = vpop.eup %2314 }
 0xc1e   : > { %v1569_v38 = vmul.f32 %v2315_v59, %v1566_v14  ;;  %v1673_v11 = vrot.slane %v1671_v61, 2 }
 0xc20   : > { %v1570_v34 = vsub.f32 %v1552_v47, %v1569_v38 }
 0xc22   : > { %v1571_v40 = vsub.f32 1.0, %v1570_v34 }
 0xc24   : > { %v3562_v20 = vadd.f32 %v1571_v40, %v1392_v19 }
 0xc33   : > { %1943 = vadd.xlane.f32.xlu0 %v1942_v21 }
 0xc37   : > { %1975 = vadd.xlane.f32.xlu0 %v1974_v5 }
 0xc3a   : > { %1814 = vmin.xlane.f32.xlu1 %v3573_v31 }
 0xc4b   : > { %1926 = vrot.lane.b32.xlu1 %v1924_v10, %s2467_s14 }
 0xc4d   : > { %1674 = vrot.lane.b32.xlu0 %v1673_v11, %s2465_s13  ;;  %v1667_v35 = vpop.permute.xlu0 %1666  ;;  %v1812_v11 = vcvt.s32.f32 %v1810_v56 }
 0xc4e   : > { %v3584_v60 = vadd.f32 %v1667_v35, %v1659_v48 }
 0xc51   : > { %v1703_v3 = vpop.permute.xlu0 %1702 }
 0xc52   : > { %v1705_v45 = vmin.f32 %v3521_v44, %v1703_v3  ;;  %v1735_v36 = vmax.f32 %v3521_v44, %v1703_v3 }
 0xc55   : > { %v1707_v0 = vpop.permute.xlu0 %1706 }
 0xc56   : > { %v1709_v18 = vmax.f32 %v3518_v23, %v1707_v0 }
 0xc58   : > { %v1710_v14 = vsub.f32 %v1705_v45, %v1709_v18 }
 0xc59   : > { %v1885_v33 = vpop.permute.xlu0 %1884 }
 0xc5a   : > { %v1887_v43 = vmin.f32 %v3538_v24, %v1885_v33  ;;  %v1711_v54 = vmax.f32 %v1710_v14, 0.0  ;;  %v1917_v39 = vmax.f32 %v3538_v24, %v1885_v33 }
 0xc5c   : > { %v1892_v40 = vsub.f32 %v1887_v43, %v1891_v25 }
 0xc5e   : > { %v1893_v44 = vmax.f32 %v1892_v40, 0.0 }
 0xc6f   : > { %1953 = vadd.xlane.f32.xlu1 %v1952_v16 }
 0xc7a   : > { %v1699_v30 = vpop.permute.xlu0 %1698 }
 0xc7b   : > { %v1701_v47 = vmul.f32 %v1699_v30, %v3526_v29  ;;  %v1918_v29 = vmin.f32 %v3543_v9, %v1889_v32 }
 0xc7d   : > { %v1919_v8 = vsub.f32 %v1917_v39, %v1918_v29 }
 0xc7e   : > { %v1728_v22 = vpop.permute.xlu0 %1727 }
 0xc7f   : > { %v1730_v19 = vadd.f32 %v1728_v22, %v1701_v47  ;;  %v1920_v35 = vmax.f32 %v1919_v8, 0.0 }
 0xc80   : > { %1837 = vrot.lane.b32.xlu1 %v3312_v55, %s2477_s22  ;;  %v1736_v55 = vmin.f32 %v3518_v23, %v1707_v0  ;;  %v1724_v50 = vpop.permute.xlu1 %1723 }
 0xc81   : > { %v1726_v59 = vmul.f32 %v1724_v50, %v1711_v54 }
 0xc82   : > { %v1737_v62 = vsub.f32 %v1735_v36, %v1736_v55  ;;  %v1745_v38 = vpop.permute.xlu0 %1744 }
 0xc83   : > { %v1731_v28 = vsub.f32 %v1730_v19, %v1726_v59 }
 0xc84   : > { %1848 = vrot.lane.b32.xlu1 %v1846_v27, %s2467_s14  ;;  %v1881_v15 = vpop.permute.xlu1 %1880  ;;  %v1738_v34 = vmax.f32 %v1737_v62, 0.0 }
 0xc85   : > { %v1883_v21 = vmul.f32 %v1881_v15, %v3552_v2  ;;  %v1732_v49 = vadd.f32 1e-07, %v1731_v28 }
 0xc86   : > { %v1747_v23 = vmul.f32 %v1745_v38, %v1738_v34  ;;  %v1910_v5 = vpop.permute.xlu0 %1909 }
 0xc87   : > { %v1912_v13 = vadd.f32 %v1910_v5, %v1883_v21 }
 0xc88   : > { %1684 = vrot.lane.b32.xlu1 %v1682_v42, %s2477_s22  ;;  %v1906_v53 = vpop.permute.xlu1 %1905  ;;  %v1749_v41 = vadd.f32 1e-07, %v1747_v23  ;;  %v1748_v27 = vsub.f32 %v1747_v23, %v1731_v28  ;;  %v1855_v42 = vsub.f32 %v3400_v6, %v3506_v37 }
 0xc89   : > { %v1908_v57 = vmul.f32 %v1906_v53, %v1893_v44 }
 0xc8a   : > { %2316 = vrcp.f32 %v1749_v41  ;;  %v1856_v0 = vand.u32 2147483647, %v1855_v42  ;;  %v2179_v42 = vsel %vm1998_vm6, 1.0, %v3736_v4 }
 0xc8b   : > { %2318 = vrcp.f32 %v1732_v49  ;;  %v1913_v61 = vsub.f32 %v1912_v13, %v1908_v57 }
 0xc8c   : > { %1866 = vrot.lane.b32.xlu1 %v1865_v46, %s2477_s22 }
 0xc8d   : > { %v1914_v48 = vadd.f32 1e-07, %v1913_v61 }
 0xc8f   : > { %2320 = vrcp.f32 %v1914_v48 }
 0xc97   : > { %v2317_v58 = vpop.eup %2316 }
 0xc98   : > { %v2319_v9 = vpop.eup %2318  ;;  %v1751_v63 = vmul.f32 %v2317_v58, %v1748_v27  ;;  %v2177_v58 = vsel %vm1986_vm4, 1.0, %v3736_v4  ;;  %v2178_v27 = vsel %vm1992_vm5, 1.0, %v3736_v4 }
 0xc99   : > { %v1734_v26 = vmul.f32 %v2319_v9, %v1726_v59 }
 0xc9b   : > { %v1752_v7 = vsub.f32 %v1734_v26, %v1751_v63 }
 0xc9c   : > { %v2321_v46 = vpop.eup %2320 }
 0xc9d   : > { %v1753_v33 = vsub.f32 1.0, %v1752_v7  ;;  %v1916_v30 = vmul.f32 %v2321_v46, %v1908_v57 }
 0xc9f   : > { %v1754_v45 = vadd.f32 %v1753_v33, %v3562_v20 }
 0xcbc   : > { %v1944_v22 = vpop.xlane.xlu0 %1943 }
 0xcbd   : > { %v1945_v59 = vrot.slane %v1944_v22, 4 }
 0xcbf   : > { %v1946_v19 = vadd.f32 %v1945_v59, %v1944_v22 }
 0xcc0   : > { %v1976_v36 = vpop.xlane.xlu0 %1975 }
 0xcc1   : > { %v1977_v34 = vrot.slane %v1976_v36, 4  ;;  %v1947_v23 = vrot.slane %v1946_v19, 2 }
 0xcc3   : > { %v1815_v10 = vpop.xlane.xlu1 %1814  ;;  %v1978_v40 = vadd.f32 %v1977_v34, %v1976_v36  ;;  %v1948_v44 = vadd.f32 %v1947_v23, %v1946_v19 }
 0xcc4   : > { %vm1816_vm0 = vcmp.eq.f32.partialorder %v3573_v31, %v1815_v10  ;;  %v1675_v62 = vpop.permute.xlu0 %1674  ;;  %v1821_v41 = vcvt.f32.s32 %v1815_v10 }
 0xcc5   : > { %v1817_v2 = vsel %vm1816_vm0, %v1812_v11, inf  ;;  %v1677_v54 = vadd.f32 %v1675_v62, %v3584_v60  ;;  %v1979_v53 = vrot.slane %v1978_v40, 2  ;;  %v1949_v57 = vrot.slane %v1948_v44, 1 }
 0xcc6   : > { %1818 = vmin.xlane.f32.xlu0 %v1817_v2  ;;  %v1822_v56 = vshll.u32 %v1821_v41, 16 }
 0xcc7   : > { %v1927_v24 = vpop.permute.xlu1 %1926  ;;  %v1980_v39 = vadd.f32 %v1979_v53, %v1978_v40  ;;  %v1950_v2 = vadd.f32 %v1949_v57, %v1948_v44 }
 0xcc8   : > { %v1929_v16 = vmul.f32 %v1927_v24, %v1920_v35 }
 0xcc9   : > { %v1981_v13 = vrot.slane %v1980_v39, 1 }
 0xcca   : > { %v1931_v51 = vadd.f32 1e-07, %v1929_v16  ;;  %v1930_v31 = vsub.f32 %v1929_v16, %v1913_v61 }
 0xccb   : > { %v1982_v10 = vadd.f32 %v1981_v13, %v1980_v39 }
 0xccc   : > { %2322 = vrcp.f32 %v1931_v51 }
 0xcd9   : > { %v2323_v3 = vpop.eup %2322 }
 0xcda   : > { %v1933_v32 = vmul.f32 %v2323_v3, %v1930_v31 }
 0xcdc   : > { %1858 = vrot.lane.b32.xlu0 %v1856_v0, %s2465_s13  ;;  %v1934_v18 = vsub.f32 %v1916_v30, %v1933_v32  ;;  %v2180_v0 = vsel %vm2003_vm7, 1.0, %v3736_v4 }
 0xcde   : > { %v1935_v55 = vsub.f32 1.0, %v1934_v18 }
 0xce0   : > { %v1936_v50 = vadd.f32 %v1935_v55, %v1754_v45 }
 0xce2   : > { %2021 = vperm.xlu1 %2297, %v1936_v50  }
 0xcf8   : > { %v1954_v14 = vpop.xlane.xlu1 %1953 }
 0xcf9   : > { %v1955_v38 = vrot.slane %v1954_v14, 4 }
 0xcfb   : > { %v1956_v20 = vadd.f32 %v1955_v38, %v1954_v14 }
 0xcfc   : > { %v1838_v37 = vpop.permute.xlu1 %1837 }
 0xcfd   : > { %v1957_v28 = vrot.slane %v1956_v20, 2  ;;  %v1840_v21 = vsub.f32 %v3400_v6, %v1838_v37 }
 0xcff   : > { %v1958_v5 = vadd.f32 %v1957_v28, %v1956_v20  ;;  %v1841_v60 = vand.u32 2147483647, %v1840_v21 }
 0xd00   : > { %v1849_v43 = vpop.permute.xlu1 %1848 }
 0xd01   : > { %v1959_v29 = vrot.slane %v1958_v5, 1  ;;  %v1851_v61 = vadd.f32 %v1849_v43, %v1841_v60 }
 0xd03   : > { %v1960_v35 = vadd.f32 %v1959_v29, %v1958_v5 }
 0xd04   : > { %v1685_v15 = vpop.permute.xlu1 %1684 }
 0xd05   : > { %v1687_v25 = vadd.f32 %v1685_v15, %v1677_v54 }
 0xd07   : > { %v1688_v47 = vadd.f32 %v1687_v25, %v3511_v17 }
 0xd08   : > { %v1867_v6 = vpop.permute.xlu1 %1866 }
 0xd4f   : > { %v1819_v49 = vpop.xlane.xlu0 %1818 }
 0xd50   : > { %v1820_v17 = vcvt.f32.s32 %v1819_v49 }
 0xd52   : > { %v1823_v8 = vadd.s32 %v1822_v56, %v1820_v17 }
 0xd53   : > { %v1859_v11 = vpop.permute.xlu0 %1858 }
 0xd54   : > { %v1861_v48 = vadd.f32 %v1859_v11, %v1851_v61  ;;  %2210 = vpush %v1823_v8 }
 0xd55   : > { %2212 = vpush %v1950_v2 }
 0xd56   : > { %v1869_v24 = vadd.f32 %v1867_v6, %v1861_v48  ;;  %2214 = vpush %v1960_v35 }
 0xd57   : > { %2216 = vpush %v1982_v10 }
 0xd58   : > { %v1870_v16 = vadd.f32 %v1869_v24, %v1688_v47 }
 0xd5a   : > { %2014 = vperm.xlu0 %2296, %v1870_v16  }
 0xd5d   : > { %v2022_v18 = vpop.permute.xlu1 %2021 }
 0xd5e   : > { %v2024_v22 = vmul.f32 %v3284_v1, %v2022_v18 }
 0xd85   : > { %s2211_s13 = spop %2210 }
 0xd86   : > { %p1825_p2 = scmp.eq.s32.totalorder %s2211_s13, %s3255_s21  ;;  %s2213_s14 = spop %2212 }
 0xd87   : > { %s2215_s23 = spop %2214  ;;  %v1989_v9 = vstv %s2213_s14  ;;  %s2479_s13 = smov [#allocation7]  }
 0xd88   : > { %s1826_s20 = scalar_select %p1825_p2, 1.0, 0.0  ;;  %v1995_v26 = vstv %s2215_s23  ;;  %v1990_v7 = vmul.f32 %v2177_v58, %v1989_v9 }
 0xd89   : > { %s2217_s24 = spop %2216  ;;  %v1996_v46 = vmul.f32 %v2178_v27, %v1995_v26  ;;  %s2397_s29 = sshll.u32 %s2479_s13, 4  ;;  %s2398_s29 = int_to_ptr.vmem [resolvable:$false] %s2397_s29 }
 0xd8a   : > { %v1827_v51 = vstv %s1826_s20  ;;  %s2176_s21 = sadd.f32 -4.0, %s2217_s24  ;;  %s2399_s14 = scalar_lea.vmem %s2398_s29, 32 }
 0xd8b   : > { %v1828_v63 = vadd.f32 %v1827_v51, %v3515_v52  ;;  %v1997_v3 = vadd.f32 %v1996_v46, %v1990_v7  ;;  %v2181_v52 = vsel %vm2009_vm8, 1.0, %v3736_v4  ;;  %p2400_p6 = scmp.lt.s32.totalorder %s2041_s9, %s2398_s29  ;;  %p2401_p7 = scmp.lt.s32.totalorder %s2399_s14, %s2393_s19 }
 0xd8c   : > { %s1985_s30 = sand.u32 2147483647, %s2176_s21 }
 0xd8d   : > { %v2001_v31 = vmul.f32 %v2179_v42, %v1828_v63  ;;  %v2006_v33 = vstv %s1985_s30  ;;  %p2402_p8 = por %p2401_p7, %p2400_p6 }
 0xd8e   : > { %v2007_v32 = vmul.f32 %v2180_v0, %v2006_v33 }
 0xd8f   : > { %v2002_v30 = vadd.f32 %v2001_v31, %v1997_v3  ;;  %p2403_p9 = pnand %p2402_p8, %p2396_p5 }
 0xd91   : > { %v2008_v55 = vadd.f32 %v2007_v32, %v2002_v30 }
 0xdd5   : > { %v2015_v45 = vpop.permute.xlu0 %2014 }
 0xdd6   : > { %v2017_v50 = vmul.f32 %v2181_v52, %v2015_v45 }
 0xdd8   : > { %v2018_v14 = vadd.f32 %v2017_v50, %v2008_v55 }
 0xdda   : > { %v2025_v12 = vadd.f32 %v2024_v22, %v2018_v14 }
 0xddc   : > { %2026 = vst [vmem:[%s275_s15] sm:$0x1] %v2025_v12 }
 0xddd   : > { %2406 = shalt.err (!%p2403_p9)
}
 0xdde   : > { %s2407_s20 = scalar_lea.hbm %s2038_s17, 16  ;;  %s2411_s21 = scalar_lea.hbm %s3671_s6, 32 }
 0xddf   : > { %p2408_p12 = scmp.ne.s32.totalorder %s2038_s17, %s2407_s20  ;;  %p2412_p0 = scmp.lt.s32.totalorder %s2038_s17, %s3671_s6 }
 0xde0   : > { %p2413_p1 = scmp.lt.s32.totalorder %s2411_s21, %s2407_s20 }
 0xde1   : > { %p2409_p13 = pnand %p2408_p12, %p2556_p10 }
 0xde2   : > { %p2414_p2 = por %p2413_p1, %p2412_p0 }
 0xde3   : > { %p2410_p11 = pneg %p2409_p13 }
 0xde5   : > { %p2415_p3 = pnand %p2414_p2, %p2410_p11 }
 0xde7   : > { %2418 = shalt.err (!%p2415_p3)
}
 0xde8   : > { %2222 = dma.vmem_to_hbm [thread:$0]  (%p2556_p10), %s2041_s9, 16, %s2038_s17, %s2028_s18  }
 0xde9 PF: > { %p2234_p4 = scmp.ge.s32.totalorder %s2459_s28, 2  ;;  %s2052_s25 = sand.u32 1, %s2447_s26  }
 0xdea   : > { %p3764_p5 = scmp.ne.s32.totalorder %s3706_s12, 0  ;;  %s2053_s15 = scalar_lea.sflag [#allocation6], %s2052_s25 }
 0xdec   : > { %p2229_p6 = pnand %p2234_p4, %p3764_p5 }
 0xdee   : > { %p2230_p7 = pneg %p2229_p6 }
 0xdf0   : > { %2442 = dma.done.wait (%p2230_p7), %s2053_s15, 16  }
 0xdf1   : > { %2444 = vsyncadd (%p2230_p7), %s2053_s15, 4294967280  ;;  %p23_p8 = scmp.ge.s32.totalorder %s2543_s7, 4   ;;  %s3765_s26 = smov %s2451_s27 }
 0xdf2   : > { %s3766_s27 = smov %s2455_s0  ;;  %s3767_s0 = smov %s2554_s10 }
 0xdf3   : > { %s3768_s28 = smov %s2543_s7  ;;  %25 = sbr.rel (!%p23_p8) target bundleno = 19 (0x13), region = 92 }
 0xdf8   :  { %2057 = vsyncpa [#allocation5], 1 }
 0xdf9   :  { %2059 = vsyncpa [#allocation5 + $0x1], 1 }
 0xdfa   :  { %2060 = vsyncpa [#allocation6], 1 }
 0xdfb   :  { %2062 = vsyncpa [#allocation6 + $0x1], 1 }

</bundles_post_ra>
